<compile_context>
chip_gen: v7x
topology: tpu7x:2x2x1
jax: 0.10.0
libtpu: 0.0.40
codegen_flags: <defaults>
</compile_context>

<pallas_src>
import jax
import jax.numpy as jnp
from jax.experimental import pallas as pl
from jax.experimental.pallas import tpu as pltpu

LANE = 128
_BN_EPS = 1e-5
_VMEM_LIMIT_BYTES = 32 * 1024 * 1024      # explicit scoped-VMEM limit (safe on v5e/v6e/v7x)
_TM_BUDGET_BYTES = 20 * 1024 * 1024       # target resident bytes for pipelined blocks
_TM_CANDIDATES = (8, 16, 32, 64, 128, 256, 512, 1024, 2048)

# parity -> {row/col offset into the 1-padded input : kernel tap index}
# for ConvTranspose2d(kernel=4, stride=2, padding=1):
#   even output rows use kernel rows {3, 1} at input offsets {0, 1},
#   odd  output rows use kernel rows {2, 0} at input offsets {1, 2}.
_KTAB = {0: {0: 3, 1: 1}, 1: {1: 2, 2: 0}}

_LAYER_CFGS = (
    dict(K=4, S=1, P=0, act="relu", use_bn=True),
    dict(K=4, S=2, P=1, act="relu", use_bn=True),
    dict(K=4, S=2, P=1, act="relu", use_bn=True),
    dict(K=4, S=2, P=1, act="relu", use_bn=True),
    dict(K=4, S=2, P=1, act="tanh", use_bn=False),
)


def _round_up(x, m):
    return (x + m - 1) // m * m


def _pick_tm(m, k, np_, *, cap=1024, budget=_TM_BUDGET_BYTES):
    """Largest row tile (multiple of 8, <= cap) whose double-buffered A/y
    blocks plus the resident B block fit the VMEM budget."""
    m8 = _round_up(max(m, 1), 8)
    fixed = 2 * (k * np_ * 2) + 4 * (8 * np_ * 4)   # B (bf16, x2 bufs) + stat blocks
    avail = max(budget - fixed, 0)
    per_row = 4 * k + 4 * np_                       # A + y rows, bf16, double-buffered
    tm = 8
    for cand in _TM_CANDIDATES:
        if cand > cap:
            break
        if cand > 8 and cand * per_row > avail:
            break
        tm = cand
        if cand >= m8:
            break
    return tm


def _divisor_tile(mp, *, cap=2048):
    """Largest candidate tile <= cap that evenly divides mp (mp is a multiple of 8)."""
    tm = 8
    for cand in _TM_CANDIDATES:
        if cand <= min(mp, cap) and mp % cand == 0:
            tm = cand
    return tm


def _pad_rows(a, mp):
    m = a.shape[0]
    if mp == m:
        return a
    return jnp.zeros((mp,) + a.shape[1:], a.dtype).at[:m].set(a)


# ---------------------------------------------------------------------------
# Pallas kernels
# ---------------------------------------------------------------------------
def _matmul_stats_kernel(a_ref, b_ref, y_ref, s_ref, q_ref):
    """y = A @ B (bf16 operands, f32 accumulate), store y bf16 and per-tile
    partial per-column sum / sum-of-squares (f32).  One matmul only."""
    y = jnp.dot(a_ref[...], b_ref[...], preferred_element_type=jnp.float32)
    y_ref[...] = y.astype(y_ref.dtype)
    s = jnp.sum(y, axis=0, keepdims=True)
    q = jnp.sum(y * y, axis=0, keepdims=True)
    s_ref[...] = jnp.broadcast_to(s, s_ref.shape)   # (8, np_) block, row 0 is the payload
    q_ref[...] = jnp.broadcast_to(q, q_ref.shape)


def _bn_relu_kernel(y_ref, sc_ref, sh_ref, o_ref):
    """Elementwise BN affine + ReLU over a tile of y (per-column scale/shift)."""
    z = y_ref[...].astype(jnp.float32) * sc_ref[...] + sh_ref[...]
    o_ref[...] = jnp.maximum(z, 0.0).astype(o_ref.dtype)


def _matmul_tanh_kernel(a_ref, b_ref, o_ref):
    """Final layer: matmul + tanh, single pass."""
    y = jnp.dot(a_ref[...], b_ref[...], preferred_element_type=jnp.float32)
    o_ref[...] = jnp.tanh(y).astype(o_ref.dtype)


# ---------------------------------------------------------------------------
# pallas_call wrappers
# ---------------------------------------------------------------------------
def _matmul_stats_call(a, b):
    """a: (m, k) bf16, b: (k, np_) bf16.  Returns y (mp, np_) bf16 and the
    per-column sum / sum-of-squares reduced over all row tiles (f32)."""
    m, k = a.shape
    np_ = b.shape[1]
    tm = _pick_tm(m, k, np_)
    mp = _round_up(m, tm)
    a = _pad_rows(a, mp)
    nt = mp // tm
    y, psum, psumsq = pl.pallas_call(
        _matmul_stats_kernel,
        out_shape=(jax.ShapeDtypeStruct((mp, np_), jnp.bfloat16),
                   jax.ShapeDtypeStruct((nt * 8, np_), jnp.float32),
                   jax.ShapeDtypeStruct((nt * 8, np_), jnp.float32)),
        grid_spec=pltpu.PrefetchScalarGridSpec(
            num_scalar_prefetch=0,
            grid=(nt,),
            in_specs=[pl.BlockSpec((tm, k), lambda i: (i, 0)),
                      pl.BlockSpec((k, np_), lambda i: (0, 0))],
            out_specs=(pl.BlockSpec((tm, np_), lambda i: (i, 0)),
                       pl.BlockSpec((8, np_), lambda i: (i, 0)),
                       pl.BlockSpec((8, np_), lambda i: (i, 0)))),
        compiler_params=pltpu.CompilerParams(
            dimension_semantics=("parallel",),
            vmem_limit_bytes=_VMEM_LIMIT_BYTES),
    )(a, b)
    col_sum = psum.reshape(nt, 8, np_)[:, 0, :].sum(axis=0)
    col_sumsq = psumsq.reshape(nt, 8, np_)[:, 0, :].sum(axis=0)
    return y, col_sum, col_sumsq


def _bn_relu_apply(y, scale_cols, shift_cols):
    mp, np_ = y.shape
    tm = _divisor_tile(mp, cap=2048)
    return pl.pallas_call(
        _bn_relu_kernel,
        out_shape=jax.ShapeDtypeStruct((mp, np_), jnp.bfloat16),
        grid_spec=pltpu.PrefetchScalarGridSpec(
            num_scalar_prefetch=0,
            grid=(mp // tm,),
            in_specs=[pl.BlockSpec((tm, np_), lambda i: (i, 0)),
                      pl.BlockSpec((1, np_), lambda i: (0, 0)),
                      pl.BlockSpec((1, np_), lambda i: (0, 0))],
            out_specs=pl.BlockSpec((tm, np_), lambda i: (i, 0))),
        compiler_params=pltpu.CompilerParams(
            dimension_semantics=("parallel",),
            vmem_limit_bytes=_VMEM_LIMIT_BYTES),
    )(y, scale_cols, shift_cols)


def _matmul_tanh_call(a, b):
    m, k = a.shape
    np_ = b.shape[1]
    tm = _pick_tm(m, k, np_)
    mp = _round_up(m, tm)
    a = _pad_rows(a, mp)
    return pl.pallas_call(
        _matmul_tanh_kernel,
        out_shape=jax.ShapeDtypeStruct((mp, np_), jnp.bfloat16),
        grid_spec=pltpu.PrefetchScalarGridSpec(
            num_scalar_prefetch=0,
            grid=(mp // tm,),
            in_specs=[pl.BlockSpec((tm, k), lambda i: (i, 0)),
                      pl.BlockSpec((k, np_), lambda i: (0, 0))],
            out_specs=pl.BlockSpec((tm, np_), lambda i: (i, 0))),
        compiler_params=pltpu.CompilerParams(
            dimension_semantics=("parallel",),
            vmem_limit_bytes=_VMEM_LIMIT_BYTES),
    )(a, b)


# ---------------------------------------------------------------------------
# BN finalize (tiny, done in the wrapper in f32 -- no np_^2 grp matrix)
# ---------------------------------------------------------------------------
def _bn_scale_shift(col_sum, col_sumsq, gamma, beta, *, groups, cout, count, eps):
    """Combine same-channel column stats (columns packed (group, channel)),
    derive per-channel train-mode BN scale/shift, re-broadcast to columns."""
    np_ = col_sum.shape[0]
    real = groups * cout
    s_ch = col_sum[:real].reshape(groups, cout).sum(axis=0)
    q_ch = col_sumsq[:real].reshape(groups, cout).sum(axis=0)
    inv = 1.0 / float(count)
    mean = s_ch * inv
    # NOTE: E[x^2]-E[x]^2 in f32; fine for this init regime (means ~0).
    var = jnp.maximum(q_ch * inv - mean * mean, 0.0)
    scale_ch = gamma * jax.lax.rsqrt(var + eps)
    shift_ch = beta - mean * scale_ch
    pad = np_ - real
    scale_cols = jnp.concatenate([jnp.tile(scale_ch, groups),
                                  jnp.zeros((pad,), jnp.float32)])[None, :]
    shift_cols = jnp.concatenate([jnp.tile(shift_ch, groups),
                                  jnp.zeros((pad,), jnp.float32)])[None, :]
    return scale_cols, shift_cols


# ---------------------------------------------------------------------------
# Layout glue (sub-pixel decomposition of the stride-2 transposed conv)
# ---------------------------------------------------------------------------
def _subpixel_patches(x_nhwc):
    """(N,H,W,C) -> (N*H*W, 9*C): 3x3 neighbourhood of the 1-padded input;
    K-dim order is (row_offset*3 + col_offset, channel).  Stays bf16."""
    n, h, w, c = x_nhwc.shape
    xp = jnp.pad(x_nhwc, ((0, 0), (1, 1), (1, 1), (0, 0)))
    taps = [xp[:, r:r + h, s:s + w, :] for r in range(3) for s in range(3)]
    return jnp.stack(taps, axis=3).reshape(n * h * w, 9 * c)


def _subpixel_weight(w):
    """(Cin,Cout,4,4) -> (9*Cin, 4*Cout): rows follow the patch K-order,
    columns are (parity = po*2+pw, co); unused taps stay zero."""
    cin, cout = w.shape[0], w.shape[1]
    wm = jnp.zeros((9 * cin, 4 * cout), jnp.float32)
    for po in (0, 1):
        for pw in (0, 1):
            c0 = (po * 2 + pw) * cout
            for r, kh in _KTAB[po].items():
                for s, kw in _KTAB[pw].items():
                    r0 = (r * 3 + s) * cin
                    wm = wm.at[r0:r0 + cin, c0:c0 + cout].set(w[:, :, kh, kw])
    return wm


def _unpack_parity(y, n, h, w, cout):
    y = y[:n * h * w, :4 * cout].reshape(n, h, w, 2, 2, cout)
    return jnp.transpose(y, (0, 1, 3, 2, 4, 5)).reshape(n, 2 * h, 2 * w, cout)


# ---------------------------------------------------------------------------
# Layers
# ---------------------------------------------------------------------------
def _project_layer(z, b, gamma, beta, eps=_BN_EPS):
    """Layer 1: ConvTranspose2d(nz, c, 4, 1, 0) on a 1x1 input = dense projection
    to all 16 output positions (columns packed (kh*4+kw, co)), + BN + ReLU."""
    n = z.shape[0]
    cout = gamma.shape[0]
    groups = 16
    a = z.reshape(n, -1).astype(jnp.bfloat16)
    y, col_sum, col_sumsq = _matmul_stats_call(a, b)
    sc, sh = _bn_scale_shift(col_sum, col_sumsq, gamma, beta,
                             groups=groups, cout=cout, count=groups * n, eps=eps)
    y = _bn_relu_apply(y, sc, sh)
    return y[:n, :groups * cout].reshape(n, 4, 4, cout)            # NHWC, bf16


def _upsample_layer(x_nhwc, b, gamma, beta, *, use_bn, eps=_BN_EPS):
    """ConvTranspose2d(Cin, Cout, 4, 2, 1, bias=False) [+BN+ReLU | +Tanh],
    NHWC in / NHWC out, via the parity-packed sub-pixel matmul."""
    n, h, wd, _ = x_nhwc.shape
    cout = gamma.shape[0]
    a = _subpixel_patches(x_nhwc)                                  # (n*h*w, 9*Cin) bf16
    if use_bn:
        y, col_sum, col_sumsq = _matmul_stats_call(a, b)
        sc, sh = _bn_scale_shift(col_sum, col_sumsq, gamma, beta,
                                 groups=4, cout=cout,
                                 count=4 * n * h * wd, eps=eps)
        y = _bn_relu_apply(y, sc, sh)
    else:
        y = _matmul_tanh_call(a, b)
    return _unpack_parity(y, n, h, wd, cout)                       # NHWC, bf16


# ---------------------------------------------------------------------------
# Generator: parameters + forward
# ---------------------------------------------------------------------------
def init_generator_params(key, nz, ngf, nc):
    chans = [nz, ngf * 8, ngf * 4, ngf * 2, ngf, nc]
    params = []
    for li in range(5):
        key, kw, kg = jax.random.split(key, 3)
        cin, cout = chans[li], chans[li + 1]
        # ConvTranspose2d weight shape (in_channels, out_channels, kH, kW)
        w = 0.02 * jax.random.normal(kw, (cin, cout, 4, 4), jnp.float32)
        gamma = 1.0 + 0.02 * jax.random.normal(kg, (cout,), jnp.float32)
        beta = jnp.zeros((cout,), jnp.float32)
        params.append((w, gamma, beta))
    return params


def prepare_generator_params(params):
    """One-time weight-side prep: pack the sub-pixel / projection weight matrix,
    cast to bf16, pad columns to a lane multiple.  Done OUTSIDE the jitted
    forward so it is not re-executed per step."""
    prepped = []
    for li, (w, gamma, beta) in enumerate(params):
        cin, cout = w.shape[0], w.shape[1]
        if li == 0:
            wm = jnp.transpose(w, (2, 3, 0, 1)).reshape(16, cin, cout)
            wm = jnp.transpose(wm, (1, 0, 2)).reshape(cin, 16 * cout)
        else:
            wm = _subpixel_weight(w)                               # (9*Cin, 4*Cout)
        k, ncols = wm.shape
        np_ = _round_up(ncols, LANE)
        b = jnp.zeros((k, np_), jnp.bfloat16).at[:, :ncols].set(wm.astype(jnp.bfloat16))
        prepped.append((b, gamma, beta))
    return prepped


def generator_forward(prepped, z):
    b0, g0, be0 = prepped[0]
    x = _project_layer(z, b0, g0, be0)                             # (N,4,4,8*ngf) bf16
    for li in range(1, 5):
        b, g, be = prepped[li]
        x = _upsample_layer(x, b, g, be, use_bn=_LAYER_CFGS[li]["use_bn"])
    # Keep bf16 through the NCHW transpose; single f32 cast at the very end.
    return jnp.transpose(x, (0, 3, 1, 2)).astype(jnp.float32)


# ---------------------------------------------------------------------------
# Pure-JAX reference (PyTorch semantics) for correctness checking
# ---------------------------------------------------------------------------
def _conv_transpose_ref(x, w, stride, pad):
    n, cin, h, wd = x.shape
    _, cout, k, _ = w.shape
    full_h = (h - 1) * stride + k
    full_w = (wd - 1) * stride + k
    out = jnp.zeros((n, cout, full_h, full_w), jnp.float32)
    for kh in range(k):
        for kw in range(k):
            contrib = jnp.einsum("nihw,io->nohw", x, w[:, :, kh, kw])
            out = out.at[:, :,
                         kh:kh + (h - 1) * stride + 1:stride,
                         kw:kw + (wd - 1) * stride + 1:stride].add(contrib)
    oh = full_h - 2 * pad
    ow = full_w - 2 * pad
    return out[:, :, pad:pad + oh, pad:pad + ow]


def generator_reference(params, z, eps=_BN_EPS):
    x = z
    for (w, gamma, beta), cfg in zip(params, _LAYER_CFGS):
        x = _conv_transpose_ref(x, w, cfg["S"], cfg["P"])
        if cfg["use_bn"]:
            mean = jnp.mean(x, axis=(0, 2, 3), keepdims=True)
            var = jnp.var(x, axis=(0, 2, 3), keepdims=True)
            x = (x - mean) * jax.lax.rsqrt(var + eps)
            x = x * gamma[None, :, None, None] + beta[None, :, None, None]
        x = jnp.maximum(x, 0.0) if cfg["act"] == "relu" else jnp.tanh(x)
    return x


# ---------------------------------------------------------------------------
if __name__ == "__main__":
    # Small shapes consistent with the module: nz=16, ngf=8, nc=3, batch=2.
    nz, ngf, nc, batch = 16, 8, 3, 2

    key = jax.random.PRNGKey(0)
    kparams, kz = jax.random.split(key)
    params = init_generator_params(kparams, nz, ngf, nc)
    prepped = prepare_generator_params(params)                     # one-time weight prep
    z = jax.random.normal(kz, (batch, nz, 1, 1), jnp.float32)      # NCHW latent

    out = jax.block_until_ready(jax.jit(generator_forward)(prepped, z))

    assert out.shape == (batch, nc, 64, 64), out.shape
    assert bool(jnp.all(jnp.isfinite(out)))
    assert bool(jnp.max(jnp.abs(out)) <= 1.0 + 1e-6)               # tanh range

    ref = jax.jit(generator_reference)(params, z)
    max_err = float(jnp.max(jnp.abs(out - ref)))
    mean_err = float(jnp.mean(jnp.abs(out - ref)))
    assert max_err < 1.5e-1 and mean_err < 2e-2, (max_err, mean_err)
    print("KERNEL_OK")
</pallas_src>

<mosaic_0001>
module attributes {stable_mosaic.version = 11 : i64} {
  func.func @_matmul_stats_kernel(%arg0: i32, %arg1: memref<8x16xbf16, #tpu.memory_space<vmem>>, %arg2: memref<16x1024xbf16, #tpu.memory_space<vmem>>, %arg3: memref<8x1024xbf16, #tpu.memory_space<vmem>>, %arg4: memref<8x1024xf32, #tpu.memory_space<vmem>>, %arg5: memref<8x1024xf32, #tpu.memory_space<vmem>>) attributes {dimension_semantics = [#tpu.dimension_semantics<parallel>], iteration_bounds = array<i64: 1>, scalar_prefetch = 0 : i64, scratch_operands = 0 : i64, tpu.core_type = #tpu.core_type<tc>, window_params = [{transform_indices = @transform_0, window_bounds = array<i64: 8, 16>}, {pipeline_mode = #tpu.pipeline_mode<synchronous>, transform_indices = @transform_1, window_bounds = array<i64: 16, 1024>}, {transform_indices = @transform_2, window_bounds = array<i64: 8, 1024>}, {transform_indices = @transform_3, window_bounds = array<i64: 8, 1024>}, {transform_indices = @transform_4, window_bounds = array<i64: 8, 1024>}]} {
    %c0 = arith.constant 0 : index
    %c0_0 = arith.constant 0 : index
    %0 = vector.load %arg1[%c0, %c0_0] : memref<8x16xbf16, #tpu.memory_space<vmem>>, vector<8x16xbf16>
    %c0_1 = arith.constant 0 : index
    %c0_2 = arith.constant 0 : index
    %1 = vector.load %arg2[%c0_1, %c0_2] : memref<16x1024xbf16, #tpu.memory_space<vmem>>, vector<16x1024xbf16>
    %cst = arith.constant dense<0.000000e+00> : vector<8x1024xf32>
    %2 = tpu.matmul %0, %1, %cst {dimension_numbers = #tpu.dot_dimension_numbers<[1], [0], [0], [1], [0, 0, 1, 1], [], []>} : vector<8x16xbf16>, vector<16x1024xbf16>, vector<8x1024xf32> -> vector<8x1024xf32>
    %3 = arith.truncf %2 : vector<8x1024xf32> to vector<8x1024xbf16>
    %c0_3 = arith.constant 0 : index
    %c0_4 = arith.constant 0 : index
    %4 = vector.load %arg3[%c0_3, %c0_4] : memref<8x1024xbf16, #tpu.memory_space<vmem>>, vector<8x1024xbf16>
    tpu.vector_store %arg3[%c0_3, %c0_4], %3 {strides = array<i32>} : memref<8x1024xbf16, #tpu.memory_space<vmem>>, vector<8x1024xbf16>,
    %cst_5 = arith.constant dense<0.000000e+00> : vector<1024xf32>
    %5 = vector.multi_reduction <add>, %2, %cst_5 [0] : vector<8x1024xf32> to vector<1024xf32>
    %6 = vector.shape_cast %5 : vector<1024xf32> to vector<1x1024xf32>
    %7 = arith.mulf %2, %2 : vector<8x1024xf32>
    %cst_6 = arith.constant dense<0.000000e+00> : vector<1024xf32>
    %8 = vector.multi_reduction <add>, %7, %cst_6 [0] : vector<8x1024xf32> to vector<1024xf32>
    %9 = vector.shape_cast %8 : vector<1024xf32> to vector<1x1024xf32>
    %10 = vector.shape_cast %6 : vector<1x1024xf32> to vector<1x1024xf32>
    %11 = vector.broadcast %10 : vector<1x1024xf32> to vector<8x1024xf32>
    %c0_7 = arith.constant 0 : index
    %c0_8 = arith.constant 0 : index
    %12 = vector.load %arg4[%c0_7, %c0_8] : memref<8x1024xf32, #tpu.memory_space<vmem>>, vector<8x1024xf32>
    tpu.vector_store %arg4[%c0_7, %c0_8], %11 {strides = array<i32>} : memref<8x1024xf32, #tpu.memory_space<vmem>>, vector<8x1024xf32>,
    %13 = vector.shape_cast %9 : vector<1x1024xf32> to vector<1x1024xf32>
    %14 = vector.broadcast %13 : vector<1x1024xf32> to vector<8x1024xf32>
    %c0_9 = arith.constant 0 : index
    %c0_10 = arith.constant 0 : index
    %15 = vector.load %arg5[%c0_9, %c0_10] : memref<8x1024xf32, #tpu.memory_space<vmem>>, vector<8x1024xf32>
    tpu.vector_store %arg5[%c0_9, %c0_10], %14 {strides = array<i32>} : memref<8x1024xf32, #tpu.memory_space<vmem>>, vector<8x1024xf32>,
    return
  }
  func.func @transform_0(%arg0: i32) -> (i32, i32) {
    %c0_i32 = arith.constant 0 : i32
    %c0_i32_0 = arith.constant 0 : i32
    return %arg0, %c0_i32 : i32, i32
  }
  func.func @transform_1(%arg0: i32) -> (i32, i32) {
    %c0_i32 = arith.constant 0 : i32
    %c0_i32_0 = arith.constant 0 : i32
    %c0_i32_1 = arith.constant 0 : i32
    return %c0_i32, %c0_i32_0 : i32, i32
  }
  func.func @transform_2(%arg0: i32) -> (i32, i32) {
    %c0_i32 = arith.constant 0 : i32
    %c0_i32_0 = arith.constant 0 : i32
    return %arg0, %c0_i32 : i32, i32
  }
  func.func @transform_3(%arg0: i32) -> (i32, i32) {
    %c0_i32 = arith.constant 0 : i32
    %c0_i32_0 = arith.constant 0 : i32
    return %arg0, %c0_i32 : i32, i32
  }
  func.func @transform_4(%arg0: i32) -> (i32, i32) {
    %c0_i32 = arith.constant 0 : i32
    %c0_i32_0 = arith.constant 0 : i32
    return %arg0, %c0_i32 : i32, i32
  }
}

module attributes {stable_mosaic.version = 11 : i64} {
  func.func @_bn_relu_kernel(%arg0: i32, %arg1: memref<8x1024xbf16, #tpu.memory_space<vmem>>, %arg2: memref<1x1024xf32, #tpu.memory_space<vmem>>, %arg3: memref<1x1024xf32, #tpu.memory_space<vmem>>, %arg4: memref<8x1024xbf16, #tpu.memory_space<vmem>>) attributes {dimension_semantics = [#tpu.dimension_semantics<parallel>], iteration_bounds = array<i64: 1>, scalar_prefetch = 0 : i64, scratch_operands = 0 : i64, tpu.core_type = #tpu.core_type<tc>, window_params = [{transform_indices = @transform_0, window_bounds = array<i64: 8, 1024>}, {pipeline_mode = #tpu.pipeline_mode<synchronous>, transform_indices = @transform_1, window_bounds = array<i64: 1, 1024>}, {pipeline_mode = #tpu.pipeline_mode<synchronous>, transform_indices = @transform_2, window_bounds = array<i64: 1, 1024>}, {transform_indices = @transform_3, window_bounds = array<i64: 8, 1024>}]} {
    %c0 = arith.constant 0 : index
    %c0_0 = arith.constant 0 : index
    %0 = vector.load %arg1[%c0, %c0_0] : memref<8x1024xbf16, #tpu.memory_space<vmem>>, vector<8x1024xbf16>
    %1 = arith.extf %0 : vector<8x1024xbf16> to vector<8x1024xf32>
    %c0_1 = arith.constant 0 : index
    %c0_2 = arith.constant 0 : index
    %2 = vector.load %arg2[%c0_1, %c0_2] : memref<1x1024xf32, #tpu.memory_space<vmem>>, vector<1x1024xf32>
    %3 = vector.broadcast %2 : vector<1x1024xf32> to vector<8x1024xf32>
    %4 = arith.mulf %1, %3 : vector<8x1024xf32>
    %c0_3 = arith.constant 0 : index
    %c0_4 = arith.constant 0 : index
    %5 = vector.load %arg3[%c0_3, %c0_4] : memref<1x1024xf32, #tpu.memory_space<vmem>>, vector<1x1024xf32>
    %6 = vector.broadcast %5 : vector<1x1024xf32> to vector<8x1024xf32>
    %7 = arith.addf %4, %6 : vector<8x1024xf32>
    %cst = arith.constant 0.000000e+00 : f32
    %8 = vector.broadcast %cst : f32 to vector<8x1024xf32>
    %9 = arith.maximumf %7, %8 : vector<8x1024xf32>
    %10 = arith.truncf %9 : vector<8x1024xf32> to vector<8x1024xbf16>
    %c0_5 = arith.constant 0 : index
    %c0_6 = arith.constant 0 : index
    %11 = vector.load %arg4[%c0_5, %c0_6] : memref<8x1024xbf16, #tpu.memory_space<vmem>>, vector<8x1024xbf16>
    tpu.vector_store %arg4[%c0_5, %c0_6], %10 {strides = array<i32>} : memref<8x1024xbf16, #tpu.memory_space<vmem>>, vector<8x1024xbf16>,
    return
  }
  func.func @transform_0(%arg0: i32) -> (i32, i32) {
    %c0_i32 = arith.constant 0 : i32
    %c0_i32_0 = arith.constant 0 : i32
    return %arg0, %c0_i32 : i32, i32
  }
  func.func @transform_1(%arg0: i32) -> (i32, i32) {
    %c0_i32 = arith.constant 0 : i32
    %c0_i32_0 = arith.constant 0 : i32
    %c0_i32_1 = arith.constant 0 : i32
    return %c0_i32, %c0_i32_0 : i32, i32
  }
  func.func @transform_2(%arg0: i32) -> (i32, i32) {
    %c0_i32 = arith.constant 0 : i32
    %c0_i32_0 = arith.constant 0 : i32
    %c0_i32_1 = arith.constant 0 : i32
    return %c0_i32, %c0_i32_0 : i32, i32
  }
  func.func @transform_3(%arg0: i32) -> (i32, i32) {
    %c0_i32 = arith.constant 0 : i32
    %c0_i32_0 = arith.constant 0 : i32
    return %arg0, %c0_i32 : i32, i32
  }
}

module attributes {stable_mosaic.version = 11 : i64} {
  func.func @_matmul_stats_kernel(%arg0: i32, %arg1: memref<32x576xbf16, #tpu.memory_space<vmem>>, %arg2: memref<576x128xbf16, #tpu.memory_space<vmem>>, %arg3: memref<32x128xbf16, #tpu.memory_space<vmem>>, %arg4: memref<8x128xf32, #tpu.memory_space<vmem>>, %arg5: memref<8x128xf32, #tpu.memory_space<vmem>>) attributes {dimension_semantics = [#tpu.dimension_semantics<parallel>], iteration_bounds = array<i64: 1>, scalar_prefetch = 0 : i64, scratch_operands = 0 : i64, tpu.core_type = #tpu.core_type<tc>, window_params = [{transform_indices = @transform_0, window_bounds = array<i64: 32, 576>}, {pipeline_mode = #tpu.pipeline_mode<synchronous>, transform_indices = @transform_1, window_bounds = array<i64: 576, 128>}, {transform_indices = @transform_2, window_bounds = array<i64: 32, 128>}, {transform_indices = @transform_3, window_bounds = array<i64: 8, 128>}, {transform_indices = @transform_4, window_bounds = array<i64: 8, 128>}]} {
    %c0 = arith.constant 0 : index
    %c0_0 = arith.constant 0 : index
    %0 = vector.load %arg1[%c0, %c0_0] : memref<32x576xbf16, #tpu.memory_space<vmem>>, vector<32x576xbf16>
    %c0_1 = arith.constant 0 : index
    %c0_2 = arith.constant 0 : index
    %1 = vector.load %arg2[%c0_1, %c0_2] : memref<576x128xbf16, #tpu.memory_space<vmem>>, vector<576x128xbf16>
    %cst = arith.constant dense<0.000000e+00> : vector<32x128xf32>
    %2 = tpu.matmul %0, %1, %cst {dimension_numbers = #tpu.dot_dimension_numbers<[1], [0], [0], [1], [0, 0, 1, 1], [], []>} : vector<32x576xbf16>, vector<576x128xbf16>, vector<32x128xf32> -> vector<32x128xf32>
    %3 = arith.truncf %2 : vector<32x128xf32> to vector<32x128xbf16>
    %c0_3 = arith.constant 0 : index
    %c0_4 = arith.constant 0 : index
    %4 = vector.load %arg3[%c0_3, %c0_4] : memref<32x128xbf16, #tpu.memory_space<vmem>>, vector<32x128xbf16>
    tpu.vector_store %arg3[%c0_3, %c0_4], %3 {strides = array<i32>} : memref<32x128xbf16, #tpu.memory_space<vmem>>, vector<32x128xbf16>,
    %cst_5 = arith.constant dense<0.000000e+00> : vector<128xf32>
    %5 = vector.multi_reduction <add>, %2, %cst_5 [0] : vector<32x128xf32> to vector<128xf32>
    %6 = vector.shape_cast %5 : vector<128xf32> to vector<1x128xf32>
    %7 = arith.mulf %2, %2 : vector<32x128xf32>
    %cst_6 = arith.constant dense<0.000000e+00> : vector<128xf32>
    %8 = vector.multi_reduction <add>, %7, %cst_6 [0] : vector<32x128xf32> to vector<128xf32>
    %9 = vector.shape_cast %8 : vector<128xf32> to vector<1x128xf32>
    %10 = vector.shape_cast %6 : vector<1x128xf32> to vector<1x128xf32>
    %11 = vector.broadcast %10 : vector<1x128xf32> to vector<8x128xf32>
    %c0_7 = arith.constant 0 : index
    %c0_8 = arith.constant 0 : index
    %12 = vector.load %arg4[%c0_7, %c0_8] : memref<8x128xf32, #tpu.memory_space<vmem>>, vector<8x128xf32>
    tpu.vector_store %arg4[%c0_7, %c0_8], %11 {strides = array<i32>} : memref<8x128xf32, #tpu.memory_space<vmem>>, vector<8x128xf32>,
    %13 = vector.shape_cast %9 : vector<1x128xf32> to vector<1x128xf32>
    %14 = vector.broadcast %13 : vector<1x128xf32> to vector<8x128xf32>
    %c0_9 = arith.constant 0 : index
    %c0_10 = arith.constant 0 : index
    %15 = vector.load %arg5[%c0_9, %c0_10] : memref<8x128xf32, #tpu.memory_space<vmem>>, vector<8x128xf32>
    tpu.vector_store %arg5[%c0_9, %c0_10], %14 {strides = array<i32>} : memref<8x128xf32, #tpu.memory_space<vmem>>, vector<8x128xf32>,
    return
  }
  func.func @transform_0(%arg0: i32) -> (i32, i32) {
    %c0_i32 = arith.constant 0 : i32
    %c0_i32_0 = arith.constant 0 : i32
    return %arg0, %c0_i32 : i32, i32
  }
  func.func @transform_1(%arg0: i32) -> (i32, i32) {
    %c0_i32 = arith.constant 0 : i32
    %c0_i32_0 = arith.constant 0 : i32
    %c0_i32_1 = arith.constant 0 : i32
    return %c0_i32, %c0_i32_0 : i32, i32
  }
  func.func @transform_2(%arg0: i32) -> (i32, i32) {
    %c0_i32 = arith.constant 0 : i32
    %c0_i32_0 = arith.constant 0 : i32
    return %arg0, %c0_i32 : i32, i32
  }
  func.func @transform_3(%arg0: i32) -> (i32, i32) {
    %c0_i32 = arith.constant 0 : i32
    %c0_i32_0 = arith.constant 0 : i32
    return %arg0, %c0_i32 : i32, i32
  }
  func.func @transform_4(%arg0: i32) -> (i32, i32) {
    %c0_i32 = arith.constant 0 : i32
    %c0_i32_0 = arith.constant 0 : i32
    return %arg0, %c0_i32 : i32, i32
  }
}

module attributes {stable_mosaic.version = 11 : i64} {
  func.func @_bn_relu_kernel(%arg0: i32, %arg1: memref<32x128xbf16, #tpu.memory_space<vmem>>, %arg2: memref<1x128xf32, #tpu.memory_space<vmem>>, %arg3: memref<1x128xf32, #tpu.memory_space<vmem>>, %arg4: memref<32x128xbf16, #tpu.memory_space<vmem>>) attributes {dimension_semantics = [#tpu.dimension_semantics<parallel>], iteration_bounds = array<i64: 1>, scalar_prefetch = 0 : i64, scratch_operands = 0 : i64, tpu.core_type = #tpu.core_type<tc>, window_params = [{transform_indices = @transform_0, window_bounds = array<i64: 32, 128>}, {pipeline_mode = #tpu.pipeline_mode<synchronous>, transform_indices = @transform_1, window_bounds = array<i64: 1, 128>}, {pipeline_mode = #tpu.pipeline_mode<synchronous>, transform_indices = @transform_2, window_bounds = array<i64: 1, 128>}, {transform_indices = @transform_3, window_bounds = array<i64: 32, 128>}]} {
    %c0 = arith.constant 0 : index
    %c0_0 = arith.constant 0 : index
    %0 = vector.load %arg1[%c0, %c0_0] : memref<32x128xbf16, #tpu.memory_space<vmem>>, vector<32x128xbf16>
    %1 = arith.extf %0 : vector<32x128xbf16> to vector<32x128xf32>
    %c0_1 = arith.constant 0 : index
    %c0_2 = arith.constant 0 : index
    %2 = vector.load %arg2[%c0_1, %c0_2] : memref<1x128xf32, #tpu.memory_space<vmem>>, vector<1x128xf32>
    %3 = vector.broadcast %2 : vector<1x128xf32> to vector<32x128xf32>
    %4 = arith.mulf %1, %3 : vector<32x128xf32>
    %c0_3 = arith.constant 0 : index
    %c0_4 = arith.constant 0 : index
    %5 = vector.load %arg3[%c0_3, %c0_4] : memref<1x128xf32, #tpu.memory_space<vmem>>, vector<1x128xf32>
    %6 = vector.broadcast %5 : vector<1x128xf32> to vector<32x128xf32>
    %7 = arith.addf %4, %6 : vector<32x128xf32>
    %cst = arith.constant 0.000000e+00 : f32
    %8 = vector.broadcast %cst : f32 to vector<32x128xf32>
    %9 = arith.maximumf %7, %8 : vector<32x128xf32>
    %10 = arith.truncf %9 : vector<32x128xf32> to vector<32x128xbf16>
    %c0_5 = arith.constant 0 : index
    %c0_6 = arith.constant 0 : index
    %11 = vector.load %arg4[%c0_5, %c0_6] : memref<32x128xbf16, #tpu.memory_space<vmem>>, vector<32x128xbf16>
    tpu.vector_store %arg4[%c0_5, %c0_6], %10 {strides = array<i32>} : memref<32x128xbf16, #tpu.memory_space<vmem>>, vector<32x128xbf16>,
    return
  }
  func.func @transform_0(%arg0: i32) -> (i32, i32) {
    %c0_i32 = arith.constant 0 : i32
    %c0_i32_0 = arith.constant 0 : i32
    return %arg0, %c0_i32 : i32, i32
  }
  func.func @transform_1(%arg0: i32) -> (i32, i32) {
    %c0_i32 = arith.constant 0 : i32
    %c0_i32_0 = arith.constant 0 : i32
    %c0_i32_1 = arith.constant 0 : i32
    return %c0_i32, %c0_i32_0 : i32, i32
  }
  func.func @transform_2(%arg0: i32) -> (i32, i32) {
    %c0_i32 = arith.constant 0 : i32
    %c0_i32_0 = arith.constant 0 : i32
    %c0_i32_1 = arith.constant 0 : i32
    return %c0_i32, %c0_i32_0 : i32, i32
  }
  func.func @transform_3(%arg0: i32) -> (i32, i32) {
    %c0_i32 = arith.constant 0 : i32
    %c0_i32_0 = arith.constant 0 : i32
    return %arg0, %c0_i32 : i32, i32
  }
}

module attributes {stable_mosaic.version = 11 : i64} {
  func.func @_matmul_stats_kernel(%arg0: i32, %arg1: memref<128x288xbf16, #tpu.memory_space<vmem>>, %arg2: memref<288x128xbf16, #tpu.memory_space<vmem>>, %arg3: memref<128x128xbf16, #tpu.memory_space<vmem>>, %arg4: memref<8x128xf32, #tpu.memory_space<vmem>>, %arg5: memref<8x128xf32, #tpu.memory_space<vmem>>) attributes {dimension_semantics = [#tpu.dimension_semantics<parallel>], iteration_bounds = array<i64: 1>, scalar_prefetch = 0 : i64, scratch_operands = 0 : i64, tpu.core_type = #tpu.core_type<tc>, window_params = [{transform_indices = @transform_0, window_bounds = array<i64: 128, 288>}, {pipeline_mode = #tpu.pipeline_mode<synchronous>, transform_indices = @transform_1, window_bounds = array<i64: 288, 128>}, {transform_indices = @transform_2, window_bounds = array<i64: 128, 128>}, {transform_indices = @transform_3, window_bounds = array<i64: 8, 128>}, {transform_indices = @transform_4, window_bounds = array<i64: 8, 128>}]} {
    %c0 = arith.constant 0 : index
    %c0_0 = arith.constant 0 : index
    %0 = vector.load %arg1[%c0, %c0_0] : memref<128x288xbf16, #tpu.memory_space<vmem>>, vector<128x288xbf16>
    %c0_1 = arith.constant 0 : index
    %c0_2 = arith.constant 0 : index
    %1 = vector.load %arg2[%c0_1, %c0_2] : memref<288x128xbf16, #tpu.memory_space<vmem>>, vector<288x128xbf16>
    %cst = arith.constant dense<0.000000e+00> : vector<128x128xf32>
    %2 = tpu.matmul %0, %1, %cst {dimension_numbers = #tpu.dot_dimension_numbers<[1], [0], [0], [1], [0, 0, 1, 1], [], []>} : vector<128x288xbf16>, vector<288x128xbf16>, vector<128x128xf32> -> vector<128x128xf32>
    %3 = arith.truncf %2 : vector<128x128xf32> to vector<128x128xbf16>
    %c0_3 = arith.constant 0 : index
    %c0_4 = arith.constant 0 : index
    %4 = vector.load %arg3[%c0_3, %c0_4] : memref<128x128xbf16, #tpu.memory_space<vmem>>, vector<128x128xbf16>
    tpu.vector_store %arg3[%c0_3, %c0_4], %3 {strides = array<i32>} : memref<128x128xbf16, #tpu.memory_space<vmem>>, vector<128x128xbf16>,
    %cst_5 = arith.constant dense<0.000000e+00> : vector<128xf32>
    %5 = vector.multi_reduction <add>, %2, %cst_5 [0] : vector<128x128xf32> to vector<128xf32>
    %6 = vector.shape_cast %5 : vector<128xf32> to vector<1x128xf32>
    %7 = arith.mulf %2, %2 : vector<128x128xf32>
    %cst_6 = arith.constant dense<0.000000e+00> : vector<128xf32>
    %8 = vector.multi_reduction <add>, %7, %cst_6 [0] : vector<128x128xf32> to vector<128xf32>
    %9 = vector.shape_cast %8 : vector<128xf32> to vector<1x128xf32>
    %10 = vector.shape_cast %6 : vector<1x128xf32> to vector<1x128xf32>
    %11 = vector.broadcast %10 : vector<1x128xf32> to vector<8x128xf32>
    %c0_7 = arith.constant 0 : index
    %c0_8 = arith.constant 0 : index
    %12 = vector.load %arg4[%c0_7, %c0_8] : memref<8x128xf32, #tpu.memory_space<vmem>>, vector<8x128xf32>
    tpu.vector_store %arg4[%c0_7, %c0_8], %11 {strides = array<i32>} : memref<8x128xf32, #tpu.memory_space<vmem>>, vector<8x128xf32>,
    %13 = vector.shape_cast %9 : vector<1x128xf32> to vector<1x128xf32>
    %14 = vector.broadcast %13 : vector<1x128xf32> to vector<8x128xf32>
    %c0_9 = arith.constant 0 : index
    %c0_10 = arith.constant 0 : index
    %15 = vector.load %arg5[%c0_9, %c0_10] : memref<8x128xf32, #tpu.memory_space<vmem>>, vector<8x128xf32>
    tpu.vector_store %arg5[%c0_9, %c0_10], %14 {strides = array<i32>} : memref<8x128xf32, #tpu.memory_space<vmem>>, vector<8x128xf32>,
    return
  }
  func.func @transform_0(%arg0: i32) -> (i32, i32) {
    %c0_i32 = arith.constant 0 : i32
    %c0_i32_0 = arith.constant 0 : i32
    return %arg0, %c0_i32 : i32, i32
  }
  func.func @transform_1(%arg0: i32) -> (i32, i32) {
    %c0_i32 = arith.constant 0 : i32
    %c0_i32_0 = arith.constant 0 : i32
    %c0_i32_1 = arith.constant 0 : i32
    return %c0_i32, %c0_i32_0 : i32, i32
  }
  func.func @transform_2(%arg0: i32) -> (i32, i32) {
    %c0_i32 = arith.constant 0 : i32
    %c0_i32_0 = arith.constant 0 : i32
    return %arg0, %c0_i32 : i32, i32
  }
  func.func @transform_3(%arg0: i32) -> (i32, i32) {
    %c0_i32 = arith.constant 0 : i32
    %c0_i32_0 = arith.constant 0 : i32
    return %arg0, %c0_i32 : i32, i32
  }
  func.func @transform_4(%arg0: i32) -> (i32, i32) {
    %c0_i32 = arith.constant 0 : i32
    %c0_i32_0 = arith.constant 0 : i32
    return %arg0, %c0_i32 : i32, i32
  }
}

module attributes {stable_mosaic.version = 11 : i64} {
  func.func @_bn_relu_kernel(%arg0: i32, %arg1: memref<128x128xbf16, #tpu.memory_space<vmem>>, %arg2: memref<1x128xf32, #tpu.memory_space<vmem>>, %arg3: memref<1x128xf32, #tpu.memory_space<vmem>>, %arg4: memref<128x128xbf16, #tpu.memory_space<vmem>>) attributes {dimension_semantics = [#tpu.dimension_semantics<parallel>], iteration_bounds = array<i64: 1>, scalar_prefetch = 0 : i64, scratch_operands = 0 : i64, tpu.core_type = #tpu.core_type<tc>, window_params = [{transform_indices = @transform_0, window_bounds = array<i64: 128, 128>}, {pipeline_mode = #tpu.pipeline_mode<synchronous>, transform_indices = @transform_1, window_bounds = array<i64: 1, 128>}, {pipeline_mode = #tpu.pipeline_mode<synchronous>, transform_indices = @transform_2, window_bounds = array<i64: 1, 128>}, {transform_indices = @transform_3, window_bounds = array<i64: 128, 128>}]} {
    %c0 = arith.constant 0 : index
    %c0_0 = arith.constant 0 : index
    %0 = vector.load %arg1[%c0, %c0_0] : memref<128x128xbf16, #tpu.memory_space<vmem>>, vector<128x128xbf16>
    %1 = arith.extf %0 : vector<128x128xbf16> to vector<128x128xf32>
    %c0_1 = arith.constant 0 : index
    %c0_2 = arith.constant 0 : index
    %2 = vector.load %arg2[%c0_1, %c0_2] : memref<1x128xf32, #tpu.memory_space<vmem>>, vector<1x128xf32>
    %3 = vector.broadcast %2 : vector<1x128xf32> to vector<128x128xf32>
    %4 = arith.mulf %1, %3 : vector<128x128xf32>
    %c0_3 = arith.constant 0 : index
    %c0_4 = arith.constant 0 : index
    %5 = vector.load %arg3[%c0_3, %c0_4] : memref<1x128xf32, #tpu.memory_space<vmem>>, vector<1x128xf32>
    %6 = vector.broadcast %5 : vector<1x128xf32> to vector<128x128xf32>
    %7 = arith.addf %4, %6 : vector<128x128xf32>
    %cst = arith.constant 0.000000e+00 : f32
    %8 = vector.broadcast %cst : f32 to vector<128x128xf32>
    %9 = arith.maximumf %7, %8 : vector<128x128xf32>
    %10 = arith.truncf %9 : vector<128x128xf32> to vector<128x128xbf16>
    %c0_5 = arith.constant 0 : index
    %c0_6 = arith.constant 0 : index
    %11 = vector.load %arg4[%c0_5, %c0_6] : memref<128x128xbf16, #tpu.memory_space<vmem>>, vector<128x128xbf16>
    tpu.vector_store %arg4[%c0_5, %c0_6], %10 {strides = array<i32>} : memref<128x128xbf16, #tpu.memory_space<vmem>>, vector<128x128xbf16>,
    return
  }
  func.func @transform_0(%arg0: i32) -> (i32, i32) {
    %c0_i32 = arith.constant 0 : i32
    %c0_i32_0 = arith.constant 0 : i32
    return %arg0, %c0_i32 : i32, i32
  }
  func.func @transform_1(%arg0: i32) -> (i32, i32) {
    %c0_i32 = arith.constant 0 : i32
    %c0_i32_0 = arith.constant 0 : i32
    %c0_i32_1 = arith.constant 0 : i32
    return %c0_i32, %c0_i32_0 : i32, i32
  }
  func.func @transform_2(%arg0: i32) -> (i32, i32) {
    %c0_i32 = arith.constant 0 : i32
    %c0_i32_0 = arith.constant 0 : i32
    %c0_i32_1 = arith.constant 0 : i32
    return %c0_i32, %c0_i32_0 : i32, i32
  }
  func.func @transform_3(%arg0: i32) -> (i32, i32) {
    %c0_i32 = arith.constant 0 : i32
    %c0_i32_0 = arith.constant 0 : i32
    return %arg0, %c0_i32 : i32, i32
  }
}

module attributes {stable_mosaic.version = 11 : i64} {
  func.func @_matmul_stats_kernel(%arg0: i32, %arg1: memref<512x144xbf16, #tpu.memory_space<vmem>>, %arg2: memref<144x128xbf16, #tpu.memory_space<vmem>>, %arg3: memref<512x128xbf16, #tpu.memory_space<vmem>>, %arg4: memref<8x128xf32, #tpu.memory_space<vmem>>, %arg5: memref<8x128xf32, #tpu.memory_space<vmem>>) attributes {dimension_semantics = [#tpu.dimension_semantics<parallel>], iteration_bounds = array<i64: 1>, scalar_prefetch = 0 : i64, scratch_operands = 0 : i64, tpu.core_type = #tpu.core_type<tc>, window_params = [{transform_indices = @transform_0, window_bounds = array<i64: 512, 144>}, {pipeline_mode = #tpu.pipeline_mode<synchronous>, transform_indices = @transform_1, window_bounds = array<i64: 144, 128>}, {transform_indices = @transform_2, window_bounds = array<i64: 512, 128>}, {transform_indices = @transform_3, window_bounds = array<i64: 8, 128>}, {transform_indices = @transform_4, window_bounds = array<i64: 8, 128>}]} {
    %c0 = arith.constant 0 : index
    %c0_0 = arith.constant 0 : index
    %0 = vector.load %arg1[%c0, %c0_0] : memref<512x144xbf16, #tpu.memory_space<vmem>>, vector<512x144xbf16>
    %c0_1 = arith.constant 0 : index
    %c0_2 = arith.constant 0 : index
    %1 = vector.load %arg2[%c0_1, %c0_2] : memref<144x128xbf16, #tpu.memory_space<vmem>>, vector<144x128xbf16>
    %cst = arith.constant dense<0.000000e+00> : vector<512x128xf32>
    %2 = tpu.matmul %0, %1, %cst {dimension_numbers = #tpu.dot_dimension_numbers<[1], [0], [0], [1], [0, 0, 1, 1], [], []>} : vector<512x144xbf16>, vector<144x128xbf16>, vector<512x128xf32> -> vector<512x128xf32>
    %3 = arith.truncf %2 : vector<512x128xf32> to vector<512x128xbf16>
    %c0_3 = arith.constant 0 : index
    %c0_4 = arith.constant 0 : index
    %4 = vector.load %arg3[%c0_3, %c0_4] : memref<512x128xbf16, #tpu.memory_space<vmem>>, vector<512x128xbf16>
    tpu.vector_store %arg3[%c0_3, %c0_4], %3 {strides = array<i32>} : memref<512x128xbf16, #tpu.memory_space<vmem>>, vector<512x128xbf16>,
    %cst_5 = arith.constant dense<0.000000e+00> : vector<128xf32>
    %5 = vector.multi_reduction <add>, %2, %cst_5 [0] : vector<512x128xf32> to vector<128xf32>
    %6 = vector.shape_cast %5 : vector<128xf32> to vector<1x128xf32>
    %7 = arith.mulf %2, %2 : vector<512x128xf32>
    %cst_6 = arith.constant dense<0.000000e+00> : vector<128xf32>
    %8 = vector.multi_reduction <add>, %7, %cst_6 [0] : vector<512x128xf32> to vector<128xf32>
    %9 = vector.shape_cast %8 : vector<128xf32> to vector<1x128xf32>
    %10 = vector.shape_cast %6 : vector<1x128xf32> to vector<1x128xf32>
    %11 = vector.broadcast %10 : vector<1x128xf32> to vector<8x128xf32>
    %c0_7 = arith.constant 0 : index
    %c0_8 = arith.constant 0 : index
    %12 = vector.load %arg4[%c0_7, %c0_8] : memref<8x128xf32, #tpu.memory_space<vmem>>, vector<8x128xf32>
    tpu.vector_store %arg4[%c0_7, %c0_8], %11 {strides = array<i32>} : memref<8x128xf32, #tpu.memory_space<vmem>>, vector<8x128xf32>,
    %13 = vector.shape_cast %9 : vector<1x128xf32> to vector<1x128xf32>
    %14 = vector.broadcast %13 : vector<1x128xf32> to vector<8x128xf32>
    %c0_9 = arith.constant 0 : index
    %c0_10 = arith.constant 0 : index
    %15 = vector.load %arg5[%c0_9, %c0_10] : memref<8x128xf32, #tpu.memory_space<vmem>>, vector<8x128xf32>
    tpu.vector_store %arg5[%c0_9, %c0_10], %14 {strides = array<i32>} : memref<8x128xf32, #tpu.memory_space<vmem>>, vector<8x128xf32>,
    return
  }
  func.func @transform_0(%arg0: i32) -> (i32, i32) {
    %c0_i32 = arith.constant 0 : i32
    %c0_i32_0 = arith.constant 0 : i32
    return %arg0, %c0_i32 : i32, i32
  }
  func.func @transform_1(%arg0: i32) -> (i32, i32) {
    %c0_i32 = arith.constant 0 : i32
    %c0_i32_0 = arith.constant 0 : i32
    %c0_i32_1 = arith.constant 0 : i32
    return %c0_i32, %c0_i32_0 : i32, i32
  }
  func.func @transform_2(%arg0: i32) -> (i32, i32) {
    %c0_i32 = arith.constant 0 : i32
    %c0_i32_0 = arith.constant 0 : i32
    return %arg0, %c0_i32 : i32, i32
  }
  func.func @transform_3(%arg0: i32) -> (i32, i32) {
    %c0_i32 = arith.constant 0 : i32
    %c0_i32_0 = arith.constant 0 : i32
    return %arg0, %c0_i32 : i32, i32
  }
  func.func @transform_4(%arg0: i32) -> (i32, i32) {
    %c0_i32 = arith.constant 0 : i32
    %c0_i32_0 = arith.constant 0 : i32
    return %arg0, %c0_i32 : i32, i32
  }
}

module attributes {stable_mosaic.version = 11 : i64} {
  func.func @_bn_relu_kernel(%arg0: i32, %arg1: memref<512x128xbf16, #tpu.memory_space<vmem>>, %arg2: memref<1x128xf32, #tpu.memory_space<vmem>>, %arg3: memref<1x128xf32, #tpu.memory_space<vmem>>, %arg4: memref<512x128xbf16, #tpu.memory_space<vmem>>) attributes {dimension_semantics = [#tpu.dimension_semantics<parallel>], iteration_bounds = array<i64: 1>, scalar_prefetch = 0 : i64, scratch_operands = 0 : i64, tpu.core_type = #tpu.core_type<tc>, window_params = [{transform_indices = @transform_0, window_bounds = array<i64: 512, 128>}, {pipeline_mode = #tpu.pipeline_mode<synchronous>, transform_indices = @transform_1, window_bounds = array<i64: 1, 128>}, {pipeline_mode = #tpu.pipeline_mode<synchronous>, transform_indices = @transform_2, window_bounds = array<i64: 1, 128>}, {transform_indices = @transform_3, window_bounds = array<i64: 512, 128>}]} {
    %c0 = arith.constant 0 : index
    %c0_0 = arith.constant 0 : index
    %0 = vector.load %arg1[%c0, %c0_0] : memref<512x128xbf16, #tpu.memory_space<vmem>>, vector<512x128xbf16>
    %1 = arith.extf %0 : vector<512x128xbf16> to vector<512x128xf32>
    %c0_1 = arith.constant 0 : index
    %c0_2 = arith.constant 0 : index
    %2 = vector.load %arg2[%c0_1, %c0_2] : memref<1x128xf32, #tpu.memory_space<vmem>>, vector<1x128xf32>
    %3 = vector.broadcast %2 : vector<1x128xf32> to vector<512x128xf32>
    %4 = arith.mulf %1, %3 : vector<512x128xf32>
    %c0_3 = arith.constant 0 : index
    %c0_4 = arith.constant 0 : index
    %5 = vector.load %arg3[%c0_3, %c0_4] : memref<1x128xf32, #tpu.memory_space<vmem>>, vector<1x128xf32>
    %6 = vector.broadcast %5 : vector<1x128xf32> to vector<512x128xf32>
    %7 = arith.addf %4, %6 : vector<512x128xf32>
    %cst = arith.constant 0.000000e+00 : f32
    %8 = vector.broadcast %cst : f32 to vector<512x128xf32>
    %9 = arith.maximumf %7, %8 : vector<512x128xf32>
    %10 = arith.truncf %9 : vector<512x128xf32> to vector<512x128xbf16>
    %c0_5 = arith.constant 0 : index
    %c0_6 = arith.constant 0 : index
    %11 = vector.load %arg4[%c0_5, %c0_6] : memref<512x128xbf16, #tpu.memory_space<vmem>>, vector<512x128xbf16>
    tpu.vector_store %arg4[%c0_5, %c0_6], %10 {strides = array<i32>} : memref<512x128xbf16, #tpu.memory_space<vmem>>, vector<512x128xbf16>,
    return
  }
  func.func @transform_0(%arg0: i32) -> (i32, i32) {
    %c0_i32 = arith.constant 0 : i32
    %c0_i32_0 = arith.constant 0 : i32
    return %arg0, %c0_i32 : i32, i32
  }
  func.func @transform_1(%arg0: i32) -> (i32, i32) {
    %c0_i32 = arith.constant 0 : i32
    %c0_i32_0 = arith.constant 0 : i32
    %c0_i32_1 = arith.constant 0 : i32
    return %c0_i32, %c0_i32_0 : i32, i32
  }
  func.func @transform_2(%arg0: i32) -> (i32, i32) {
    %c0_i32 = arith.constant 0 : i32
    %c0_i32_0 = arith.constant 0 : i32
    %c0_i32_1 = arith.constant 0 : i32
    return %c0_i32, %c0_i32_0 : i32, i32
  }
  func.func @transform_3(%arg0: i32) -> (i32, i32) {
    %c0_i32 = arith.constant 0 : i32
    %c0_i32_0 = arith.constant 0 : i32
    return %arg0, %c0_i32 : i32, i32
  }
}

module attributes {stable_mosaic.version = 11 : i64} {
  func.func @_matmul_tanh_kernel(%arg0: i32, %arg1: memref<1024x72xbf16, #tpu.memory_space<vmem>>, %arg2: memref<72x128xbf16, #tpu.memory_space<vmem>>, %arg3: memref<1024x128xbf16, #tpu.memory_space<vmem>>) attributes {dimension_semantics = [#tpu.dimension_semantics<parallel>], iteration_bounds = array<i64: 2>, scalar_prefetch = 0 : i64, scratch_operands = 0 : i64, tpu.core_type = #tpu.core_type<tc>, window_params = [{transform_indices = @transform_0, window_bounds = array<i64: 1024, 72>}, {pipeline_mode = #tpu.pipeline_mode<synchronous>, transform_indices = @transform_1, window_bounds = array<i64: 72, 128>}, {transform_indices = @transform_2, window_bounds = array<i64: 1024, 128>}]} {
    %c0 = arith.constant 0 : index
    %c0_0 = arith.constant 0 : index
    %0 = vector.load %arg1[%c0, %c0_0] : memref<1024x72xbf16, #tpu.memory_space<vmem>>, vector<1024x72xbf16>
    %c0_1 = arith.constant 0 : index
    %c0_2 = arith.constant 0 : index
    %1 = vector.load %arg2[%c0_1, %c0_2] : memref<72x128xbf16, #tpu.memory_space<vmem>>, vector<72x128xbf16>
    %cst = arith.constant dense<0.000000e+00> : vector<1024x128xf32>
    %2 = tpu.matmul %0, %1, %cst {dimension_numbers = #tpu.dot_dimension_numbers<[1], [0], [0], [1], [0, 0, 1, 1], [], []>} : vector<1024x72xbf16>, vector<72x128xbf16>, vector<1024x128xf32> -> vector<1024x128xf32>
    %3 = math.tanh %2 : vector<1024x128xf32>
    %4 = arith.truncf %3 : vector<1024x128xf32> to vector<1024x128xbf16>
    %c0_3 = arith.constant 0 : index
    %c0_4 = arith.constant 0 : index
    %5 = vector.load %arg3[%c0_3, %c0_4] : memref<1024x128xbf16, #tpu.memory_space<vmem>>, vector<1024x128xbf16>
    tpu.vector_store %arg3[%c0_3, %c0_4], %4 {strides = array<i32>} : memref<1024x128xbf16, #tpu.memory_space<vmem>>, vector<1024x128xbf16>,
    return
  }
  func.func @transform_0(%arg0: i32) -> (i32, i32) {
    %c0_i32 = arith.constant 0 : i32
    %c0_i32_0 = arith.constant 0 : i32
    return %arg0, %c0_i32 : i32, i32
  }
  func.func @transform_1(%arg0: i32) -> (i32, i32) {
    %c0_i32 = arith.constant 0 : i32
    %c0_i32_0 = arith.constant 0 : i32
    %c0_i32_1 = arith.constant 0 : i32
    return %c0_i32, %c0_i32_0 : i32, i32
  }
  func.func @transform_2(%arg0: i32) -> (i32, i32) {
    %c0_i32 = arith.constant 0 : i32
    %c0_i32_0 = arith.constant 0 : i32
    return %arg0, %c0_i32 : i32, i32
  }
}

</mosaic_0001>

<bundles_post_ra>
// kernel: tile.48
= control target key start
LH: loop header
LB: loop body
LE: loop exit
PB: predicated region body
PF: predicated region fallthrough
CT: control target
= control target key end

     0   :  { %s28_s0 = inlined_call_operand.vmem [shape: f32[64], index: 0, kind: input, shape index: {}]   ;;  %s29_s1 = inlined_call_operand.vmem [shape: f32[16,64], index: 1, kind: output, shape index: {}]  }
   0x1   :  { %v4_v0 = vld [vmem:[%s28_s0] ss:$0 sm:$0xff] }
   0x2   :  { %5 = vst [vmem:[%s29_s1] sm:$0xff] %v4_v0  ;;  %8 = vst [vmem:[%s29_s1 + $0x8] sm:$0xff] %v4_v0 }

// kernel: tile.49
= control target key start
LH: loop header
LB: loop body
LE: loop exit
PB: predicated region body
PF: predicated region fallthrough
CT: control target
= control target key end

     0   :  { %vm3_vm0 = vcmask 523264   ;;  %vm10_vm1 = vcmask 1048064   ;;  %s116_s0 = inlined_call_operand.vmem [shape: f32[16,64], index: 0, kind: input, shape index: {}]   ;;  %s117_s1 = inlined_call_operand.vmem [shape: f32[1,1024], index: 1, kind: output, shape index: {}]  }
   0x1   :  { %v66_v0 = vld [vmem:[%s116_s0 + $0x1] ss:$2 sm:$0xff]   ;;  %v2_v1 = vld [vmem:[%s116_s0] ss:$2 sm:$0xff]   ;;  %s75_s0 = smov 64  }
   0x2   :  { %8 = vrot.lane.b32.xlu0 %v66_v0, %s75_s0  ;;  %4 = vst.msk [vmem:[#allocation0] ss:$8 sm:$0xf] %vm3_vm0, %v2_v1   ;;  %5 = vst.msk [vmem:[#allocation0] ss:$8 sm:$0xf0] %vm3_vm0, %v2_v1  }
  0x74   :  { %v9_v2 = vpop.permute.xlu0 %8  }
  0x75   :  { %11 = vst.msk [vmem:[#allocation0] ss:$8 sm:$0xf] %vm10_vm1, %v9_v2   ;;  %12 = vst.msk [vmem:[#allocation0] ss:$8 sm:$0xf0] %vm10_vm1, %v9_v2  }
  0x7c   :  { %v16_v3 = vld [vmem:[#allocation0] sm:$0x1]  ;;  %v20_v4 = vld [vmem:[#allocation0 + $0x8] sm:$0x1]  ;;  %v25_v5 = vld [vmem:[#allocation0 + $0x10] sm:$0x1] }
  0x7d   :  { %18 = vst [vmem:[%s117_s1] sm:$0x1] %v16_v3  ;;  %67 = vst [vmem:[%s117_s1 + $0x1] sm:$0x1] %v20_v4  ;;  %v31_v6 = vld [vmem:[#allocation0 + $0x18] sm:$0x1] }
  0x7e   :  { %68 = vst [vmem:[%s117_s1 + $0x2] sm:$0x1] %v25_v5  ;;  %v37_v7 = vld [vmem:[#allocation0 + $0x20] sm:$0x1]  ;;  %v43_v8 = vld [vmem:[#allocation0 + $0x28] sm:$0x1] }
  0x7f   :  { %69 = vst [vmem:[%s117_s1 + $0x3] sm:$0x1] %v31_v6  ;;  %70 = vst [vmem:[%s117_s1 + $0x4] sm:$0x1] %v37_v7  ;;  %v49_v9 = vld [vmem:[#allocation0 + $0x30] sm:$0x1] }
  0x80   :  { %71 = vst [vmem:[%s117_s1 + $0x5] sm:$0x1] %v43_v8  ;;  %v55_v10 = vld [vmem:[#allocation0 + $0x38] sm:$0x1]  ;;  %72 = vst [vmem:[%s117_s1 + $0x6] sm:$0x1] %v49_v9 }
  0x81   :  { %73 = vst [vmem:[%s117_s1 + $0x7] sm:$0x1] %v55_v10 }

// kernel: generator_forward.10
= control target key start
LH: loop header
LB: loop body
LE: loop exit
PB: predicated region body
PF: predicated region fallthrough
CT: control target
= control target key end

     0   :  { %v28_v0 = vlaneseq  ;;  %s232_s0 = inlined_call_operand.vmem [shape: bf16[8,1024], index: 0, kind: input, shape index: {}]   ;;  %s233_s1 = inlined_call_operand.vmem [shape: f32[1,1024], index: 1, kind: input, shape index: {}]   ;;  %s234_s2 = inlined_call_operand.vmem [shape: f32[1,1024], index: 2, kind: input, shape index: {}]   ;;  %s235_s3 = inlined_call_operand.vmem [shape: bf16[8,1024], index: 3, kind: output, shape index: {}]  }
   0x1   :  { %v14_v1 = vld [vmem:[%s232_s0] sm:$0xff]  ;;  %v15_v5 = vld [vmem:[%s232_s0 + $0x8] sm:$0xff]  ;;  %v16_v6 = vld [vmem:[%s232_s0 + $0x10] sm:$0xff] }
   0x2   :  { %v18_v2 = vunpack.c.l.bf16 %v14_v1  ;;  %v19_v3 = vunpack.c.h.bf16 %v14_v1  ;;  %v29_v4 = vshrl.u32 %v28_v0, 7  ;;  %v17_v7 = vld [vmem:[%s232_s0 + $0x18] sm:$0xff]  ;;  %v26_v8 = vld [vmem:[%s233_s1] sm:$0xff]  ;;  %v20_v10 = vunpack.c.l.bf16 %v15_v5 }
   0x3   :  { %v76_v9 = vld [vmem:[%s234_s2] sm:$0xff]  ;;  %v21_v11 = vunpack.c.h.bf16 %v15_v5  ;;  %v22_v12 = vunpack.c.l.bf16 %v16_v6  ;;  %v23_v13 = vunpack.c.h.bf16 %v16_v6  ;;  %v24_v20 = vunpack.c.l.bf16 %v17_v7 }
   0x4   :  { %v30_v14 = vsub.s32 0, %v29_v4  ;;  %v34_v15 = vsub.s32 1, %v29_v4  ;;  %v38_v16 = vsub.s32 2, %v29_v4  ;;  %v42_v17 = vsub.s32 3, %v29_v4 }
   0x5   :  { %v46_v18 = vsub.s32 4, %v29_v4  ;;  %v50_v19 = vsub.s32 5, %v29_v4  ;;  %v25_v21 = vunpack.c.h.bf16 %v17_v7  ;;  %v54_v44 = vsub.s32 6, %v29_v4 }
   0x6   :  { %v31_v22 = vrot.slane %v26_v8, %v30_v14  ;;  %v35_v23 = vrot.slane %v26_v8, %v34_v15  ;;  %v81_v24 = vrot.slane %v76_v9, %v30_v14  ;;  %v85_v25 = vrot.slane %v76_v9, %v34_v15 }
   0x7   :  { %v39_v26 = vrot.slane %v26_v8, %v38_v16  ;;  %v43_v27 = vrot.slane %v26_v8, %v42_v17  ;;  %v89_v28 = vrot.slane %v76_v9, %v38_v16  ;;  %v93_v29 = vrot.slane %v76_v9, %v42_v17 }
   0x8   :  { %v68_v30 = vmul.f32 %v31_v22, %v18_v2  ;;  %v69_v31 = vmul.f32 %v35_v23, %v19_v3  ;;  %v47_v32 = vrot.slane %v26_v8, %v46_v18  ;;  %v51_v33 = vrot.slane %v26_v8, %v50_v19 }
   0x9   :  { %v70_v34 = vmul.f32 %v39_v26, %v20_v10  ;;  %v71_v35 = vmul.f32 %v43_v27, %v21_v11  ;;  %v97_v36 = vrot.slane %v76_v9, %v46_v18  ;;  %v101_v37 = vrot.slane %v76_v9, %v50_v19 }
   0xa   :  { %v118_v38 = vadd.f32 %v81_v24, %v68_v30  ;;  %v119_v39 = vadd.f32 %v85_v25, %v69_v31  ;;  %v72_v40 = vmul.f32 %v47_v32, %v22_v12  ;;  %v73_v41 = vmul.f32 %v51_v33, %v23_v13 }
   0xb   :  { %v120_v42 = vadd.f32 %v89_v28, %v70_v34  ;;  %v121_v43 = vadd.f32 %v93_v29, %v71_v35  ;;  %v58_v45 = vsub.s32 7, %v29_v4  ;;  %v55_v52 = vrot.slane %v26_v8, %v54_v44 }
   0xc   :  { %v126_v46 = vmax.f32 %v118_v38, 0.0  ;;  %v127_v47 = vmax.f32 %v119_v39, 0.0  ;;  %v122_v48 = vadd.f32 %v97_v36, %v72_v40  ;;  %v123_v49 = vadd.f32 %v101_v37, %v73_v41 }
   0xd   :  { %v128_v50 = vmax.f32 %v120_v42, 0.0  ;;  %v129_v51 = vmax.f32 %v121_v43, 0.0  ;;  %v59_v53 = vrot.slane %v26_v8, %v58_v45  ;;  %v105_v57 = vrot.slane %v76_v9, %v54_v44 }
   0xe   :  { %v178_v54 = vpack.c.bf16 %v127_v47, %v126_v46  ;;  %v130_v55 = vmax.f32 %v122_v48, 0.0  ;;  %v131_v56 = vmax.f32 %v123_v49, 0.0  ;;  %v74_v59 = vmul.f32 %v55_v52, %v24_v20 }
   0xf   :  { %v179_v58 = vpack.c.bf16 %v129_v51, %v128_v50  ;;  %v75_v60 = vmul.f32 %v59_v53, %v25_v21  ;;  %v109_v61 = vrot.slane %v76_v9, %v58_v45 }
  0x10   :  { %166 = vst [vmem:[%s235_s3] sm:$0xff] %v178_v54  ;;  %v180_v62 = vpack.c.bf16 %v131_v56, %v130_v55  ;;  %v124_v63 = vadd.f32 %v105_v57, %v74_v59 }
  0x11   :  { %167 = vst [vmem:[%s235_s3 + $0x8] sm:$0xff] %v179_v58  ;;  %v125_v0 = vadd.f32 %v109_v61, %v75_v60 }
  0x12   :  { %168 = vst [vmem:[%s235_s3 + $0x10] sm:$0xff] %v180_v62  ;;  %v132_v1 = vmax.f32 %v124_v63, 0.0 }
  0x13   :  { %v133_v2 = vmax.f32 %v125_v0, 0.0 }
  0x15   :  { %v181_v3 = vpack.c.bf16 %v133_v2, %v132_v1 }
  0x17   :  { %169 = vst [vmem:[%s235_s3 + $0x18] sm:$0xff] %v181_v3 }

// kernel: generator_forward.9
= control target key start
LH: loop header
LB: loop body
LE: loop exit
PB: predicated region body
PF: predicated region fallthrough
CT: control target
= control target key end

     0   :  { %10 = vsyncpa [#allocation3], 0  ;;  %s463_s15 = smov [#allocation2]   ;;  %s567_s0 = inlined_call_operand.vmem [shape: bf16[8,16], index: 0, kind: input, shape index: {}]   ;;  %s568_s1 = inlined_call_operand.hbm [shape: bf16[16,1024], index: 1, kind: input, shape index: {}]   ;;  %s569_s2 = inlined_call_operand.vmem [shape: bf16[8,1024], index: 2, kind: output, shape index: {0}]   ;;  %s570_s3 = inlined_call_operand.vmem [shape: f32[8,1024], index: 3, kind: output, shape index: {1}]   ;;  %s571_s4 = inlined_call_operand.vmem [shape: f32[8,1024], index: 4, kind: output, shape index: {2}]  }
   0x1   :  { %s18_s16 = sshll.u32 %s463_s15, 4  ;;  %s439_s19 = scalar_lea.hbm %s568_s1, 1024  ;;  %s19_s16 = int_to_ptr.vmem [resolvable:$true] %s18_s16 }
   0x2   :  { %p440_p0 = scmp.ne.s32.totalorder %s568_s1, %s439_s19  ;;  %p443_p1 = scmp.lt.u32.totalorder %s439_s19, %s568_s1 }
   0x4   :  { %p445_p2 = pnand %p443_p1, %p440_p0 }
   0x6   :  { %448 = shalt.err (!%p445_p2)
}
   0x7   :  { %s449_s24 = scalar_lea.vmem %s19_s16, 1024  ;;  %p454_p4 = scmp.lt.s32.totalorder %s19_s16, %s19_s16 }
   0x8   :  { %p450_p3 = scmp.ne.s32.totalorder %s19_s16, %s449_s24  ;;  %p455_p5 = scmp.lt.s32.totalorder %s449_s24, %s449_s24 }
   0xa   :  { %p456_p6 = por %p455_p5, %p454_p4 }
   0xc   :  { %p457_p7 = pnand %p456_p6, %p450_p3 }
   0xe   :  { %460 = shalt.err (!%p457_p7)
}
   0xf   :  { %s464_s25 = smov 512   ;;  %s465_s26 = smov 32  }
  0x10   :  { %24 = dma.hbm_to_vmem [thread:$0]  %s568_s1, 1024, %s19_s16, [#allocation3], %s464_s25, %s464_s25, %s465_s26  }
  0x11   :  { %461 = dma.done.wait [#allocation3], 1024  }
  0x12   :  { %462 = vsyncadd [#allocation3], 4294966272  ;;  %v466_v0 = vmov 0   ;;  %v30_v1 = vld [vmem:[#allocation2] sm:$0xff]  ;;  %v31_v3 = vld [vmem:[#allocation2 + $0x8] sm:$0xff]  ;;  %vm78_vm0 = vcmask 130048  }
  0x13   :  { %114 = vmatprep.mubr.bf16.mxu0 %v466_v0  ;;  %155 = vmatprep.mubr.bf16.mxu1 %v466_v0  ;;  %v34_v2 = vld [vmem:[#allocation2 + $0x20] sm:$0xff]  ;;  %v35_v5 = vld [vmem:[#allocation2 + $0x28] sm:$0xff]  ;;  %v32_v7 = vld [vmem:[#allocation2 + $0x10] sm:$0xff] }
  0x14   :  { %v416_v4 = vcombine.high %v30_v1, %v34_v2  ;;  %v415_v6 = vcombine.low %v30_v1, %v34_v2  ;;  %v418_v8 = vcombine.high %v31_v3, %v35_v5  ;;  %v417_v9 = vcombine.low %v31_v3, %v35_v5  ;;  %v36_v10 = vld [vmem:[#allocation2 + $0x30] sm:$0xff]  ;;  %v33_v11 = vld [vmem:[#allocation2 + $0x18] sm:$0xff]  ;;  %v29_v15 = vld [vmem:[%s567_s0] sm:$0xf] }
  0x15   :  { %v37_v12 = vld [vmem:[#allocation2 + $0x38] sm:$0xff]  ;;  %v420_v13 = vcombine.high %v32_v7, %v36_v10  ;;  %v419_v16 = vcombine.low %v32_v7, %v36_v10 }
  0x16   :  { %82 = vmatprep.subr.bf16.mxu0 %v416_v4  ;;  %v422_v14 = vcombine.high %v33_v11, %v37_v12  ;;  %123 = vmatprep.subr.bf16.mxu1 %v418_v8  ;;  %v421_v17 = vcombine.low %v33_v11, %v37_v12 }
  0x17   :  { %83 = vmatpush1.bf16.msra.mxu0 %v415_v6  ;;  %124 = vmatpush1.bf16.msra.mxu1 %v417_v9 }
  0x18   :  { %164 = vmatprep.subr.bf16.mxu0 %v420_v13  ;;  %205 = vmatprep.subr.bf16.mxu1 %v422_v14 }
  0x1a   :  { %423 = vmatmul.mubr.msk.bf16.vlgmr.msra.gmra.mrb[0].mxu0 %vm78_vm0, %v29_v15  ;;  %424 = vmatmul.mubr.msk.bf16.vlgmr.msra.gmra.mrb[0].mxu1 %vm78_vm0, %v29_v15 }
  0x1b   :  { %165 = vmatpush1.bf16.msra.mxu0 %v419_v16  ;;  %206 = vmatpush1.bf16.msra.mxu1 %v421_v17 }
  0x1c   :  { %196 = vmatprep.mubr.bf16.mxu0 %v466_v0  ;;  %237 = vmatprep.mubr.bf16.mxu1 %v466_v0 }
  0x22   :  { %425 = vmatmul.mubr.msk.bf16.vlgmr.msra.gmra.mrb[4].mxu0 %vm78_vm0, %v29_v15  ;;  %426 = vmatmul.mubr.msk.bf16.vlgmr.msra.gmra.mrb[4].mxu1 %vm78_vm0, %v29_v15 }
  0xed   :  { %v116_v18 = vpop.f32.mrb[0].mxu0  ;;  %v157_v21 = vpop.f32.mrb[0].mxu1 }
  0xee   :  { %v282_v19 = vrot.slane %v116_v18, 4  ;;  %v330_v20 = vmul.f32 %v116_v18, %v116_v18  ;;  %v118_v22 = vpop.f32.mrb[1].mxu0  ;;  %v294_v23 = vrot.slane %v157_v21, 4  ;;  %v332_v24 = vmul.f32 %v157_v21, %v157_v21  ;;  %v159_v27 = vpop.f32.mrb[1].mxu1 }
  0xef   :  { %v431_v25 = vpack.c.bf16 %v118_v22, %v116_v18  ;;  %v288_v26 = vrot.slane %v118_v22, 4  ;;  %v120_v28 = vpop.f32.mrb[2].mxu0  ;;  %v331_v31 = vmul.f32 %v118_v22, %v118_v22  ;;  %v432_v32 = vpack.c.bf16 %v159_v27, %v157_v21  ;;  %v161_v33 = vpop.f32.mrb[2].mxu1 }
  0xf0   :  { %v283_v29 = vadd.f32 %v282_v19, %v116_v18  ;;  %v338_v30 = vrot.slane %v330_v20, 4  ;;  %v121_v34 = vpop.f32.mrb[3].mxu0  ;;  %v295_v35 = vadd.f32 %v294_v23, %v157_v21  ;;  %v350_v36 = vrot.slane %v332_v24, 4  ;;  %v162_v39 = vpop.f32.mrb[3].mxu1 }
  0xf1   :  { %278 = vst [vmem:[%s569_s2] sm:$0xff] %v431_v25  ;;  %v289_v37 = vadd.f32 %v288_v26, %v118_v22  ;;  %v300_v38 = vrot.slane %v159_v27, 4  ;;  %v344_v42 = vrot.slane %v331_v31, 4  ;;  %279 = vst [vmem:[%s569_s2 + $0x8] sm:$0xff] %v432_v32  ;;  %v333_v43 = vmul.f32 %v159_v27, %v159_v27 }
  0xf2   :  { %v284_v40 = vrot.slane %v283_v29, 2  ;;  %v339_v41 = vadd.f32 %v338_v30, %v330_v20  ;;  %v296_v44 = vrot.slane %v295_v35, 2  ;;  %v351_v45 = vadd.f32 %v350_v36, %v332_v24 }
  0xf3   :  { %v290_v46 = vrot.slane %v289_v37, 2  ;;  %v301_v47 = vadd.f32 %v300_v38, %v159_v27  ;;  %v345_v50 = vadd.f32 %v344_v42, %v331_v31  ;;  %v356_v51 = vrot.slane %v333_v43, 4 }
  0xf4   :  { %v285_v48 = vadd.f32 %v284_v40, %v283_v29  ;;  %v340_v49 = vrot.slane %v339_v41, 2  ;;  %v297_v52 = vadd.f32 %v296_v44, %v295_v35  ;;  %v352_v53 = vrot.slane %v351_v45, 2 }
  0xf5   :  { %v291_v54 = vadd.f32 %v290_v46, %v289_v37  ;;  %v302_v55 = vrot.slane %v301_v47, 2  ;;  %v198_v56 = vpop.f32.mrb[4].mxu0  ;;  %v346_v59 = vrot.slane %v345_v50, 2  ;;  %v357_v60 = vadd.f32 %v356_v51, %v333_v43  ;;  %v239_v61 = vpop.f32.mrb[4].mxu1 }
  0xf6   :  { %v286_v57 = vrot.slane %v285_v48, 1  ;;  %v341_v58 = vadd.f32 %v340_v49, %v339_v41  ;;  %v200_v62 = vpop.f32.mrb[5].mxu0  ;;  %v298_v63 = vrot.slane %v297_v52, 1  ;;  %v353_v0 = vadd.f32 %v352_v53, %v351_v45  ;;  %v241_v3 = vpop.f32.mrb[5].mxu1 }
  0xf7   :  { %v292_v1 = vrot.slane %v291_v54, 1  ;;  %v303_v2 = vadd.f32 %v302_v55, %v301_v47  ;;  %v202_v4 = vpop.f32.mrb[6].mxu0  ;;  %v347_v7 = vadd.f32 %v346_v59, %v345_v50  ;;  %v358_v8 = vrot.slane %v357_v60, 2  ;;  %v243_v9 = vpop.f32.mrb[6].mxu1 }
  0xf8   :  { %v287_v5 = vadd.f32 %v286_v57, %v285_v48  ;;  %v342_v6 = vrot.slane %v341_v58, 1  ;;  %v203_v10 = vpop.f32.mrb[7].mxu0  ;;  %v299_v11 = vadd.f32 %v298_v63, %v297_v52  ;;  %v354_v12 = vrot.slane %v353_v0, 1  ;;  %v244_v15 = vpop.f32.mrb[7].mxu1 }
  0xf9   :  { %v293_v13 = vadd.f32 %v292_v1, %v291_v54  ;;  %v304_v14 = vrot.slane %v303_v2, 1  ;;  %v348_v17 = vrot.slane %v347_v7, 1  ;;  %v359_v18 = vadd.f32 %v358_v8, %v357_v60 }
  0xfa   :  { %v343_v16 = vadd.f32 %v342_v6, %v341_v58  ;;  %386 = vst [vmem:[%s570_s3] sm:$0xff] %v287_v5  ;;  %v306_v19 = vrot.slane %v198_v56, 4  ;;  %v355_v20 = vadd.f32 %v354_v12, %v353_v0  ;;  %388 = vst [vmem:[%s570_s3 + $0x10] sm:$0xff] %v299_v11  ;;  %v334_v22 = vmul.f32 %v198_v56, %v198_v56 }
  0xfb   :  { %387 = vst [vmem:[%s570_s3 + $0x8] sm:$0xff] %v293_v13  ;;  %v305_v21 = vadd.f32 %v304_v14, %v303_v2  ;;  %v318_v23 = vrot.slane %v239_v61, 4  ;;  %v349_v24 = vadd.f32 %v348_v17, %v347_v7  ;;  %v360_v25 = vrot.slane %v359_v18, 1 }
  0xfc   :  { %394 = vst [vmem:[%s571_s4] sm:$0xff] %v343_v16  ;;  %v307_v26 = vadd.f32 %v306_v19, %v198_v56  ;;  %v336_v27 = vmul.f32 %v239_v61, %v239_v61  ;;  %396 = vst [vmem:[%s571_s4 + $0x10] sm:$0xff] %v355_v20  ;;  %v362_v28 = vrot.slane %v334_v22, 4  ;;  %v433_v30 = vpack.c.bf16 %v200_v62, %v198_v56 }
  0xfd   :  { %389 = vst [vmem:[%s570_s3 + $0x18] sm:$0xff] %v305_v21  ;;  %v319_v29 = vadd.f32 %v318_v23, %v239_v61  ;;  %v312_v31 = vrot.slane %v200_v62, 4  ;;  %395 = vst [vmem:[%s571_s4 + $0x8] sm:$0xff] %v349_v24  ;;  %v361_v32 = vadd.f32 %v360_v25, %v359_v18  ;;  %v335_v35 = vmul.f32 %v200_v62, %v200_v62 }
  0xfe   :  { %v308_v33 = vrot.slane %v307_v26, 2  ;;  %v374_v34 = vrot.slane %v336_v27, 4  ;;  %v363_v36 = vadd.f32 %v362_v28, %v334_v22  ;;  %280 = vst [vmem:[%s569_s2 + $0x10] sm:$0xff] %v433_v30  ;;  %v434_v39 = vpack.c.bf16 %v241_v3, %v239_v61 }
  0xff   :  { %v320_v37 = vrot.slane %v319_v29, 2  ;;  %v313_v38 = vadd.f32 %v312_v31, %v200_v62  ;;  %397 = vst [vmem:[%s571_s4 + $0x18] sm:$0xff] %v361_v32  ;;  %v368_v42 = vrot.slane %v335_v35, 4  ;;  %v324_v43 = vrot.slane %v241_v3, 4 }
 0x100   :  { %v309_v40 = vadd.f32 %v308_v33, %v307_v26  ;;  %v375_v41 = vadd.f32 %v374_v34, %v336_v27  ;;  %v364_v44 = vrot.slane %v363_v36, 2  ;;  %281 = vst [vmem:[%s569_s2 + $0x18] sm:$0xff] %v434_v39  ;;  %v337_v47 = vmul.f32 %v241_v3, %v241_v3 }
 0x101   :  { %v321_v45 = vadd.f32 %v320_v37, %v319_v29  ;;  %v314_v46 = vrot.slane %v313_v38, 2  ;;  %v369_v50 = vadd.f32 %v368_v42, %v335_v35  ;;  %v325_v51 = vadd.f32 %v324_v43, %v241_v3 }
 0x102   :  { %v310_v48 = vrot.slane %v309_v40, 1  ;;  %v376_v49 = vrot.slane %v375_v41, 2  ;;  %v365_v52 = vadd.f32 %v364_v44, %v363_v36  ;;  %v380_v55 = vrot.slane %v337_v47, 4 }
 0x103   :  { %v322_v53 = vrot.slane %v321_v45, 1  ;;  %v315_v54 = vadd.f32 %v314_v46, %v313_v38  ;;  %v370_v58 = vrot.slane %v369_v50, 2  ;;  %v326_v59 = vrot.slane %v325_v51, 2 }
 0x104   :  { %v311_v56 = vadd.f32 %v310_v48, %v309_v40  ;;  %v377_v57 = vadd.f32 %v376_v49, %v375_v41  ;;  %v366_v60 = vrot.slane %v365_v52, 1  ;;  %v381_v63 = vadd.f32 %v380_v55, %v337_v47 }
 0x105   :  { %v323_v61 = vadd.f32 %v322_v53, %v321_v45  ;;  %v316_v62 = vrot.slane %v315_v54, 1  ;;  %v371_v1 = vadd.f32 %v370_v58, %v369_v50  ;;  %v327_v2 = vadd.f32 %v326_v59, %v325_v51 }
 0x106   :  { %390 = vst [vmem:[%s570_s3 + $0x20] sm:$0xff] %v311_v56  ;;  %v378_v0 = vrot.slane %v377_v57, 1  ;;  %v367_v3 = vadd.f32 %v366_v60, %v365_v52  ;;  %v382_v5 = vrot.slane %v381_v63, 2 }
 0x107   :  { %392 = vst [vmem:[%s570_s3 + $0x30] sm:$0xff] %v323_v61  ;;  %v317_v4 = vadd.f32 %v316_v62, %v315_v54  ;;  %v372_v7 = vrot.slane %v371_v1, 1  ;;  %v328_v8 = vrot.slane %v327_v2, 1 }
 0x108   :  { %v379_v6 = vadd.f32 %v378_v0, %v377_v57  ;;  %398 = vst [vmem:[%s571_s4 + $0x20] sm:$0xff] %v367_v3  ;;  %v383_v9 = vadd.f32 %v382_v5, %v381_v63 }
 0x109   :  { %391 = vst [vmem:[%s570_s3 + $0x28] sm:$0xff] %v317_v4  ;;  %v373_v10 = vadd.f32 %v372_v7, %v371_v1  ;;  %v329_v11 = vadd.f32 %v328_v8, %v327_v2 }
 0x10a   :  { %400 = vst [vmem:[%s571_s4 + $0x30] sm:$0xff] %v379_v6  ;;  %v384_v12 = vrot.slane %v383_v9, 1 }
 0x10b   :  { %399 = vst [vmem:[%s571_s4 + $0x28] sm:$0xff] %v373_v10  ;;  %393 = vst [vmem:[%s570_s3 + $0x38] sm:$0xff] %v329_v11 }
 0x10c   :  { %v385_v13 = vadd.f32 %v384_v12, %v383_v9 }
 0x10e   :  { %401 = vst [vmem:[%s571_s4 + $0x38] sm:$0xff] %v385_v13 }
 0x10f   :  { %414 = vsyncpa [#allocation3], 1 }

// kernel: tile.58
= control target key start
LH: loop header
LB: loop body
LE: loop exit
PB: predicated region body
PF: predicated region fallthrough
CT: control target
= control target key end

     0   :  { %s22_s0 = inlined_call_operand.vmem [shape: f32[32], index: 0, kind: input, shape index: {}]   ;;  %s23_s1 = inlined_call_operand.vmem [shape: f32[4,32], index: 1, kind: output, shape index: {}]  }
   0x1   :  { %v4_v0 = vld [vmem:[%s22_s0] ss:$0 sm:$0xff] }
   0x2   :  { %5 = vst [vmem:[%s23_s1] sm:$0xf] %v4_v0 }

// kernel: tile.59
= control target key start
LH: loop header
LB: loop body
LE: loop exit
PB: predicated region body
PF: predicated region fallthrough
CT: control target
= control target key end

     0   :  { %vm7_vm0 = vcmask 261120   ;;  %s37_s8 = smov 32   ;;  %s38_s9 = smov 64   ;;  %vm13_vm1 = vcmask 1048320   ;;  %vm19_vm2 = vcmask 785920   ;;  %vm25_vm3 = vcmask 523520   ;;  %s55_s0 = inlined_call_operand.vmem [shape: f32[4,32], index: 0, kind: input, shape index: {}]   ;;  %s56_s1 = inlined_call_operand.vmem [shape: f32[1,128], index: 1, kind: output, shape index: {}]  }
   0x1   :  { %v4_v0 = vld [vmem:[%s55_s0] sm:$0xf]  ;;  %s36_s0 = smov 96  }
   0x2   :  { %5 = vst [vmem:[#allocation1] sm:$0xf] %v4_v0 }
   0x9   :  { %v10_v1 = vld [vmem:[#allocation1 + $0x3] sm:$0x1]   ;;  %v22_v2 = vld [vmem:[#allocation1 + $0x1] sm:$0x1]   ;;  %v6_v3 = vld [vmem:[#allocation1] sm:$0x1]  }
   0xa   :  { %11 = vrot.lane.b32.xlu0 %v10_v1, %s36_s0  ;;  %23 = vrot.lane.b32.xlu1 %v22_v2, %s37_s8  ;;  %v16_v4 = vld [vmem:[#allocation1 + $0x2] sm:$0x1]   ;;  %8 = vst.msk [vmem:[#allocation0] sm:$0x1] %vm7_vm0, %v6_v3  }
   0xe   :  { %17 = vrot.lane.b32.xlu0 %v16_v4, %s38_s9 }
  0x7c   :  { %v12_v5 = vpop.permute.xlu0 %11   ;;  %v24_v6 = vpop.permute.xlu1 %23  }
  0x7d   :  { %14 = vst.msk [vmem:[#allocation0] sm:$0x1] %vm13_vm1, %v12_v5  }
  0x80   :  { %v18_v7 = vpop.permute.xlu0 %17  }
  0x81   :  { %20 = vst.msk [vmem:[#allocation0] sm:$0x1] %vm19_vm2, %v18_v7  }
  0x82   :  { %26 = vst.msk [vmem:[#allocation0] sm:$0x1] %vm25_vm3, %v24_v6  }
  0x89   :  { %v30_v8 = vld [vmem:[#allocation0] sm:$0x1] }
  0x8a   :  { %32 = vst [vmem:[%s56_s1] sm:$0x1] %v30_v8 }

// kernel: generator_forward.11
= control target key start
LH: loop header
LB: loop body
LE: loop exit
PB: predicated region body
PF: predicated region fallthrough
CT: control target
= control target key end

     0   :  { %10 = vsyncpa [#allocation3], 0  ;;  %s808_s15 = smov [#allocation2]   ;;  %s890_s0 = inlined_call_operand.vmem [shape: bf16[32,576], index: 0, kind: input, shape index: {}]   ;;  %s891_s1 = inlined_call_operand.hbm [shape: bf16[576,128], index: 1, kind: input, shape index: {}]   ;;  %s892_s2 = inlined_call_operand.vmem [shape: bf16[32,128], index: 2, kind: output, shape index: {0}]   ;;  %s893_s3 = inlined_call_operand.vmem [shape: f32[8,128], index: 3, kind: output, shape index: {1}]   ;;  %s894_s4 = inlined_call_operand.vmem [shape: f32[8,128], index: 4, kind: output, shape index: {2}]  }
   0x1   :  { %s18_s16 = sshll.u32 %s808_s15, 4  ;;  %s784_s19 = scalar_lea.hbm %s891_s1, 4608  ;;  %s19_s16 = int_to_ptr.vmem [resolvable:$true] %s18_s16 }
   0x2   :  { %p785_p0 = scmp.ne.s32.totalorder %s891_s1, %s784_s19  ;;  %p788_p1 = scmp.lt.u32.totalorder %s784_s19, %s891_s1 }
   0x4   :  { %p790_p2 = pnand %p788_p1, %p785_p0 }
   0x6   :  { %793 = shalt.err (!%p790_p2)
}
   0x7   :  { %s794_s24 = scalar_lea.vmem %s19_s16, 4608  ;;  %p799_p4 = scmp.lt.s32.totalorder %s19_s16, %s19_s16 }
   0x8   :  { %p795_p3 = scmp.ne.s32.totalorder %s19_s16, %s794_s24  ;;  %p800_p5 = scmp.lt.s32.totalorder %s794_s24, %s794_s24 }
   0xa   :  { %p801_p6 = por %p800_p5, %p799_p4 }
   0xc   :  { %p802_p7 = pnand %p801_p6, %p795_p3 }
   0xe   :  { %805 = shalt.err (!%p802_p7)
}
   0xf   :  { %s809_s25 = smov 64   ;;  %s810_s26 = smov 4  }
  0x10   :  { %24 = dma.hbm_to_vmem [thread:$0]  %s891_s1, 4608, %s19_s16, [#allocation3], %s809_s25, %s809_s25, %s810_s26  }
  0x11   :  { %806 = dma.done.wait [#allocation3], 4608  }
  0x12   :  { %807 = vsyncadd [#allocation3], 4294962688  ;;  %v734_v0 = vld [vmem:[#allocation2 + $0x40] sm:$0xff]   ;;  %v738_v4 = vld [vmem:[#allocation2 + $0x48] sm:$0xff]   ;;  %vm379_vm0 = vcmask 523264  }
  0x13   :  { %v735_v1 = vld [vmem:[#allocation2 + $0xc0] sm:$0xff]   ;;  %657 = vmatprep.subr.bf16.mxu0 %v734_v0  ;;  %v739_v5 = vld [vmem:[#allocation2 + $0xc8] sm:$0xff]   ;;  %v742_v8 = vld [vmem:[#allocation2 + $0x50] sm:$0xff]  }
  0x14   :  { %v736_v2 = vld [vmem:[#allocation2] sm:$0xff]   ;;  %685 = vmatprep.subr.bf16.mxu1 %v735_v1  ;;  %v740_v6 = vld [vmem:[#allocation2 + $0x8] sm:$0xff]   ;;  %v743_v9 = vld [vmem:[#allocation2 + $0xd0] sm:$0xff]  }
  0x15   :  { %v737_v3 = vld [vmem:[#allocation2 + $0x80] sm:$0xff]   ;;  %658 = vmatpush3.bf16.msra.mxu0 %v736_v2  ;;  %v741_v7 = vld [vmem:[#allocation2 + $0x88] sm:$0xff]   ;;  %v744_v10 = vld [vmem:[#allocation2 + $0x10] sm:$0xff]  }
  0x16   :  { %686 = vmatpush3.bf16.msra.mxu1 %v737_v3  ;;  %659 = vmatprep.subr.bf16.mxu0 %v738_v4  ;;  %v745_v11 = vld [vmem:[#allocation2 + $0x90] sm:$0xff]   ;;  %v746_v12 = vld [vmem:[#allocation2 + $0x58] sm:$0xff]   ;;  %v750_v16 = vld [vmem:[#allocation2 + $0x60] sm:$0xff]  }
  0x17   :  { %687 = vmatprep.subr.bf16.mxu1 %v739_v5  ;;  %v747_v13 = vld [vmem:[#allocation2 + $0xd8] sm:$0xff]   ;;  %v751_v17 = vld [vmem:[#allocation2 + $0xe0] sm:$0xff]   ;;  %v754_v20 = vld [vmem:[#allocation2 + $0x68] sm:$0xff]  }
  0x18   :  { %v748_v14 = vld [vmem:[#allocation2 + $0x18] sm:$0xff]   ;;  %v752_v18 = vld [vmem:[#allocation2 + $0x20] sm:$0xff]   ;;  %v755_v21 = vld [vmem:[#allocation2 + $0xe8] sm:$0xff]  }
  0x19   :  { %660 = vmatpush3.bf16.msra.mxu0 %v740_v6  ;;  %v749_v15 = vld [vmem:[#allocation2 + $0x98] sm:$0xff]   ;;  %v753_v19 = vld [vmem:[#allocation2 + $0xa0] sm:$0xff]   ;;  %v756_v22 = vld [vmem:[#allocation2 + $0x28] sm:$0xff]  }
  0x1a   :  { %688 = vmatpush3.bf16.msra.mxu1 %v741_v7  ;;  %661 = vmatprep.subr.bf16.mxu0 %v742_v8  ;;  %v757_v23 = vld [vmem:[#allocation2 + $0xa8] sm:$0xff]   ;;  %v758_v24 = vld [vmem:[#allocation2 + $0x70] sm:$0xff]   ;;  %v762_v28 = vld [vmem:[#allocation2 + $0x78] sm:$0xff]  }
  0x1b   :  { %689 = vmatprep.subr.bf16.mxu1 %v743_v9  ;;  %v759_v25 = vld [vmem:[#allocation2 + $0xf0] sm:$0xff]   ;;  %v763_v29 = vld [vmem:[#allocation2 + $0xf8] sm:$0xff]   ;;  %v771_v35 = vld [vmem:[%s890_s0 + $0xc] ss:$20 sps:$4 sm:$0xff]  }
  0x1c   :  { %v760_v26 = vld [vmem:[#allocation2 + $0x30] sm:$0xff]   ;;  %v764_v30 = vld [vmem:[#allocation2 + $0x38] sm:$0xff]   ;;  %v772_v36 = vld [vmem:[#allocation2 + $0x100] sm:$0xff]   ;;  %467 = vmatprep.mubr.bf16.mxu1 %v771_v35 }
  0x1d   :  { %662 = vmatpush3.bf16.msra.mxu0 %v744_v10  ;;  %v761_v27 = vld [vmem:[#allocation2 + $0xb0] sm:$0xff]   ;;  %v765_v31 = vld [vmem:[#allocation2 + $0xb8] sm:$0xff]   ;;  %v773_v37 = vld [vmem:[#allocation2 + $0x108] sm:$0xff]  }
  0x1e   :  { %690 = vmatpush3.bf16.msra.mxu1 %v745_v11  ;;  %663 = vmatprep.subr.bf16.mxu0 %v746_v12  ;;  %v766_v32 = vld [vmem:[%s890_s0] ss:$20 sps:$4 sm:$0xff]   ;;  %v768_v33 = vld [vmem:[%s890_s0 + $0x4] ss:$20 sps:$4 sm:$0xff]   ;;  %v769_v34 = vld [vmem:[%s890_s0 + $0x8] ss:$20 sps:$4 sm:$0xff]  }
  0x1f   :  { %691 = vmatprep.subr.bf16.mxu1 %v747_v13  ;;  %418 = vmatprep.mubr.bf16.mxu0 %v768_v33  ;;  %v774_v38 = vld [vmem:[%s890_s0 + $0x2c] ss:$20 sps:$4 sm:$0xff]   ;;  %v776_v39 = vld [vmem:[%s890_s0 + $0x34] ss:$20 sps:$4 sm:$0xff]   ;;  %v779_v42 = vld [vmem:[%s890_s0 + $0x30] ss:$20 sps:$4 sm:$0xff]  }
  0x20   :  { %v778_v40 = vld [vmem:[%s890_s0 + $0x28] ss:$20 sps:$4 sm:$0xff]   ;;  %v780_v41 = vld [vmem:[#allocation2 + $0x110] sm:$0xff]   ;;  %v783_v45 = vld [vmem:[%s890_s0 + $0x38] ss:$20 sps:$4 sm:$0xff]  }
  0x21   :  { %664 = vmatpush3.bf16.msra.mxu0 %v748_v14  ;;  %v782_v43 = vld [vmem:[%s890_s0 + $0x10] ss:$20 sps:$4 sm:$0xff]   ;;  %v781_v44 = vld [vmem:[#allocation2 + $0x118] sm:$0xff]  }
  0x22   :  { %692 = vmatpush3.bf16.msra.mxu1 %v749_v15  ;;  %665 = vmatprep.subr.bf16.mxu0 %v750_v16 }
  0x23   :  { %693 = vmatprep.subr.bf16.mxu1 %v751_v17 }
  0x25   :  { %666 = vmatpush3.bf16.msra.mxu0 %v752_v18 }
  0x26   :  { %694 = vmatpush3.bf16.msra.mxu1 %v753_v19  ;;  %667 = vmatprep.subr.bf16.mxu0 %v754_v20 }
  0x27   :  { %695 = vmatprep.subr.bf16.mxu1 %v755_v21 }
  0x29   :  { %668 = vmatpush3.bf16.msra.mxu0 %v756_v22 }
  0x2a   :  { %696 = vmatpush3.bf16.msra.mxu1 %v757_v23  ;;  %669 = vmatprep.subr.bf16.mxu0 %v758_v24 }
  0x2b   :  { %697 = vmatprep.subr.bf16.mxu1 %v759_v25 }
  0x2d   :  { %670 = vmatpush3.bf16.msra.mxu0 %v760_v26 }
  0x2e   :  { %698 = vmatpush3.bf16.msra.mxu1 %v761_v27  ;;  %671 = vmatprep.subr.bf16.mxu0 %v762_v28 }
  0x2f   :  { %699 = vmatprep.subr.bf16.mxu1 %v763_v29 }
  0x31   :  { %672 = vmatpush3.bf16.msra.mxu0 %v764_v30 }
  0x32   :  { %700 = vmatpush3.bf16.msra.mxu1 %v765_v31  ;;  %719 = vmatprep.subr.bf16.mxu0 %v772_v36 }
  0x34   :  { %419 = vmatmul.mubr.bf16.vlgmr.msra.gmra.mrb[0].mxu0 %v766_v32 }
  0x35   :  { %468 = vmatmul.mubr.bf16.vlgmr.msra.gmra.mrb[0].mxu1 %v769_v34  ;;  %720 = vmatpush3.bf16.msra.mxu0 %v772_v36 }
  0x36   :  { %721 = vmatprep.subr.bf16.mxu0 %v773_v37  ;;  %426 = vmatprep.mubr.bf16.mxu0 %v774_v38 }
  0x37   :  { %475 = vmatprep.mubr.bf16.mxu1 %v776_v39 }
  0x39   :  { %722 = vmatpush3.bf16.msra.mxu0 %v773_v37 }
  0x3a   :  { %723 = vmatprep.subr.bf16.mxu0 %v780_v41 }
  0x3c   :  { %427 = vmatmul.mubr.bf16.gmra.mrb[4].mxu0 %v778_v40 }
  0x3d   :  { %476 = vmatmul.mubr.bf16.gmra.mrb[4].mxu1 %v779_v42  ;;  %727 = vmatprep.mubr.msk.bf16.mxu0 %vm379_vm0, %v782_v43 }
  0x3e   :  { %724 = vmatpush3.bf16.msra.mxu0 %v780_v41 }
  0x3f   :  { %725 = vmatprep.subr.bf16.mxu0 %v781_v44 }
  0x42   :  { %726 = vmatpush3.bf16.msra.mxu0 %v781_v44 }
  0x45   :  { %728 = vmatmul.mubr.msk.bf16.vlgmr.msra.gmra.mrb[8].mxu0 %vm379_vm0, %v783_v45 }
 0x107   :  { %v673_v46 = vpop.f32.mrb[0].mxu0 }
 0x108   :  { %v701_v47 = vpop.f32.mrb[0].mxu1  ;;  %v674_v48 = vpop.f32.mrb[1].mxu0 }
 0x109   :  { %v675_v49 = vadd.f32 %v674_v48, %v673_v46  ;;  %v702_v50 = vpop.f32.mrb[1].mxu1  ;;  %v676_v51 = vpop.f32.mrb[2].mxu0 }
 0x10a   :  { %v703_v52 = vadd.f32 %v702_v50, %v701_v47  ;;  %v704_v53 = vpop.f32.mrb[2].mxu1  ;;  %v677_v54 = vpop.f32.mrb[3].mxu0 }
 0x10b   :  { %v678_v55 = vadd.f32 %v677_v54, %v676_v51  ;;  %v705_v56 = vpop.f32.mrb[3].mxu1 }
 0x10c   :  { %v706_v57 = vadd.f32 %v705_v56, %v704_v53  ;;  %v470_v58 = vadd.f32 %v703_v52, %v675_v49 }
 0x10e   :  { %v473_v59 = vadd.f32 %v706_v57, %v678_v55 }
 0x10f   :  { %v679_v60 = vpop.f32.mrb[4].mxu0 }
 0x110   :  { %v707_v61 = vpop.f32.mrb[4].mxu1  ;;  %v680_v62 = vpop.f32.mrb[5].mxu0 }
 0x111   :  { %v681_v63 = vadd.f32 %v680_v62, %v679_v60  ;;  %v708_v0 = vpop.f32.mrb[5].mxu1  ;;  %v682_v1 = vpop.f32.mrb[6].mxu0 }
 0x112   :  { %v709_v2 = vadd.f32 %v708_v0, %v707_v61  ;;  %v710_v3 = vpop.f32.mrb[6].mxu1  ;;  %v683_v4 = vpop.f32.mrb[7].mxu0 }
 0x113   :  { %v684_v5 = vadd.f32 %v683_v4, %v682_v1  ;;  %v711_v6 = vpop.f32.mrb[7].mxu1 }
 0x114   :  { %v712_v7 = vadd.f32 %v711_v6, %v710_v3  ;;  %v478_v8 = vadd.f32 %v709_v2, %v681_v63 }
 0x116   :  { %v481_v9 = vadd.f32 %v712_v7, %v684_v5 }
 0x118   :  { %v729_v10 = vpop.f32.mrb[8].mxu0 }
 0x119   :  { %v527_v11 = vadd.f32 %v729_v10, %v478_v8  ;;  %v518_v12 = vpop.f32.mrb[9].mxu0 }
 0x11a   :  { %v519_v13 = vadd.f32 %v518_v12, %v470_v58  ;;  %v730_v14 = vpop.f32.mrb[10].mxu0 }
 0x11b   :  { %v530_v15 = vadd.f32 %v730_v14, %v481_v9  ;;  %v521_v16 = vpop.f32.mrb[11].mxu0  ;;  %v564_v23 = vmul.f32 %v527_v11, %v527_v11 }
 0x11c   :  { %v522_v17 = vadd.f32 %v521_v16, %v473_v59  ;;  %v562_v19 = vmul.f32 %v519_v13, %v519_v13 }
 0x11d   :  { %v654_v18 = vpack.c.bf16 %v530_v15, %v527_v11  ;;  %v565_v26 = vmul.f32 %v530_v15, %v530_v15 }
 0x11e   :  { %v649_v20 = vpack.c.bf16 %v522_v17, %v519_v13  ;;  %v553_v21 = vadd.f32 %v522_v17, %v519_v13  ;;  %v563_v22 = vmul.f32 %v522_v17, %v522_v17 }
 0x11f   :  { %656 = vst [vmem:[%s892_s2 + $0x8] sm:$0xff] %v654_v18  }
 0x120   :  { %650 = vst [vmem:[%s892_s2] sm:$0xff] %v649_v20   ;;  %v554_v24 = vadd.f32 %v553_v21, %v527_v11  ;;  %v566_v25 = vadd.f32 %v563_v22, %v562_v19 }
 0x122   :  { %v555_v27 = vadd.f32 %v554_v24, %v530_v15  ;;  %v567_v28 = vadd.f32 %v566_v25, %v564_v23 }
 0x124   :  { %v556_v29 = vrot.slane %v555_v27, 4  ;;  %v568_v30 = vadd.f32 %v567_v28, %v565_v26 }
 0x126   :  { %v557_v31 = vadd.f32 %v556_v29, %v555_v27  ;;  %v569_v32 = vrot.slane %v568_v30, 4 }
 0x128   :  { %v558_v33 = vrot.slane %v557_v31, 2  ;;  %v570_v34 = vadd.f32 %v569_v32, %v568_v30 }
 0x12a   :  { %v559_v35 = vadd.f32 %v558_v33, %v557_v31  ;;  %v571_v36 = vrot.slane %v570_v34, 2 }
 0x12c   :  { %v560_v37 = vrot.slane %v559_v35, 1  ;;  %v572_v38 = vadd.f32 %v571_v36, %v570_v34 }
 0x12e   :  { %v561_v39 = vadd.f32 %v560_v37, %v559_v35  ;;  %v573_v40 = vrot.slane %v572_v38, 1 }
 0x130   :  { %v574_v41 = vadd.f32 %v573_v40, %v572_v38  ;;  %575 = vst [vmem:[%s893_s3] sm:$0xff] %v561_v39 }
 0x132   :  { %576 = vst [vmem:[%s894_s4] sm:$0xff] %v574_v41 }
 0x133   :  { %589 = vsyncpa [#allocation3], 1 }

// kernel: generator_forward.12
= control target key start
LH: loop header
LB: loop body
LE: loop exit
PB: predicated region body
PF: predicated region fallthrough
CT: control target
= control target key end

     0   :  { %s140_s0 = inlined_call_operand.vmem [shape: bf16[32,128], index: 0, kind: input, shape index: {}]   ;;  %s141_s1 = inlined_call_operand.vmem [shape: f32[1,128], index: 1, kind: input, shape index: {}]   ;;  %s142_s2 = inlined_call_operand.vmem [shape: f32[1,128], index: 2, kind: input, shape index: {}]   ;;  %s143_s3 = inlined_call_operand.vmem [shape: bf16[32,128], index: 3, kind: output, shape index: {}]  }
   0x1   :  { %v83_v0 = vld [vmem:[%s140_s0] sm:$0xff]   ;;  %v100_v4 = vld [vmem:[%s140_s0 + $0x8] sm:$0xff]  }
   0x2   :  { %v72_v1 = vld [vmem:[%s141_s1] ss:$0 sm:$0xff]  ;;  %v84_v2 = vunpack.c.l.bf16 %v83_v0  ;;  %v85_v3 = vunpack.c.h.bf16 %v83_v0  ;;  %v88_v6 = vunpack.c.l.bf16 %v100_v4  ;;  %v89_v7 = vunpack.c.h.bf16 %v100_v4 }
   0x3   :  { %v73_v5 = vld [vmem:[%s142_s2] ss:$0 sm:$0xff] }
   0x4   :  { %v29_v8 = vmul.f32 %v84_v2, %v72_v1  ;;  %v30_v9 = vmul.f32 %v85_v3, %v72_v1  ;;  %v31_v10 = vmul.f32 %v88_v6, %v72_v1  ;;  %v32_v11 = vmul.f32 %v89_v7, %v72_v1 }
   0x6   :  { %v40_v12 = vadd.f32 %v73_v5, %v29_v8  ;;  %v41_v13 = vadd.f32 %v73_v5, %v30_v9  ;;  %v42_v14 = vadd.f32 %v73_v5, %v31_v10  ;;  %v43_v15 = vadd.f32 %v73_v5, %v32_v11 }
   0x8   :  { %v44_v16 = vmax.f32 %v40_v12, 0.0  ;;  %v45_v17 = vmax.f32 %v41_v13, 0.0  ;;  %v46_v18 = vmax.f32 %v42_v14, 0.0  ;;  %v47_v19 = vmax.f32 %v43_v15, 0.0 }
   0xa   :  { %v93_v20 = vpack.c.bf16 %v45_v17, %v44_v16  ;;  %v98_v21 = vpack.c.bf16 %v47_v19, %v46_v18 }
   0xc   :  { %94 = vst [vmem:[%s143_s3] sm:$0xff] %v93_v20   ;;  %101 = vst [vmem:[%s143_s3 + $0x8] sm:$0xff] %v98_v21  }

// kernel: tile.68
= control target key start
LH: loop header
LB: loop body
LE: loop exit
PB: predicated region body
PF: predicated region fallthrough
CT: control target
= control target key end

     0   :  { %s22_s0 = inlined_call_operand.vmem [shape: f32[16], index: 0, kind: input, shape index: {}]   ;;  %s23_s1 = inlined_call_operand.vmem [shape: f32[4,16], index: 1, kind: output, shape index: {}]  }
   0x1   :  { %v4_v0 = vld [vmem:[%s22_s0] ss:$0 sm:$0xff] }
   0x2   :  { %5 = vst [vmem:[%s23_s1] sm:$0xf] %v4_v0 }

// kernel: tile.69
= control target key start
LH: loop header
LB: loop body
LE: loop exit
PB: predicated region body
PF: predicated region fallthrough
CT: control target
= control target key end

     0   :  { %vm7_vm0 = vcmask 130048   ;;  %s37_s8 = smov 16   ;;  %s38_s9 = smov 32   ;;  %vm13_vm1 = vcmask 523648   ;;  %vm19_vm2 = vcmask 392448   ;;  %vm25_vm3 = vcmask 261248   ;;  %s55_s0 = inlined_call_operand.vmem [shape: f32[4,16], index: 0, kind: input, shape index: {}]   ;;  %s56_s1 = inlined_call_operand.vmem [shape: f32[64], index: 1, kind: output, shape index: {}]  }
   0x1   :  { %v4_v0 = vld [vmem:[%s55_s0] sm:$0xf]  ;;  %s36_s0 = smov 48  }
   0x2   :  { %5 = vst [vmem:[#allocation1] sm:$0xf] %v4_v0 }
   0x9   :  { %v10_v1 = vld [vmem:[#allocation1 + $0x3] sm:$0x1]   ;;  %v22_v2 = vld [vmem:[#allocation1 + $0x1] sm:$0x1]   ;;  %v6_v3 = vld [vmem:[#allocation1] sm:$0x1]  }
   0xa   :  { %11 = vrot.lane.b32.xlu0 %v10_v1, %s36_s0  ;;  %23 = vrot.lane.b32.xlu1 %v22_v2, %s37_s8  ;;  %v16_v4 = vld [vmem:[#allocation1 + $0x2] sm:$0x1]   ;;  %8 = vst.msk [vmem:[#allocation0] sm:$0x1] %vm7_vm0, %v6_v3  }
   0xe   :  { %17 = vrot.lane.b32.xlu0 %v16_v4, %s38_s9 }
  0x7c   :  { %v12_v5 = vpop.permute.xlu0 %11   ;;  %v24_v6 = vpop.permute.xlu1 %23  }
  0x7d   :  { %14 = vst.msk [vmem:[#allocation0] sm:$0x1] %vm13_vm1, %v12_v5  }
  0x80   :  { %v18_v7 = vpop.permute.xlu0 %17  }
  0x81   :  { %20 = vst.msk [vmem:[#allocation0] sm:$0x1] %vm19_vm2, %v18_v7  }
  0x82   :  { %26 = vst.msk [vmem:[#allocation0] sm:$0x1] %vm25_vm3, %v24_v6  }
  0x89   :  { %v30_v8 = vld [vmem:[#allocation0] sm:$0x1] }
  0x8a   :  { %32 = vst [vmem:[%s56_s1] sm:$0x1] %v30_v8 }

// kernel: generator_forward.13
= control target key start
LH: loop header
LB: loop body
LE: loop exit
PB: predicated region body
PF: predicated region fallthrough
CT: control target
= control target key end

     0   :  { %vm311_vm0 = vcmask 261120   ;;  %s1172_s1 = inlined_call_operand.vmem [shape: bf16[288,128], index: 1, kind: input, shape index: {}]   ;;  %s1173_s0 = inlined_call_operand.vmem [shape: bf16[128,288], index: 0, kind: input, shape index: {}]   ;;  %s1174_s2 = inlined_call_operand.vmem [shape: bf16[128,128], index: 2, kind: output, shape index: {0}]   ;;  %s1175_s3 = inlined_call_operand.vmem [shape: f32[8,128], index: 3, kind: output, shape index: {1}]   ;;  %s1176_s4 = inlined_call_operand.vmem [shape: f32[8,128], index: 4, kind: output, shape index: {2}]  }
   0x1   :  { %v921_v0 = vld [vmem:[%s1172_s1 + $0x40] sm:$0xff]   ;;  %v923_v2 = vld [vmem:[%s1172_s1 + $0x48] sm:$0xff]   ;;  %v925_v4 = vld [vmem:[%s1172_s1 + $0x50] sm:$0xff]  }
   0x2   :  { %v922_v1 = vld [vmem:[%s1172_s1] sm:$0xff]   ;;  %811 = vmatprep.subr.bf16.mxu0 %v921_v0  ;;  %905 = vmatprep.subr.bf16.mxu1 %v921_v0  ;;  %v924_v3 = vld [vmem:[%s1172_s1 + $0x8] sm:$0xff]   ;;  %v926_v5 = vld [vmem:[%s1172_s1 + $0x10] sm:$0xff]  }
   0x3   :  { %812 = vmatpush3.bf16.msra.mxu0 %v922_v1  ;;  %913 = vmatpush3.bf16.msra.mxu1 %v922_v1  ;;  %v927_v6 = vld [vmem:[%s1172_s1 + $0x58] sm:$0xff]   ;;  %v929_v8 = vld [vmem:[%s1172_s1 + $0x60] sm:$0xff]   ;;  %v931_v10 = vld [vmem:[%s1172_s1 + $0x68] sm:$0xff]  }
   0x4   :  { %813 = vmatprep.subr.bf16.mxu0 %v923_v2  ;;  %906 = vmatprep.subr.bf16.mxu1 %v923_v2  ;;  %v928_v7 = vld [vmem:[%s1172_s1 + $0x18] sm:$0xff]   ;;  %v930_v9 = vld [vmem:[%s1172_s1 + $0x20] sm:$0xff]   ;;  %v932_v13 = vld [vmem:[%s1172_s1 + $0x28] sm:$0xff]  }
   0x5   :  { %v939_v11 = vld [vmem:[%s1173_s0 + $0x4] ss:$12 sps:$4 sm:$0xff]   ;;  %v942_v12 = vld [vmem:[%s1173_s0 + $0x94] ss:$12 sps:$4 sm:$0xff]   ;;  %v935_v16 = vld [vmem:[%s1172_s1 + $0x78] sm:$0xff]  }
   0x6   :  { %v933_v14 = vld [vmem:[%s1172_s1 + $0x70] sm:$0xff]   ;;  %368 = vmatprep.mubr.bf16.mxu0 %v939_v11  ;;  %416 = vmatprep.mubr.bf16.mxu1 %v942_v12  ;;  %v936_v17 = vld [vmem:[%s1172_s1 + $0x38] sm:$0xff]   ;;  %v937_v18 = vld [vmem:[%s1173_s0] ss:$12 sps:$4 sm:$0xff]  }
   0x7   :  { %814 = vmatpush3.bf16.msra.mxu0 %v924_v3  ;;  %914 = vmatpush3.bf16.msra.mxu1 %v924_v3  ;;  %v934_v15 = vld [vmem:[%s1172_s1 + $0x30] sm:$0xff]   ;;  %v943_v19 = vld [vmem:[%s1172_s1 + $0x80] sm:$0xff]   ;;  %v944_v21 = vld [vmem:[%s1173_s0 + $0x1c] ss:$12 sps:$4 sm:$0xff]  }
   0x8   :  { %815 = vmatprep.subr.bf16.mxu0 %v925_v4  ;;  %907 = vmatprep.subr.bf16.mxu1 %v925_v4  ;;  %v940_v20 = vld [vmem:[%s1173_s0 + $0x90] ss:$12 sps:$4 sm:$0xff]   ;;  %v946_v22 = vld [vmem:[%s1173_s0 + $0xac] ss:$12 sps:$4 sm:$0xff]   ;;  %v949_v25 = vld [vmem:[%s1173_s0 + $0xa8] ss:$12 sps:$4 sm:$0xff]  }
   0x9   :  { %v950_v23 = vld [vmem:[%s1172_s1 + $0x88] sm:$0xff]   ;;  %v948_v24 = vld [vmem:[%s1173_s0 + $0x18] ss:$12 sps:$4 sm:$0xff]   ;;  %v951_v26 = vld [vmem:[%s1173_s0 + $0x34] ss:$12 sps:$4 sm:$0xff]  }
   0xa   :  { %v953_v27 = vld [vmem:[%s1173_s0 + $0x8] ss:$12 sps:$4 sm:$0xff]   ;;  %v954_v28 = vld [vmem:[%s1173_s0 + $0x30] ss:$12 sps:$4 sm:$0xff]   ;;  %v955_v29 = vld [vmem:[%s1173_s0 + $0x20] ss:$12 sps:$4 sm:$0xff]  }
   0xb   :  { %816 = vmatpush3.bf16.msra.mxu0 %v926_v5  ;;  %915 = vmatpush3.bf16.msra.mxu1 %v926_v5  ;;  %v956_v30 = vld [vmem:[%s1173_s0 + $0x4c] ss:$12 sps:$4 sm:$0xff]   ;;  %v959_v32 = vld [vmem:[%s1173_s0 + $0x48] ss:$12 sps:$4 sm:$0xff]   ;;  %v960_v33 = vld [vmem:[%s1173_s0 + $0x50] ss:$12 sps:$4 sm:$0xff]  }
   0xc   :  { %817 = vmatprep.subr.bf16.mxu0 %v927_v6  ;;  %908 = vmatprep.subr.bf16.mxu1 %v927_v6  ;;  %v958_v31 = vld [vmem:[%s1173_s0 + $0x38] ss:$12 sps:$4 sm:$0xff]   ;;  %v963_v35 = vld [vmem:[%s1173_s0 + $0x68] ss:$12 sps:$4 sm:$0xff]   ;;  %v964_v36 = vld [vmem:[%s1173_s0 + $0x60] ss:$12 sps:$4 sm:$0xff]  }
   0xd   :  { %v961_v34 = vld [vmem:[%s1173_s0 + $0x64] ss:$12 sps:$4 sm:$0xff]   ;;  %v965_v37 = vld [vmem:[%s1173_s0 + $0x80] ss:$12 sps:$4 sm:$0xff]   ;;  %v966_v38 = vld [vmem:[%s1173_s0 + $0x7c] ss:$12 sps:$4 sm:$0xff]  }
   0xe   :  { %v968_v39 = vld [vmem:[%s1173_s0 + $0x98] ss:$12 sps:$4 sm:$0xff]   ;;  %v970_v41 = vld [vmem:[%s1173_s0 + $0xb0] ss:$12 sps:$4 sm:$0xff]  }
   0xf   :  { %818 = vmatpush3.bf16.msra.mxu0 %v928_v7  ;;  %916 = vmatpush3.bf16.msra.mxu1 %v928_v7  ;;  %v969_v40 = vld [vmem:[%s1173_s0 + $0x78] ss:$12 sps:$4 sm:$0xff]  }
  0x10   :  { %819 = vmatprep.subr.bf16.mxu0 %v929_v8  ;;  %909 = vmatprep.subr.bf16.mxu1 %v929_v8 }
  0x13   :  { %820 = vmatpush3.bf16.msra.mxu0 %v930_v9  ;;  %917 = vmatpush3.bf16.msra.mxu1 %v930_v9 }
  0x14   :  { %821 = vmatprep.subr.bf16.mxu0 %v931_v10  ;;  %910 = vmatprep.subr.bf16.mxu1 %v931_v10 }
  0x17   :  { %822 = vmatpush3.bf16.msra.mxu0 %v932_v13  ;;  %918 = vmatpush3.bf16.msra.mxu1 %v932_v13 }
  0x18   :  { %823 = vmatprep.subr.bf16.mxu0 %v933_v14  ;;  %911 = vmatprep.subr.bf16.mxu1 %v933_v14 }
  0x1b   :  { %824 = vmatpush3.bf16.msra.mxu0 %v934_v15  ;;  %919 = vmatpush3.bf16.msra.mxu1 %v934_v15 }
  0x1c   :  { %825 = vmatprep.subr.bf16.mxu0 %v935_v16  ;;  %912 = vmatprep.subr.bf16.mxu1 %v935_v16 }
  0x1f   :  { %826 = vmatpush3.bf16.msra.mxu0 %v936_v17  ;;  %920 = vmatpush3.bf16.msra.mxu1 %v936_v17 }
  0x20   :  { %885 = vmatprep.subr.bf16.mxu1 %v943_v19 }
  0x22   :  { %369 = vmatmul.mubr.bf16.vlgmr.msra.gmra.mrb[0].mxu0 %v937_v18  ;;  %417 = vmatmul.mubr.bf16.vlgmr.msra.gmra.mrb[0].mxu1 %v940_v20 }
  0x23   :  { %886 = vmatpush3.bf16.msra.mxu1 %v943_v19  ;;  %376 = vmatprep.mubr.bf16.mxu0 %v944_v21 }
  0x24   :  { %424 = vmatprep.mubr.bf16.mxu1 %v946_v22  ;;  %887 = vmatprep.subr.bf16.mxu1 %v950_v23 }
  0x27   :  { %888 = vmatpush3.bf16.msra.mxu1 %v950_v23 }
  0x2a   :  { %377 = vmatmul.mubr.bf16.gmra.mrb[4].mxu0 %v948_v24  ;;  %425 = vmatmul.mubr.bf16.gmra.mrb[4].mxu1 %v949_v25 }
  0x2b   :  { %384 = vmatprep.mubr.bf16.mxu0 %v951_v26  ;;  %889 = vmatprep.mubr.msk.bf16.mxu1 %vm311_vm0, %v953_v27 }
  0x32   :  { %385 = vmatmul.mubr.bf16.gmra.mrb[8].mxu0 %v954_v28  ;;  %890 = vmatmul.mubr.msk.bf16.vlgmr.msra.gmra.mrb[8].mxu1 %vm311_vm0, %v955_v29 }
  0x33   :  { %392 = vmatprep.mubr.bf16.mxu0 %v956_v30  ;;  %893 = vmatprep.mubr.msk.bf16.mxu1 %vm311_vm0, %v958_v31 }
  0x3a   :  { %393 = vmatmul.mubr.bf16.gmra.mrb[12].mxu0 %v959_v32  ;;  %894 = vmatmul.mubr.msk.bf16.gmra.mrb[12].mxu1 %vm311_vm0, %v960_v33 }
  0x3b   :  { %400 = vmatprep.mubr.bf16.mxu0 %v961_v34  ;;  %897 = vmatprep.mubr.msk.bf16.mxu1 %vm311_vm0, %v963_v35 }
  0x42   :  { %401 = vmatmul.mubr.bf16.gmra.mrb[16].mxu0 %v964_v36  ;;  %898 = vmatmul.mubr.msk.bf16.gmra.mrb[16].mxu1 %vm311_vm0, %v965_v37 }
  0x43   :  { %408 = vmatprep.mubr.bf16.mxu0 %v966_v38  ;;  %901 = vmatprep.mubr.msk.bf16.mxu1 %vm311_vm0, %v968_v39 }
  0x4a   :  { %409 = vmatmul.mubr.bf16.gmra.mrb[20].mxu0 %v969_v40  ;;  %902 = vmatmul.mubr.msk.bf16.gmra.mrb[20].mxu1 %vm311_vm0, %v970_v41 }
  0xf5   :  { %v827_v42 = vpop.f32.mrb[0].mxu0  ;;  %v863_v43 = vpop.f32.mrb[0].mxu1 }
  0xf6   :  { %v828_v44 = vpop.f32.mrb[1].mxu0  ;;  %v864_v45 = vpop.f32.mrb[1].mxu1 }
  0xf7   :  { %v829_v46 = vadd.f32 %v828_v44, %v827_v42  ;;  %v830_v47 = vpop.f32.mrb[2].mxu0  ;;  %v1130_v48 = vadd.f32 %v864_v45, %v863_v43  ;;  %v866_v49 = vpop.f32.mrb[2].mxu1 }
  0xf8   :  { %v831_v50 = vpop.f32.mrb[3].mxu0  ;;  %v867_v51 = vpop.f32.mrb[3].mxu1 }
  0xf9   :  { %v832_v52 = vadd.f32 %v831_v50, %v830_v47  ;;  %v1132_v53 = vadd.f32 %v867_v51, %v866_v49 }
  0xfd   :  { %v833_v54 = vpop.f32.mrb[4].mxu0  ;;  %v869_v55 = vpop.f32.mrb[4].mxu1 }
  0xfe   :  { %v834_v56 = vpop.f32.mrb[5].mxu0  ;;  %v870_v57 = vpop.f32.mrb[5].mxu1 }
  0xff   :  { %v835_v58 = vadd.f32 %v834_v56, %v833_v54  ;;  %v836_v59 = vpop.f32.mrb[6].mxu0  ;;  %v1134_v60 = vadd.f32 %v870_v57, %v869_v55  ;;  %v872_v61 = vpop.f32.mrb[6].mxu1 }
 0x100   :  { %v837_v62 = vpop.f32.mrb[7].mxu0  ;;  %v873_v63 = vpop.f32.mrb[7].mxu1 }
 0x101   :  { %v838_v0 = vadd.f32 %v837_v62, %v836_v59  ;;  %v1136_v1 = vadd.f32 %v873_v63, %v872_v61 }
 0x105   :  { %v839_v2 = vpop.f32.mrb[8].mxu0  ;;  %v891_v3 = vpop.f32.mrb[8].mxu1 }
 0x106   :  { %v476_v4 = vadd.f32 %v891_v3, %v835_v58  ;;  %v840_v5 = vpop.f32.mrb[9].mxu0  ;;  %v467_v6 = vpop.f32.mrb[9].mxu1 }
 0x107   :  { %v841_v7 = vadd.f32 %v840_v5, %v839_v2  ;;  %v468_v8 = vadd.f32 %v829_v46, %v467_v6  ;;  %v842_v9 = vpop.f32.mrb[10].mxu0  ;;  %v892_v10 = vpop.f32.mrb[10].mxu1 }
 0x108   :  { %v479_v11 = vadd.f32 %v892_v10, %v838_v0  ;;  %v843_v12 = vpop.f32.mrb[11].mxu0  ;;  %v470_v13 = vpop.f32.mrb[11].mxu1  ;;  %v633_v21 = vmul.f32 %v476_v4, %v476_v4 }
 0x109   :  { %v844_v14 = vadd.f32 %v843_v12, %v842_v9  ;;  %v471_v15 = vadd.f32 %v832_v52, %v470_v13  ;;  %v631_v17 = vmul.f32 %v468_v8, %v468_v8 }
 0x10a   :  { %v772_v16 = vpack.c.bf16 %v479_v11, %v476_v4  ;;  %v634_v26 = vmul.f32 %v479_v11, %v479_v11 }
 0x10b   :  { %v767_v18 = vpack.c.bf16 %v471_v15, %v468_v8  ;;  %v610_v19 = vadd.f32 %v471_v15, %v468_v8  ;;  %v632_v20 = vmul.f32 %v471_v15, %v471_v15 }
 0x10c   :  { %804 = vst [vmem:[%s1174_s2 + $0x8] sm:$0xff] %v772_v16  }
 0x10d   :  { %768 = vst [vmem:[%s1174_s2] sm:$0xff] %v767_v18   ;;  %v611_v22 = vadd.f32 %v610_v19, %v476_v4  ;;  %v647_v23 = vadd.f32 %v632_v20, %v631_v17  ;;  %v845_v24 = vpop.f32.mrb[12].mxu0  ;;  %v895_v25 = vpop.f32.mrb[12].mxu1 }
 0x10e   :  { %v846_v27 = vpop.f32.mrb[13].mxu0  ;;  %v483_v28 = vpop.f32.mrb[13].mxu1 }
 0x10f   :  { %v648_v29 = vadd.f32 %v647_v23, %v633_v21  ;;  %v847_v30 = vadd.f32 %v846_v27, %v845_v24  ;;  %v484_v31 = vadd.f32 %v841_v7, %v483_v28  ;;  %v612_v32 = vadd.f32 %v611_v22, %v479_v11  ;;  %v848_v33 = vpop.f32.mrb[14].mxu0  ;;  %v896_v34 = vpop.f32.mrb[14].mxu1 }
 0x110   :  { %v849_v35 = vpop.f32.mrb[15].mxu0  ;;  %v486_v36 = vpop.f32.mrb[15].mxu1 }
 0x111   :  { %v492_v37 = vadd.f32 %v895_v25, %v847_v30  ;;  %v613_v38 = vadd.f32 %v612_v32, %v484_v31  ;;  %v635_v39 = vmul.f32 %v484_v31, %v484_v31  ;;  %v649_v40 = vadd.f32 %v648_v29, %v634_v26 }
 0x112   :  { %v850_v41 = vadd.f32 %v849_v35, %v848_v33  ;;  %v487_v42 = vadd.f32 %v844_v14, %v486_v36 }
 0x113   :  { %v650_v43 = vadd.f32 %v649_v40, %v635_v39  ;;  %v637_v51 = vmul.f32 %v492_v37, %v492_v37 }
 0x114   :  { %v495_v44 = vadd.f32 %v896_v34, %v850_v41  ;;  %v777_v45 = vpack.c.bf16 %v487_v42, %v484_v31  ;;  %v614_v46 = vadd.f32 %v613_v38, %v487_v42  ;;  %v636_v47 = vmul.f32 %v487_v42, %v487_v42 }
 0x115   :  { %v851_v49 = vpop.f32.mrb[16].mxu0  ;;  %v899_v50 = vpop.f32.mrb[16].mxu1 }
 0x116   :  { %v782_v52 = vpack.c.bf16 %v495_v44, %v492_v37  ;;  %805 = vst [vmem:[%s1174_s2 + $0x10] sm:$0xff] %v777_v45   ;;  %v615_v54 = vadd.f32 %v614_v46, %v492_v37  ;;  %v651_v55 = vadd.f32 %v650_v43, %v636_v47  ;;  %v852_v56 = vpop.f32.mrb[17].mxu0  ;;  %v499_v57 = vpop.f32.mrb[17].mxu1  ;;  %v638_v62 = vmul.f32 %v495_v44, %v495_v44 }
 0x117   :  { %v853_v58 = vadd.f32 %v852_v56, %v851_v49  ;;  %v854_v59 = vpop.f32.mrb[18].mxu0  ;;  %v900_v61 = vpop.f32.mrb[18].mxu1 }
 0x118   :  { %806 = vst [vmem:[%s1174_s2 + $0x18] sm:$0xff] %v782_v52   ;;  %v652_v63 = vadd.f32 %v651_v55, %v637_v51  ;;  %v855_v0 = vpop.f32.mrb[19].mxu0  ;;  %v616_v2 = vadd.f32 %v615_v54, %v495_v44  ;;  %v502_v3 = vpop.f32.mrb[19].mxu1 }
 0x119   :  { %v856_v4 = vadd.f32 %v855_v0, %v854_v59  ;;  %v500_v5 = vadd.f32 %v853_v58, %v499_v57 }
 0x11a   :  { %v653_v6 = vadd.f32 %v652_v63, %v638_v62 }
 0x11b   :  { %v617_v7 = vadd.f32 %v616_v2, %v500_v5  ;;  %v639_v8 = vmul.f32 %v500_v5, %v500_v5  ;;  %v503_v9 = vadd.f32 %v856_v4, %v502_v3 }
 0x11d   :  { %v654_v10 = vadd.f32 %v653_v6, %v639_v8  ;;  %v787_v11 = vpack.c.bf16 %v503_v9, %v500_v5  ;;  %v618_v12 = vadd.f32 %v617_v7, %v503_v9  ;;  %v640_v13 = vmul.f32 %v503_v9, %v503_v9  ;;  %v857_v14 = vpop.f32.mrb[20].mxu0  ;;  %v903_v15 = vpop.f32.mrb[20].mxu1 }
 0x11e   :  { %v524_v16 = vadd.f32 %v903_v15, %v1134_v60  ;;  %v858_v17 = vpop.f32.mrb[21].mxu0  ;;  %v515_v18 = vpop.f32.mrb[21].mxu1 }
 0x11f   :  { %807 = vst [vmem:[%s1174_s2 + $0x20] sm:$0xff] %v787_v11   ;;  %v655_v19 = vadd.f32 %v654_v10, %v640_v13  ;;  %v859_v20 = vadd.f32 %v858_v17, %v857_v14  ;;  %v516_v21 = vadd.f32 %v1130_v48, %v515_v18  ;;  %v860_v22 = vpop.f32.mrb[22].mxu0  ;;  %v904_v23 = vpop.f32.mrb[22].mxu1 }
 0x120   :  { %v527_v24 = vadd.f32 %v904_v23, %v1136_v1  ;;  %v861_v25 = vpop.f32.mrb[23].mxu0  ;;  %v518_v26 = vpop.f32.mrb[23].mxu1  ;;  %v645_v41 = vmul.f32 %v524_v16, %v524_v16 }
 0x121   :  { %v508_v27 = vadd.f32 %v899_v50, %v859_v20  ;;  %v862_v28 = vadd.f32 %v861_v25, %v860_v22  ;;  %v519_v60 = vadd.f32 %v1132_v53, %v518_v26  ;;  %v643_v1 = vmul.f32 %v516_v21, %v516_v21 }
 0x122   :  { %v802_v29 = vpack.c.bf16 %v527_v24, %v524_v16  ;;  %v646_v44 = vmul.f32 %v527_v24, %v527_v24 }
 0x123   :  { %v619_v30 = vadd.f32 %v618_v12, %v508_v27  ;;  %v641_v31 = vmul.f32 %v508_v27, %v508_v27  ;;  %v511_v32 = vadd.f32 %v900_v61, %v862_v28  ;;  %v797_v33 = vpack.c.bf16 %v519_v60, %v516_v21 }
 0x124   :  { %810 = vst [vmem:[%s1174_s2 + $0x38] sm:$0xff] %v802_v29   ;;  %v644_v39 = vmul.f32 %v519_v60, %v519_v60 }
 0x125   :  { %v656_v48 = vadd.f32 %v655_v19, %v641_v31  ;;  %v792_v34 = vpack.c.bf16 %v511_v32, %v508_v27  ;;  %v620_v35 = vadd.f32 %v619_v30, %v511_v32  ;;  %v642_v36 = vmul.f32 %v511_v32, %v511_v32  ;;  %809 = vst [vmem:[%s1174_s2 + $0x30] sm:$0xff] %v797_v33  }
 0x127   :  { %808 = vst [vmem:[%s1174_s2 + $0x28] sm:$0xff] %v792_v34   ;;  %v657_v53 = vadd.f32 %v656_v48, %v642_v36  ;;  %v621_v37 = vadd.f32 %v620_v35, %v516_v21 }
 0x129   :  { %v622_v38 = vadd.f32 %v621_v37, %v519_v60  ;;  %v658_v40 = vadd.f32 %v657_v53, %v643_v1 }
 0x12b   :  { %v623_v42 = vadd.f32 %v622_v38, %v524_v16  ;;  %v659_v43 = vadd.f32 %v658_v40, %v644_v39 }
 0x12d   :  { %v624_v45 = vadd.f32 %v623_v42, %v527_v24  ;;  %v660_v46 = vadd.f32 %v659_v43, %v645_v41 }
 0x12f   :  { %v625_v47 = vrot.slane %v624_v45, 4  ;;  %v661_v49 = vadd.f32 %v660_v46, %v646_v44 }
 0x131   :  { %v626_v50 = vadd.f32 %v625_v47, %v624_v45  ;;  %v662_v51 = vrot.slane %v661_v49, 4 }
 0x133   :  { %v627_v52 = vrot.slane %v626_v50, 2  ;;  %v663_v54 = vadd.f32 %v662_v51, %v661_v49 }
 0x135   :  { %v628_v55 = vadd.f32 %v627_v52, %v626_v50  ;;  %v664_v56 = vrot.slane %v663_v54, 2 }
 0x137   :  { %v629_v57 = vrot.slane %v628_v55, 1  ;;  %v665_v58 = vadd.f32 %v664_v56, %v663_v54 }
 0x139   :  { %v630_v59 = vadd.f32 %v629_v57, %v628_v55  ;;  %v666_v61 = vrot.slane %v665_v58, 1 }
 0x13b   :  { %v667_v62 = vadd.f32 %v666_v61, %v665_v58  ;;  %668 = vst [vmem:[%s1175_s3] sm:$0xff] %v630_v59 }
 0x13d   :  { %669 = vst [vmem:[%s1176_s4] sm:$0xff] %v667_v62 }

// kernel: generator_forward.14
= control target key start
LH: loop header
LB: loop body
LE: loop exit
PB: predicated region body
PF: predicated region fallthrough
CT: control target
= control target key end

     0   :  { %s422_s0 = inlined_call_operand.vmem [shape: bf16[128,128], index: 0, kind: input, shape index: {}]   ;;  %s423_s1 = inlined_call_operand.vmem [shape: f32[1,128], index: 1, kind: input, shape index: {}]   ;;  %s424_s2 = inlined_call_operand.vmem [shape: f32[1,128], index: 2, kind: input, shape index: {}]   ;;  %s425_s3 = inlined_call_operand.vmem [shape: bf16[128,128], index: 3, kind: output, shape index: {}]  }
   0x1   :  { %v227_v0 = vld [vmem:[%s422_s0] sm:$0xff]   ;;  %v298_v4 = vld [vmem:[%s422_s0 + $0x8] sm:$0xff]   ;;  %v299_v5 = vld [vmem:[%s422_s0 + $0x10] sm:$0xff]  }
   0x2   :  { %v338_v1 = vld [vmem:[%s423_s1] ss:$0 sm:$0xff]  ;;  %v228_v2 = vunpack.c.l.bf16 %v227_v0  ;;  %v229_v3 = vunpack.c.h.bf16 %v227_v0  ;;  %v300_v6 = vld [vmem:[%s422_s0 + $0x18] sm:$0xff]   ;;  %v232_v8 = vunpack.c.l.bf16 %v298_v4  ;;  %v233_v9 = vunpack.c.h.bf16 %v298_v4  ;;  %v302_v33 = vld [vmem:[%s422_s0 + $0x28] sm:$0xff]  }
   0x3   :  { %v352_v7 = vld [vmem:[%s424_s2] ss:$0 sm:$0xff]  ;;  %v236_v10 = vunpack.c.l.bf16 %v299_v5  ;;  %v237_v11 = vunpack.c.h.bf16 %v299_v5  ;;  %v240_v14 = vunpack.c.l.bf16 %v300_v6  ;;  %v241_v15 = vunpack.c.h.bf16 %v300_v6  ;;  %v303_v38 = vld [vmem:[%s422_s0 + $0x30] sm:$0xff]   ;;  %v304_v43 = vld [vmem:[%s422_s0 + $0x38] sm:$0xff]  }
   0x4   :  { %v53_v12 = vmul.f32 %v228_v2, %v338_v1  ;;  %v54_v13 = vmul.f32 %v229_v3, %v338_v1  ;;  %v55_v16 = vmul.f32 %v232_v8, %v338_v1  ;;  %v56_v17 = vmul.f32 %v233_v9, %v338_v1  ;;  %v301_v28 = vld [vmem:[%s422_s0 + $0x20] sm:$0xff]  }
   0x5   :  { %v57_v18 = vmul.f32 %v236_v10, %v338_v1  ;;  %v58_v19 = vmul.f32 %v237_v11, %v338_v1  ;;  %v59_v22 = vmul.f32 %v240_v14, %v338_v1  ;;  %v60_v23 = vmul.f32 %v241_v15, %v338_v1 }
   0x6   :  { %v76_v20 = vadd.f32 %v352_v7, %v53_v12  ;;  %v77_v21 = vadd.f32 %v352_v7, %v54_v13  ;;  %v78_v24 = vadd.f32 %v352_v7, %v55_v16  ;;  %v79_v25 = vadd.f32 %v352_v7, %v56_v17 }
   0x7   :  { %v80_v26 = vadd.f32 %v352_v7, %v57_v18  ;;  %v81_v27 = vadd.f32 %v352_v7, %v58_v19  ;;  %v82_v31 = vadd.f32 %v352_v7, %v59_v22  ;;  %v83_v32 = vadd.f32 %v352_v7, %v60_v23 }
   0x8   :  { %v92_v29 = vmax.f32 %v76_v20, 0.0  ;;  %v93_v30 = vmax.f32 %v77_v21, 0.0  ;;  %v94_v34 = vmax.f32 %v78_v24, 0.0  ;;  %v95_v35 = vmax.f32 %v79_v25, 0.0 }
   0x9   :  { %v96_v36 = vmax.f32 %v80_v26, 0.0  ;;  %v97_v37 = vmax.f32 %v81_v27, 0.0  ;;  %v98_v40 = vmax.f32 %v82_v31, 0.0  ;;  %v99_v41 = vmax.f32 %v83_v32, 0.0 }
   0xa   :  { %v261_v39 = vpack.c.bf16 %v93_v30, %v92_v29  ;;  %v244_v42 = vunpack.c.l.bf16 %v301_v28  ;;  %v266_v44 = vpack.c.bf16 %v95_v35, %v94_v34  ;;  %v245_v46 = vunpack.c.h.bf16 %v301_v28 }
   0xb   :  { %v271_v45 = vpack.c.bf16 %v97_v37, %v96_v36  ;;  %v248_v47 = vunpack.c.l.bf16 %v302_v33  ;;  %v276_v48 = vpack.c.bf16 %v99_v41, %v98_v40  ;;  %v249_v50 = vunpack.c.h.bf16 %v302_v33 }
   0xc   :  { %262 = vst [vmem:[%s425_s3] sm:$0xff] %v261_v39   ;;  %v61_v49 = vmul.f32 %v244_v42, %v338_v1  ;;  %v252_v51 = vunpack.c.l.bf16 %v303_v38  ;;  %305 = vst [vmem:[%s425_s3 + $0x8] sm:$0xff] %v266_v44   ;;  %v62_v52 = vmul.f32 %v245_v46, %v338_v1  ;;  %v253_v54 = vunpack.c.h.bf16 %v303_v38 }
   0xd   :  { %306 = vst [vmem:[%s425_s3 + $0x10] sm:$0xff] %v271_v45   ;;  %v63_v53 = vmul.f32 %v248_v47, %v338_v1  ;;  %v256_v55 = vunpack.c.l.bf16 %v304_v43  ;;  %307 = vst [vmem:[%s425_s3 + $0x18] sm:$0xff] %v276_v48   ;;  %v64_v57 = vmul.f32 %v249_v50, %v338_v1  ;;  %v257_v59 = vunpack.c.h.bf16 %v304_v43 }
   0xe   :  { %v84_v56 = vadd.f32 %v352_v7, %v61_v49  ;;  %v65_v58 = vmul.f32 %v252_v51, %v338_v1  ;;  %v85_v60 = vadd.f32 %v352_v7, %v62_v52  ;;  %v66_v62 = vmul.f32 %v253_v54, %v338_v1 }
   0xf   :  { %v86_v61 = vadd.f32 %v352_v7, %v63_v53  ;;  %v67_v63 = vmul.f32 %v256_v55, %v338_v1  ;;  %v87_v2 = vadd.f32 %v352_v7, %v64_v57  ;;  %v68_v4 = vmul.f32 %v257_v59, %v338_v1 }
  0x10   :  { %v100_v0 = vmax.f32 %v84_v56, 0.0  ;;  %v88_v3 = vadd.f32 %v352_v7, %v65_v58  ;;  %v101_v5 = vmax.f32 %v85_v60, 0.0  ;;  %v89_v8 = vadd.f32 %v352_v7, %v66_v62 }
  0x11   :  { %v102_v6 = vmax.f32 %v86_v61, 0.0  ;;  %v90_v9 = vadd.f32 %v352_v7, %v67_v63  ;;  %v103_v10 = vmax.f32 %v87_v2, 0.0  ;;  %v91_v12 = vadd.f32 %v352_v7, %v68_v4 }
  0x12   :  { %v104_v11 = vmax.f32 %v88_v3, 0.0  ;;  %v281_v13 = vpack.c.bf16 %v101_v5, %v100_v0  ;;  %v105_v14 = vmax.f32 %v89_v8, 0.0 }
  0x13   :  { %v106_v15 = vmax.f32 %v90_v9, 0.0  ;;  %v286_v16 = vpack.c.bf16 %v103_v10, %v102_v6  ;;  %v107_v17 = vmax.f32 %v91_v12, 0.0 }
  0x14   :  { %308 = vst [vmem:[%s425_s3 + $0x20] sm:$0xff] %v281_v13   ;;  %v291_v1 = vpack.c.bf16 %v105_v14, %v104_v11 }
  0x15   :  { %309 = vst [vmem:[%s425_s3 + $0x28] sm:$0xff] %v286_v16   ;;  %v296_v18 = vpack.c.bf16 %v107_v17, %v106_v15 }
  0x16   :  { %310 = vst [vmem:[%s425_s3 + $0x30] sm:$0xff] %v291_v1  }
  0x17   :  { %311 = vst [vmem:[%s425_s3 + $0x38] sm:$0xff] %v296_v18  }

// kernel: tile.78
= control target key start
LH: loop header
LB: loop body
LE: loop exit
PB: predicated region body
PF: predicated region fallthrough
CT: control target
= control target key end

     0   :  { %s22_s0 = inlined_call_operand.vmem [shape: f32[8], index: 0, kind: input, shape index: {}]   ;;  %s23_s1 = inlined_call_operand.vmem [shape: f32[4,8], index: 1, kind: output, shape index: {}]  }
   0x1   :  { %v4_v0 = vld [vmem:[%s22_s0] ss:$0 sm:$0xff] }
   0x2   :  { %5 = vst [vmem:[%s23_s1] sm:$0xf] %v4_v0 }

// kernel: tile.79
= control target key start
LH: loop header
LB: loop body
LE: loop exit
PB: predicated region body
PF: predicated region fallthrough
CT: control target
= control target key end

     0   :  { %vm7_vm0 = vcmask 64512   ;;  %s37_s8 = smov 8   ;;  %s38_s9 = smov 16   ;;  %vm13_vm1 = vcmask 261312   ;;  %vm19_vm2 = vcmask 195712   ;;  %vm25_vm3 = vcmask 130112   ;;  %s55_s0 = inlined_call_operand.vmem [shape: f32[4,8], index: 0, kind: input, shape index: {}]   ;;  %s56_s1 = inlined_call_operand.vmem [shape: f32[32], index: 1, kind: output, shape index: {}]  }
   0x1   :  { %v4_v0 = vld [vmem:[%s55_s0] sm:$0xf]  ;;  %s36_s0 = smov 24  }
   0x2   :  { %5 = vst [vmem:[#allocation1] sm:$0xf] %v4_v0 }
   0x9   :  { %v10_v1 = vld [vmem:[#allocation1 + $0x3] sm:$0x1]   ;;  %v22_v2 = vld [vmem:[#allocation1 + $0x1] sm:$0x1]   ;;  %v6_v3 = vld [vmem:[#allocation1] sm:$0x1]  }
   0xa   :  { %11 = vrot.lane.b32.xlu0 %v10_v1, %s36_s0  ;;  %23 = vrot.lane.b32.xlu1 %v22_v2, %s37_s8  ;;  %v16_v4 = vld [vmem:[#allocation1 + $0x2] sm:$0x1]   ;;  %8 = vst.msk [vmem:[#allocation0] sm:$0x1] %vm7_vm0, %v6_v3  }
   0xe   :  { %17 = vrot.lane.b32.xlu0 %v16_v4, %s38_s9 }
  0x7c   :  { %v12_v5 = vpop.permute.xlu0 %11   ;;  %v24_v6 = vpop.permute.xlu1 %23  }
  0x7d   :  { %14 = vst.msk [vmem:[#allocation0] sm:$0x1] %vm13_vm1, %v12_v5  }
  0x80   :  { %v18_v7 = vpop.permute.xlu0 %17  }
  0x81   :  { %20 = vst.msk [vmem:[#allocation0] sm:$0x1] %vm19_vm2, %v18_v7  }
  0x82   :  { %26 = vst.msk [vmem:[#allocation0] sm:$0x1] %vm25_vm3, %v24_v6  }
  0x89   :  { %v30_v8 = vld [vmem:[#allocation0] sm:$0x1] }
  0x8a   :  { %32 = vst [vmem:[%s56_s1] sm:$0x1] %v30_v8 }

// kernel: generator_forward.15
= control target key start
LH: loop header
LB: loop body
LE: loop exit
PB: predicated region body
PF: predicated region fallthrough
CT: control target
= control target key end

     0   :  { %v1909_v0 = vmov 0   ;;  %vm439_vm0 = vcmask 130048   ;;  %s2480_s1 = inlined_call_operand.vmem [shape: bf16[144,128], index: 1, kind: input, shape index: {}]   ;;  %s2481_s0 = inlined_call_operand.vmem [shape: bf16[512,144], index: 0, kind: input, shape index: {}]   ;;  %s2482_s2 = inlined_call_operand.vmem [shape: bf16[512,128], index: 2, kind: output, shape index: {0}]   ;;  %s2483_s3 = inlined_call_operand.vmem [shape: f32[8,128], index: 3, kind: output, shape index: {1}]   ;;  %s2484_s4 = inlined_call_operand.vmem [shape: f32[8,128], index: 4, kind: output, shape index: {2}]  }
   0x1   :  { %536 = vmatprep.subr.bf16.mxu0 %v1909_v0  ;;  %v1804_v1 = vld [vmem:[%s2480_s1] sm:$0xff]   ;;  %1785 = vmatprep.subr.bf16.mxu1 %v1909_v0  ;;  %v1805_v2 = vld [vmem:[%s2480_s1 + $0x8] sm:$0xff]   ;;  %v1806_v3 = vld [vmem:[%s2480_s1 + $0x10] sm:$0xff]  }
   0x2   :  { %537 = vmatpush1.bf16.msra.mxu0 %v1804_v1  ;;  %1794 = vmatpush1.bf16.msra.mxu1 %v1804_v1  ;;  %v1807_v4 = vld [vmem:[%s2480_s1 + $0x18] sm:$0xff]   ;;  %v1815_v5 = vld [vmem:[%s2481_s0 + $0x4] ss:$8 sps:$4 sm:$0xff]   ;;  %v1810_v9 = vld [vmem:[%s2480_s1 + $0x30] sm:$0xff]  }
   0x3   :  { %538 = vmatprep.subr.bf16.mxu0 %v1909_v0  ;;  %1786 = vmatprep.subr.bf16.mxu1 %v1909_v0  ;;  %v1808_v6 = vld [vmem:[%s2480_s1 + $0x20] sm:$0xff]   ;;  %v1809_v7 = vld [vmem:[%s2480_s1 + $0x28] sm:$0xff]   ;;  %v1811_v10 = vld [vmem:[%s2480_s1 + $0x38] sm:$0xff]  }
   0x4   :  { %1434 = vmatprep.mubr.msk.bf16.mxu0 %vm439_vm0, %v1815_v5  ;;  %v1839_v8 = vld [vmem:[%s2481_s0 + $0x104] ss:$8 sps:$4 sm:$0xff]   ;;  %v1813_v12 = vld [vmem:[%s2481_s0] ss:$8 sps:$4 sm:$0xff]   ;;  %v1816_v13 = vld [vmem:[%s2481_s0 + $0x14] ss:$8 sps:$4 sm:$0xff]  }
   0x5   :  { %1450 = vmatprep.mubr.msk.bf16.mxu1 %vm439_vm0, %v1839_v8  ;;  %v1812_v11 = vld [vmem:[%s2480_s1 + $0x40] sm:$0xff]   ;;  %v1843_v15 = vld [vmem:[%s2481_s0 + $0x114] ss:$8 sps:$4 sm:$0xff]   ;;  %v1818_v16 = vld [vmem:[%s2481_s0 + $0x10] ss:$8 sps:$4 sm:$0xff]  }
   0x6   :  { %539 = vmatpush1.bf16.msra.mxu0 %v1805_v2  ;;  %1795 = vmatpush1.bf16.msra.mxu1 %v1805_v2  ;;  %v1837_v14 = vld [vmem:[%s2481_s0 + $0x100] ss:$8 sps:$4 sm:$0xff]   ;;  %v1819_v17 = vld [vmem:[%s2481_s0 + $0x24] ss:$8 sps:$4 sm:$0xff]   ;;  %v1845_v18 = vld [vmem:[%s2481_s0 + $0x110] ss:$8 sps:$4 sm:$0xff]  }
   0x7   :  { %540 = vmatprep.subr.bf16.mxu0 %v1909_v0  ;;  %1787 = vmatprep.subr.bf16.mxu1 %v1909_v0  ;;  %v1849_v19 = vld [vmem:[%s2481_s0 + $0x124] ss:$8 sps:$4 sm:$0xff]   ;;  %v1821_v20 = vld [vmem:[%s2481_s0 + $0x20] ss:$8 sps:$4 sm:$0xff]   ;;  %v1822_v21 = vld [vmem:[%s2481_s0 + $0x34] ss:$8 sps:$4 sm:$0xff]  }
   0x8   :  { %v1851_v22 = vld [vmem:[%s2481_s0 + $0x120] ss:$8 sps:$4 sm:$0xff]   ;;  %v1855_v23 = vld [vmem:[%s2481_s0 + $0x134] ss:$8 sps:$4 sm:$0xff]   ;;  %v1824_v24 = vld [vmem:[%s2481_s0 + $0x30] ss:$8 sps:$4 sm:$0xff]  }
   0x9   :  { %v1857_v25 = vld [vmem:[%s2481_s0 + $0x130] ss:$8 sps:$4 sm:$0xff]   ;;  %v1825_v26 = vld [vmem:[%s2481_s0 + $0x44] ss:$8 sps:$4 sm:$0xff]   ;;  %v1827_v28 = vld [vmem:[%s2481_s0 + $0x40] ss:$8 sps:$4 sm:$0xff]  }
   0xa   :  { %541 = vmatpush1.bf16.msra.mxu0 %v1806_v3  ;;  %1796 = vmatpush1.bf16.msra.mxu1 %v1806_v3  ;;  %v1861_v27 = vld [vmem:[%s2481_s0 + $0x144] ss:$8 sps:$4 sm:$0xff]   ;;  %v1863_v29 = vld [vmem:[%s2481_s0 + $0x140] ss:$8 sps:$4 sm:$0xff]   ;;  %v1828_v30 = vld [vmem:[%s2481_s0 + $0x54] ss:$8 sps:$4 sm:$0xff]  }
   0xb   :  { %542 = vmatprep.subr.bf16.mxu0 %v1909_v0  ;;  %1788 = vmatprep.subr.bf16.mxu1 %v1909_v0  ;;  %v1867_v31 = vld [vmem:[%s2481_s0 + $0x154] ss:$8 sps:$4 sm:$0xff]   ;;  %v1830_v32 = vld [vmem:[%s2481_s0 + $0x50] ss:$8 sps:$4 sm:$0xff]   ;;  %v1831_v34 = vld [vmem:[%s2481_s0 + $0x64] ss:$8 sps:$4 sm:$0xff]  }
   0xc   :  { %v1869_v33 = vld [vmem:[%s2481_s0 + $0x150] ss:$8 sps:$4 sm:$0xff]   ;;  %v1873_v35 = vld [vmem:[%s2481_s0 + $0x164] ss:$8 sps:$4 sm:$0xff]   ;;  %v1833_v36 = vld [vmem:[%s2481_s0 + $0x60] ss:$8 sps:$4 sm:$0xff]  }
   0xd   :  { %v1875_v37 = vld [vmem:[%s2481_s0 + $0x160] ss:$8 sps:$4 sm:$0xff]   ;;  %v1834_v38 = vld [vmem:[%s2481_s0 + $0x74] ss:$8 sps:$4 sm:$0xff]   ;;  %v1836_v40 = vld [vmem:[%s2481_s0 + $0x70] ss:$8 sps:$4 sm:$0xff]  }
   0xe   :  { %543 = vmatpush1.bf16.msra.mxu0 %v1807_v4  ;;  %1797 = vmatpush1.bf16.msra.mxu1 %v1807_v4  ;;  %v1879_v39 = vld [vmem:[%s2481_s0 + $0x174] ss:$8 sps:$4 sm:$0xff]   ;;  %v1881_v41 = vld [vmem:[%s2481_s0 + $0x170] ss:$8 sps:$4 sm:$0xff]   ;;  %v1840_v42 = vld [vmem:[%s2481_s0 + $0x84] ss:$8 sps:$4 sm:$0xff]  }
   0xf   :  { %544 = vmatprep.subr.bf16.mxu0 %v1909_v0  ;;  %1789 = vmatprep.subr.bf16.mxu1 %v1909_v0  ;;  %v1885_v43 = vld [vmem:[%s2481_s0 + $0x184] ss:$8 sps:$4 sm:$0xff]   ;;  %v1842_v44 = vld [vmem:[%s2481_s0 + $0x80] ss:$8 sps:$4 sm:$0xff]   ;;  %v1846_v46 = vld [vmem:[%s2481_s0 + $0x94] ss:$8 sps:$4 sm:$0xff]  }
  0x10   :  { %v1887_v45 = vld [vmem:[%s2481_s0 + $0x180] ss:$8 sps:$4 sm:$0xff]   ;;  %v1888_v47 = vld [vmem:[%s2481_s0 + $0x194] ss:$8 sps:$4 sm:$0xff]   ;;  %v1848_v48 = vld [vmem:[%s2481_s0 + $0x90] ss:$8 sps:$4 sm:$0xff]  }
  0x11   :  { %v1890_v49 = vld [vmem:[%s2481_s0 + $0x190] ss:$8 sps:$4 sm:$0xff]   ;;  %v1852_v50 = vld [vmem:[%s2481_s0 + $0xa4] ss:$8 sps:$4 sm:$0xff]   ;;  %v1854_v52 = vld [vmem:[%s2481_s0 + $0xa0] ss:$8 sps:$4 sm:$0xff]  }
  0x12   :  { %545 = vmatpush1.bf16.msra.mxu0 %v1808_v6  ;;  %1798 = vmatpush1.bf16.msra.mxu1 %v1808_v6  ;;  %v1891_v51 = vld [vmem:[%s2481_s0 + $0x1a4] ss:$8 sps:$4 sm:$0xff]   ;;  %v1893_v53 = vld [vmem:[%s2481_s0 + $0x1a0] ss:$8 sps:$4 sm:$0xff]   ;;  %v1858_v54 = vld [vmem:[%s2481_s0 + $0xb4] ss:$8 sps:$4 sm:$0xff]  }
  0x13   :  { %546 = vmatprep.subr.bf16.mxu0 %v1909_v0  ;;  %1790 = vmatprep.subr.bf16.mxu1 %v1909_v0  ;;  %v1894_v55 = vld [vmem:[%s2481_s0 + $0x1b4] ss:$8 sps:$4 sm:$0xff]   ;;  %v1860_v56 = vld [vmem:[%s2481_s0 + $0xb0] ss:$8 sps:$4 sm:$0xff]   ;;  %v1864_v58 = vld [vmem:[%s2481_s0 + $0xc4] ss:$8 sps:$4 sm:$0xff]  }
  0x14   :  { %v1896_v57 = vld [vmem:[%s2481_s0 + $0x1b0] ss:$8 sps:$4 sm:$0xff]   ;;  %v1897_v59 = vld [vmem:[%s2481_s0 + $0x1c4] ss:$8 sps:$4 sm:$0xff]   ;;  %v1866_v60 = vld [vmem:[%s2481_s0 + $0xc0] ss:$8 sps:$4 sm:$0xff]  }
  0x15   :  { %v1899_v61 = vld [vmem:[%s2481_s0 + $0x1c0] ss:$8 sps:$4 sm:$0xff]   ;;  %v1870_v62 = vld [vmem:[%s2481_s0 + $0xd4] ss:$8 sps:$4 sm:$0xff]   ;;  %v1902_v1 = vld [vmem:[%s2481_s0 + $0x1d0] ss:$8 sps:$4 sm:$0xff]  }
  0x16   :  { %547 = vmatpush1.bf16.msra.mxu0 %v1809_v7  ;;  %1799 = vmatpush1.bf16.msra.mxu1 %v1809_v7  ;;  %v1900_v63 = vld [vmem:[%s2481_s0 + $0x1d4] ss:$8 sps:$4 sm:$0xff]   ;;  %v1876_v2 = vld [vmem:[%s2481_s0 + $0xe4] ss:$8 sps:$4 sm:$0xff]   ;;  %v1878_v4 = vld [vmem:[%s2481_s0 + $0xe0] ss:$8 sps:$4 sm:$0xff]  }
  0x17   :  { %548 = vmatprep.subr.bf16.mxu0 %v1909_v0  ;;  %1791 = vmatprep.subr.bf16.mxu1 %v1909_v0  ;;  %v1903_v3 = vld [vmem:[%s2481_s0 + $0x1e4] ss:$8 sps:$4 sm:$0xff]   ;;  %v1905_v5 = vld [vmem:[%s2481_s0 + $0x1e0] ss:$8 sps:$4 sm:$0xff]   ;;  %v1882_v6 = vld [vmem:[%s2481_s0 + $0xf4] ss:$8 sps:$4 sm:$0xff]  }
  0x18   :  { %v1906_v7 = vld [vmem:[%s2481_s0 + $0x1f4] ss:$8 sps:$4 sm:$0xff]   ;;  %v1884_v8 = vld [vmem:[%s2481_s0 + $0xf0] ss:$8 sps:$4 sm:$0xff]  }
  0x1a   :  { %549 = vmatpush1.bf16.msra.mxu0 %v1810_v9  ;;  %1800 = vmatpush1.bf16.msra.mxu1 %v1810_v9  ;;  %v1908_v9 = vld [vmem:[%s2481_s0 + $0x1f0] ss:$8 sps:$4 sm:$0xff]  }
  0x1b   :  { %550 = vmatprep.subr.bf16.mxu0 %v1909_v0  ;;  %1792 = vmatprep.subr.bf16.mxu1 %v1909_v0 }
  0x1e   :  { %551 = vmatpush1.bf16.msra.mxu0 %v1811_v10  ;;  %1801 = vmatpush1.bf16.msra.mxu1 %v1811_v10 }
  0x1f   :  { %552 = vmatprep.subr.bf16.mxu0 %v1909_v0  ;;  %1793 = vmatprep.subr.bf16.mxu1 %v1909_v0  ;;  %v1872_v0 = vld [vmem:[%s2481_s0 + $0xd0] ss:$8 sps:$4 sm:$0xff]  }
  0x22   :  { %553 = vmatpush1.bf16.msra.mxu0 %v1812_v11  ;;  %1802 = vmatpush1.bf16.msra.mxu1 %v1812_v11 }
  0x25   :  { %569 = vmatmul.mubr.bf16.vlgmr.msra.gmra.mrb[0].mxu0 %v1813_v12  ;;  %697 = vmatmul.mubr.bf16.vlgmr.msra.gmra.mrb[0].mxu1 %v1837_v14 }
  0x26   :  { %1435 = vmatprep.mubr.msk.bf16.mxu0 %vm439_vm0, %v1816_v13  ;;  %1451 = vmatprep.mubr.msk.bf16.mxu1 %vm439_vm0, %v1843_v15 }
  0x2d   :  { %577 = vmatmul.mubr.bf16.gmra.mrb[4].mxu0 %v1818_v16  ;;  %705 = vmatmul.mubr.bf16.gmra.mrb[4].mxu1 %v1845_v18 }
  0x2e   :  { %1436 = vmatprep.mubr.msk.bf16.mxu0 %vm439_vm0, %v1819_v17  ;;  %1452 = vmatprep.mubr.msk.bf16.mxu1 %vm439_vm0, %v1849_v19 }
  0x35   :  { %585 = vmatmul.mubr.bf16.gmra.mrb[8].mxu0 %v1821_v20  ;;  %713 = vmatmul.mubr.bf16.gmra.mrb[8].mxu1 %v1851_v22 }
  0x36   :  { %1437 = vmatprep.mubr.msk.bf16.mxu0 %vm439_vm0, %v1822_v21  ;;  %1453 = vmatprep.mubr.msk.bf16.mxu1 %vm439_vm0, %v1855_v23 }
  0x3d   :  { %593 = vmatmul.mubr.bf16.gmra.mrb[12].mxu0 %v1824_v24  ;;  %721 = vmatmul.mubr.bf16.gmra.mrb[12].mxu1 %v1857_v25 }
  0x3e   :  { %1438 = vmatprep.mubr.msk.bf16.mxu0 %vm439_vm0, %v1825_v26  ;;  %1454 = vmatprep.mubr.msk.bf16.mxu1 %vm439_vm0, %v1861_v27 }
  0x45   :  { %601 = vmatmul.mubr.bf16.gmra.mrb[16].mxu0 %v1827_v28  ;;  %729 = vmatmul.mubr.bf16.gmra.mrb[16].mxu1 %v1863_v29 }
  0x46   :  { %1439 = vmatprep.mubr.msk.bf16.mxu0 %vm439_vm0, %v1828_v30  ;;  %1455 = vmatprep.mubr.msk.bf16.mxu1 %vm439_vm0, %v1867_v31 }
  0x4d   :  { %609 = vmatmul.mubr.bf16.gmra.mrb[20].mxu0 %v1830_v32  ;;  %737 = vmatmul.mubr.bf16.gmra.mrb[20].mxu1 %v1869_v33 }
  0x4e   :  { %1440 = vmatprep.mubr.msk.bf16.mxu0 %vm439_vm0, %v1831_v34  ;;  %1456 = vmatprep.mubr.msk.bf16.mxu1 %vm439_vm0, %v1873_v35 }
  0x55   :  { %617 = vmatmul.mubr.bf16.gmra.mrb[24].mxu0 %v1833_v36  ;;  %745 = vmatmul.mubr.bf16.gmra.mrb[24].mxu1 %v1875_v37 }
  0x56   :  { %1441 = vmatprep.mubr.msk.bf16.mxu0 %vm439_vm0, %v1834_v38  ;;  %1457 = vmatprep.mubr.msk.bf16.mxu1 %vm439_vm0, %v1879_v39 }
  0x5d   :  { %625 = vmatmul.mubr.bf16.gmra.mrb[28].mxu0 %v1836_v40  ;;  %753 = vmatmul.mubr.bf16.gmra.mrb[28].mxu1 %v1881_v41 }
  0x5e   :  { %1442 = vmatprep.mubr.msk.bf16.mxu0 %vm439_vm0, %v1840_v42  ;;  %1458 = vmatprep.mubr.msk.bf16.mxu1 %vm439_vm0, %v1885_v43 }
  0x65   :  { %633 = vmatmul.mubr.bf16.gmra.mrb[32].mxu0 %v1842_v44  ;;  %761 = vmatmul.mubr.bf16.gmra.mrb[32].mxu1 %v1887_v45 }
  0x66   :  { %1443 = vmatprep.mubr.msk.bf16.mxu0 %vm439_vm0, %v1846_v46  ;;  %1459 = vmatprep.mubr.msk.bf16.mxu1 %vm439_vm0, %v1888_v47 }
  0x6d   :  { %641 = vmatmul.mubr.bf16.gmra.mrb[36].mxu0 %v1848_v48  ;;  %769 = vmatmul.mubr.bf16.gmra.mrb[36].mxu1 %v1890_v49 }
  0x6e   :  { %1444 = vmatprep.mubr.msk.bf16.mxu0 %vm439_vm0, %v1852_v50  ;;  %1460 = vmatprep.mubr.msk.bf16.mxu1 %vm439_vm0, %v1891_v51 }
  0x75   :  { %649 = vmatmul.mubr.bf16.gmra.mrb[40].mxu0 %v1854_v52  ;;  %777 = vmatmul.mubr.bf16.gmra.mrb[40].mxu1 %v1893_v53 }
  0x76   :  { %1445 = vmatprep.mubr.msk.bf16.mxu0 %vm439_vm0, %v1858_v54  ;;  %1461 = vmatprep.mubr.msk.bf16.mxu1 %vm439_vm0, %v1894_v55 }
  0x7d   :  { %657 = vmatmul.mubr.bf16.gmra.mrb[44].mxu0 %v1860_v56  ;;  %785 = vmatmul.mubr.bf16.gmra.mrb[44].mxu1 %v1896_v57 }
  0x7e   :  { %1446 = vmatprep.mubr.msk.bf16.mxu0 %vm439_vm0, %v1864_v58  ;;  %1462 = vmatprep.mubr.msk.bf16.mxu1 %vm439_vm0, %v1897_v59 }
  0x85   :  { %665 = vmatmul.mubr.bf16.gmra.mrb[48].mxu0 %v1866_v60  ;;  %793 = vmatmul.mubr.bf16.gmra.mrb[48].mxu1 %v1899_v61 }
  0x86   :  { %1447 = vmatprep.mubr.msk.bf16.mxu0 %vm439_vm0, %v1870_v62  ;;  %1463 = vmatprep.mubr.msk.bf16.mxu1 %vm439_vm0, %v1900_v63 }
  0x8d   :  { %673 = vmatmul.mubr.bf16.gmra.mrb[52].mxu0 %v1872_v0  ;;  %801 = vmatmul.mubr.bf16.gmra.mrb[52].mxu1 %v1902_v1 }
  0x8e   :  { %1448 = vmatprep.mubr.msk.bf16.mxu0 %vm439_vm0, %v1876_v2  ;;  %1464 = vmatprep.mubr.msk.bf16.mxu1 %vm439_vm0, %v1903_v3 }
  0x95   :  { %681 = vmatmul.mubr.bf16.gmra.mrb[56].mxu0 %v1878_v4  ;;  %809 = vmatmul.mubr.bf16.gmra.mrb[56].mxu1 %v1905_v5 }
  0x96   :  { %1449 = vmatprep.mubr.msk.bf16.mxu0 %vm439_vm0, %v1882_v6  ;;  %1465 = vmatprep.mubr.msk.bf16.mxu1 %vm439_vm0, %v1906_v7 }
  0x9d   :  { %689 = vmatmul.mubr.bf16.gmra.mrb[60].mxu0 %v1884_v8  ;;  %817 = vmatmul.mubr.bf16.gmra.mrb[60].mxu1 %v1908_v9 }
  0xf8   :  { %v570_v10 = vpop.f32.mrb[0].mxu0  ;;  %v2186_v11 = vpop.f32.mrb[0].mxu1 }
  0xf9   :  { %v572_v12 = vpop.f32.mrb[1].mxu0  ;;  %v700_v13 = vpop.f32.mrb[1].mxu1  ;;  %v1214_v14 = vmul.f32 %v570_v10, %v570_v10 }
  0xfa   :  { %v573_v15 = vpop.f32.mrb[2].mxu0  ;;  %v2188_v16 = vpop.f32.mrb[2].mxu1 }
  0xfb   :  { %v1597_v17 = vpack.c.bf16 %v573_v15, %v570_v10  ;;  %v1145_v18 = vadd.f32 %v573_v15, %v570_v10  ;;  %v1215_v19 = vmul.f32 %v573_v15, %v573_v15  ;;  %v575_v20 = vpop.f32.mrb[3].mxu0  ;;  %v1677_v21 = vpack.c.bf16 %v2188_v16, %v2186_v11  ;;  %v703_v22 = vpop.f32.mrb[3].mxu1 }
  0xfd   :  { %1598 = vst [vmem:[%s2482_s2] sm:$0xff] %v1597_v17   ;;  %v1278_v23 = vadd.f32 %v1215_v19, %v1214_v14  ;;  %1769 = vst [vmem:[%s2482_s2 + $0x80] sm:$0xff] %v1677_v21  }
 0x100   :  { %v578_v24 = vpop.f32.mrb[4].mxu0  ;;  %v2198_v25 = vpop.f32.mrb[4].mxu1 }
 0x101   :  { %v1146_v26 = vadd.f32 %v1145_v18, %v578_v24  ;;  %v1216_v27 = vmul.f32 %v578_v24, %v578_v24  ;;  %v580_v28 = vpop.f32.mrb[5].mxu0  ;;  %v708_v29 = vpop.f32.mrb[5].mxu1 }
 0x102   :  { %v581_v30 = vpop.f32.mrb[6].mxu0  ;;  %v2200_v31 = vpop.f32.mrb[6].mxu1 }
 0x103   :  { %v1279_v32 = vadd.f32 %v1278_v23, %v1216_v27  ;;  %v1602_v33 = vpack.c.bf16 %v581_v30, %v578_v24  ;;  %v1147_v34 = vadd.f32 %v1146_v26, %v581_v30  ;;  %v1217_v35 = vmul.f32 %v581_v30, %v581_v30  ;;  %v583_v36 = vpop.f32.mrb[7].mxu0  ;;  %v711_v37 = vpop.f32.mrb[7].mxu1 }
 0x104   :  { %v1682_v38 = vpack.c.bf16 %v2200_v31, %v2198_v25 }
 0x105   :  { %1754 = vst [vmem:[%s2482_s2 + $0x8] sm:$0xff] %v1602_v33   ;;  %v1280_v39 = vadd.f32 %v1279_v32, %v1217_v35 }
 0x106   :  { %1770 = vst [vmem:[%s2482_s2 + $0x88] sm:$0xff] %v1682_v38  }
 0x108   :  { %v586_v40 = vpop.f32.mrb[8].mxu0  ;;  %v2210_v41 = vpop.f32.mrb[8].mxu1 }
 0x109   :  { %v1148_v42 = vadd.f32 %v1147_v34, %v586_v40  ;;  %v1218_v43 = vmul.f32 %v586_v40, %v586_v40  ;;  %v588_v44 = vpop.f32.mrb[9].mxu0  ;;  %v716_v45 = vpop.f32.mrb[9].mxu1 }
 0x10a   :  { %v589_v46 = vpop.f32.mrb[10].mxu0  ;;  %v2212_v47 = vpop.f32.mrb[10].mxu1 }
 0x10b   :  { %v1281_v48 = vadd.f32 %v1280_v39, %v1218_v43  ;;  %v1607_v49 = vpack.c.bf16 %v589_v46, %v586_v40  ;;  %v1149_v50 = vadd.f32 %v1148_v42, %v589_v46  ;;  %v1219_v51 = vmul.f32 %v589_v46, %v589_v46  ;;  %v591_v52 = vpop.f32.mrb[11].mxu0  ;;  %v719_v53 = vpop.f32.mrb[11].mxu1 }
 0x10c   :  { %v1687_v54 = vpack.c.bf16 %v2212_v47, %v2210_v41 }
 0x10d   :  { %1755 = vst [vmem:[%s2482_s2 + $0x10] sm:$0xff] %v1607_v49   ;;  %v1282_v55 = vadd.f32 %v1281_v48, %v1219_v51 }
 0x10e   :  { %1771 = vst [vmem:[%s2482_s2 + $0x90] sm:$0xff] %v1687_v54  }
 0x110   :  { %v594_v56 = vpop.f32.mrb[12].mxu0  ;;  %v2222_v57 = vpop.f32.mrb[12].mxu1 }
 0x111   :  { %v1150_v58 = vadd.f32 %v1149_v50, %v594_v56  ;;  %v1220_v59 = vmul.f32 %v594_v56, %v594_v56  ;;  %v596_v60 = vpop.f32.mrb[13].mxu0  ;;  %v724_v61 = vpop.f32.mrb[13].mxu1 }
 0x112   :  { %v597_v62 = vpop.f32.mrb[14].mxu0  ;;  %v2224_v63 = vpop.f32.mrb[14].mxu1 }
 0x113   :  { %v1283_v0 = vadd.f32 %v1282_v55, %v1220_v59  ;;  %v1612_v1 = vpack.c.bf16 %v597_v62, %v594_v56  ;;  %v1151_v2 = vadd.f32 %v1150_v58, %v597_v62  ;;  %v1221_v3 = vmul.f32 %v597_v62, %v597_v62  ;;  %v599_v4 = vpop.f32.mrb[15].mxu0  ;;  %v727_v5 = vpop.f32.mrb[15].mxu1 }
 0x114   :  { %v1692_v6 = vpack.c.bf16 %v2224_v63, %v2222_v57 }
 0x115   :  { %1756 = vst [vmem:[%s2482_s2 + $0x18] sm:$0xff] %v1612_v1   ;;  %v1284_v7 = vadd.f32 %v1283_v0, %v1221_v3 }
 0x116   :  { %1772 = vst [vmem:[%s2482_s2 + $0x98] sm:$0xff] %v1692_v6  }
 0x118   :  { %v602_v8 = vpop.f32.mrb[16].mxu0  ;;  %v2234_v9 = vpop.f32.mrb[16].mxu1 }
 0x119   :  { %v1152_v10 = vadd.f32 %v1151_v2, %v602_v8  ;;  %v1222_v12 = vmul.f32 %v602_v8, %v602_v8  ;;  %v604_v13 = vpop.f32.mrb[17].mxu0  ;;  %v732_v14 = vpop.f32.mrb[17].mxu1 }
 0x11a   :  { %v605_v15 = vpop.f32.mrb[18].mxu0  ;;  %v2236_v17 = vpop.f32.mrb[18].mxu1 }
 0x11b   :  { %v1285_v18 = vadd.f32 %v1284_v7, %v1222_v12  ;;  %v1617_v19 = vpack.c.bf16 %v605_v15, %v602_v8  ;;  %v1153_v20 = vadd.f32 %v1152_v10, %v605_v15  ;;  %v1223_v21 = vmul.f32 %v605_v15, %v605_v15  ;;  %v607_v22 = vpop.f32.mrb[19].mxu0  ;;  %v735_v23 = vpop.f32.mrb[19].mxu1 }
 0x11c   :  { %v1697_v24 = vpack.c.bf16 %v2236_v17, %v2234_v9 }
 0x11d   :  { %1757 = vst [vmem:[%s2482_s2 + $0x20] sm:$0xff] %v1617_v19   ;;  %v1286_v26 = vadd.f32 %v1285_v18, %v1223_v21 }
 0x11e   :  { %1773 = vst [vmem:[%s2482_s2 + $0xa0] sm:$0xff] %v1697_v24  }
 0x120   :  { %v610_v27 = vpop.f32.mrb[20].mxu0  ;;  %v2246_v28 = vpop.f32.mrb[20].mxu1 }
 0x121   :  { %v1154_v29 = vadd.f32 %v1153_v20, %v610_v27  ;;  %v1224_v30 = vmul.f32 %v610_v27, %v610_v27  ;;  %v612_v32 = vpop.f32.mrb[21].mxu0  ;;  %v740_v33 = vpop.f32.mrb[21].mxu1 }
 0x122   :  { %v613_v34 = vpop.f32.mrb[22].mxu0  ;;  %v2248_v35 = vpop.f32.mrb[22].mxu1 }
 0x123   :  { %v1287_v36 = vadd.f32 %v1286_v26, %v1224_v30  ;;  %v1622_v37 = vpack.c.bf16 %v613_v34, %v610_v27  ;;  %v1155_v38 = vadd.f32 %v1154_v29, %v613_v34  ;;  %v1225_v39 = vmul.f32 %v613_v34, %v613_v34  ;;  %v615_v40 = vpop.f32.mrb[23].mxu0  ;;  %v743_v42 = vpop.f32.mrb[23].mxu1 }
 0x124   :  { %v1702_v43 = vpack.c.bf16 %v2248_v35, %v2246_v28 }
 0x125   :  { %1758 = vst [vmem:[%s2482_s2 + $0x28] sm:$0xff] %v1622_v37   ;;  %v1288_v44 = vadd.f32 %v1287_v36, %v1225_v39 }
 0x126   :  { %1774 = vst [vmem:[%s2482_s2 + $0xa8] sm:$0xff] %v1702_v43  }
 0x128   :  { %v618_v45 = vpop.f32.mrb[24].mxu0  ;;  %v2258_v46 = vpop.f32.mrb[24].mxu1 }
 0x129   :  { %v1156_v48 = vadd.f32 %v1155_v38, %v618_v45  ;;  %v1226_v49 = vmul.f32 %v618_v45, %v618_v45  ;;  %v620_v50 = vpop.f32.mrb[25].mxu0  ;;  %v748_v51 = vpop.f32.mrb[25].mxu1 }
 0x12a   :  { %v621_v52 = vpop.f32.mrb[26].mxu0  ;;  %v2260_v53 = vpop.f32.mrb[26].mxu1 }
 0x12b   :  { %v1289_v54 = vadd.f32 %v1288_v44, %v1226_v49  ;;  %v1627_v55 = vpack.c.bf16 %v621_v52, %v618_v45  ;;  %v1157_v56 = vadd.f32 %v1156_v48, %v621_v52  ;;  %v1227_v58 = vmul.f32 %v621_v52, %v621_v52  ;;  %v623_v59 = vpop.f32.mrb[27].mxu0  ;;  %v751_v60 = vpop.f32.mrb[27].mxu1 }
 0x12c   :  { %v1707_v61 = vpack.c.bf16 %v2260_v53, %v2258_v46 }
 0x12d   :  { %1759 = vst [vmem:[%s2482_s2 + $0x30] sm:$0xff] %v1627_v55   ;;  %v1290_v62 = vadd.f32 %v1289_v54, %v1227_v58 }
 0x12e   :  { %1775 = vst [vmem:[%s2482_s2 + $0xb0] sm:$0xff] %v1707_v61  }
 0x130   :  { %v626_v0 = vpop.f32.mrb[28].mxu0  ;;  %v2270_v1 = vpop.f32.mrb[28].mxu1 }
 0x131   :  { %v1158_v2 = vadd.f32 %v1157_v56, %v626_v0  ;;  %v1228_v3 = vmul.f32 %v626_v0, %v626_v0  ;;  %v628_v4 = vpop.f32.mrb[29].mxu0  ;;  %v756_v5 = vpop.f32.mrb[29].mxu1 }
 0x132   :  { %v629_v6 = vpop.f32.mrb[30].mxu0  ;;  %v2272_v7 = vpop.f32.mrb[30].mxu1 }
 0x133   :  { %v1291_v8 = vadd.f32 %v1290_v62, %v1228_v3  ;;  %v1632_v10 = vpack.c.bf16 %v629_v6, %v626_v0  ;;  %v1159_v12 = vadd.f32 %v1158_v2, %v629_v6  ;;  %v1229_v13 = vmul.f32 %v629_v6, %v629_v6  ;;  %v631_v14 = vpop.f32.mrb[31].mxu0  ;;  %v759_v15 = vpop.f32.mrb[31].mxu1 }
 0x134   :  { %v1712_v18 = vpack.c.bf16 %v2272_v7, %v2270_v1 }
 0x135   :  { %1760 = vst [vmem:[%s2482_s2 + $0x38] sm:$0xff] %v1632_v10   ;;  %v1292_v19 = vadd.f32 %v1291_v8, %v1229_v13 }
 0x136   :  { %1776 = vst [vmem:[%s2482_s2 + $0xb8] sm:$0xff] %v1712_v18  }
 0x138   :  { %v634_v20 = vpop.f32.mrb[32].mxu0  ;;  %v2282_v21 = vpop.f32.mrb[32].mxu1 }
 0x139   :  { %v1160_v22 = vadd.f32 %v1159_v12, %v634_v20  ;;  %v1230_v23 = vmul.f32 %v634_v20, %v634_v20  ;;  %v636_v24 = vpop.f32.mrb[33].mxu0  ;;  %v764_v26 = vpop.f32.mrb[33].mxu1 }
 0x13a   :  { %v637_v27 = vpop.f32.mrb[34].mxu0  ;;  %v2284_v29 = vpop.f32.mrb[34].mxu1 }
 0x13b   :  { %v1293_v30 = vadd.f32 %v1292_v19, %v1230_v23  ;;  %v1637_v32 = vpack.c.bf16 %v637_v27, %v634_v20  ;;  %v1161_v33 = vadd.f32 %v1160_v22, %v637_v27  ;;  %v1231_v34 = vmul.f32 %v637_v27, %v637_v27  ;;  %v639_v36 = vpop.f32.mrb[35].mxu0  ;;  %v767_v37 = vpop.f32.mrb[35].mxu1 }
 0x13c   :  { %v1717_v38 = vpack.c.bf16 %v2284_v29, %v2282_v21 }
 0x13d   :  { %1761 = vst [vmem:[%s2482_s2 + $0x40] sm:$0xff] %v1637_v32   ;;  %v1294_v39 = vadd.f32 %v1293_v30, %v1231_v34 }
 0x13e   :  { %1777 = vst [vmem:[%s2482_s2 + $0xc0] sm:$0xff] %v1717_v38  }
 0x140   :  { %v642_v40 = vpop.f32.mrb[36].mxu0  ;;  %v2294_v42 = vpop.f32.mrb[36].mxu1 }
 0x141   :  { %v1162_v43 = vadd.f32 %v1161_v33, %v642_v40  ;;  %v1232_v44 = vmul.f32 %v642_v40, %v642_v40  ;;  %v644_v45 = vpop.f32.mrb[37].mxu0  ;;  %v772_v48 = vpop.f32.mrb[37].mxu1 }
 0x142   :  { %v645_v49 = vpop.f32.mrb[38].mxu0  ;;  %v2296_v50 = vpop.f32.mrb[38].mxu1 }
 0x143   :  { %v1295_v51 = vadd.f32 %v1294_v39, %v1232_v44  ;;  %v1642_v52 = vpack.c.bf16 %v645_v49, %v642_v40  ;;  %v1163_v54 = vadd.f32 %v1162_v43, %v645_v49  ;;  %v1233_v55 = vmul.f32 %v645_v49, %v645_v49  ;;  %v647_v56 = vpop.f32.mrb[39].mxu0  ;;  %v775_v58 = vpop.f32.mrb[39].mxu1 }
 0x144   :  { %v1722_v59 = vpack.c.bf16 %v2296_v50, %v2294_v42 }
 0x145   :  { %1762 = vst [vmem:[%s2482_s2 + $0x48] sm:$0xff] %v1642_v52   ;;  %v1296_v60 = vadd.f32 %v1295_v51, %v1233_v55 }
 0x146   :  { %1778 = vst [vmem:[%s2482_s2 + $0xc8] sm:$0xff] %v1722_v59  }
 0x148   :  { %v650_v61 = vpop.f32.mrb[40].mxu0  ;;  %v2306_v62 = vpop.f32.mrb[40].mxu1 }
 0x149   :  { %v1164_v0 = vadd.f32 %v1163_v54, %v650_v61  ;;  %v1234_v2 = vmul.f32 %v650_v61, %v650_v61  ;;  %v652_v3 = vpop.f32.mrb[41].mxu0  ;;  %v780_v4 = vpop.f32.mrb[41].mxu1 }
 0x14a   :  { %v653_v5 = vpop.f32.mrb[42].mxu0  ;;  %v2308_v6 = vpop.f32.mrb[42].mxu1 }
 0x14b   :  { %v1297_v8 = vadd.f32 %v1296_v60, %v1234_v2  ;;  %v1647_v10 = vpack.c.bf16 %v653_v5, %v650_v61  ;;  %v1165_v12 = vadd.f32 %v1164_v0, %v653_v5  ;;  %v1235_v13 = vmul.f32 %v653_v5, %v653_v5  ;;  %v655_v14 = vpop.f32.mrb[43].mxu0  ;;  %v783_v15 = vpop.f32.mrb[43].mxu1 }
 0x14c   :  { %v1727_v18 = vpack.c.bf16 %v2308_v6, %v2306_v62 }
 0x14d   :  { %1763 = vst [vmem:[%s2482_s2 + $0x50] sm:$0xff] %v1647_v10   ;;  %v1298_v19 = vadd.f32 %v1297_v8, %v1235_v13 }
 0x14e   :  { %1779 = vst [vmem:[%s2482_s2 + $0xd0] sm:$0xff] %v1727_v18  }
 0x150   :  { %v658_v20 = vpop.f32.mrb[44].mxu0  ;;  %v2318_v22 = vpop.f32.mrb[44].mxu1 }
 0x151   :  { %v1166_v23 = vadd.f32 %v1165_v12, %v658_v20  ;;  %v1236_v24 = vmul.f32 %v658_v20, %v658_v20  ;;  %v660_v26 = vpop.f32.mrb[45].mxu0  ;;  %v788_v27 = vpop.f32.mrb[45].mxu1 }
 0x152   :  { %v661_v30 = vpop.f32.mrb[46].mxu0  ;;  %v2320_v32 = vpop.f32.mrb[46].mxu1 }
 0x153   :  { %v1299_v33 = vadd.f32 %v1298_v19, %v1236_v24  ;;  %v1652_v34 = vpack.c.bf16 %v661_v30, %v658_v20  ;;  %v1167_v36 = vadd.f32 %v1166_v23, %v661_v30  ;;  %v1237_v37 = vmul.f32 %v661_v30, %v661_v30  ;;  %v663_v38 = vpop.f32.mrb[47].mxu0  ;;  %v791_v39 = vpop.f32.mrb[47].mxu1 }
 0x154   :  { %v1732_v40 = vpack.c.bf16 %v2320_v32, %v2318_v22 }
 0x155   :  { %1764 = vst [vmem:[%s2482_s2 + $0x58] sm:$0xff] %v1652_v34   ;;  %v1300_v43 = vadd.f32 %v1299_v33, %v1237_v37 }
 0x156   :  { %1780 = vst [vmem:[%s2482_s2 + $0xd8] sm:$0xff] %v1732_v40  }
 0x158   :  { %v666_v44 = vpop.f32.mrb[48].mxu0  ;;  %v2330_v45 = vpop.f32.mrb[48].mxu1 }
 0x159   :  { %v1168_v48 = vadd.f32 %v1167_v36, %v666_v44  ;;  %v1238_v49 = vmul.f32 %v666_v44, %v666_v44  ;;  %v668_v51 = vpop.f32.mrb[49].mxu0  ;;  %v796_v52 = vpop.f32.mrb[49].mxu1 }
 0x15a   :  { %v669_v54 = vpop.f32.mrb[50].mxu0  ;;  %v2332_v55 = vpop.f32.mrb[50].mxu1 }
 0x15b   :  { %v1301_v56 = vadd.f32 %v1300_v43, %v1238_v49  ;;  %v1657_v58 = vpack.c.bf16 %v669_v54, %v666_v44  ;;  %v1169_v59 = vadd.f32 %v1168_v48, %v669_v54  ;;  %v1239_v60 = vmul.f32 %v669_v54, %v669_v54  ;;  %v671_v61 = vpop.f32.mrb[51].mxu0  ;;  %v799_v0 = vpop.f32.mrb[51].mxu1 }
 0x15c   :  { %v1737_v2 = vpack.c.bf16 %v2332_v55, %v2330_v45 }
 0x15d   :  { %1765 = vst [vmem:[%s2482_s2 + $0x60] sm:$0xff] %v1657_v58   ;;  %v1302_v3 = vadd.f32 %v1301_v56, %v1239_v60 }
 0x15e   :  { %1781 = vst [vmem:[%s2482_s2 + $0xe0] sm:$0xff] %v1737_v2  }
 0x160   :  { %v674_v4 = vpop.f32.mrb[52].mxu0  ;;  %v2342_v5 = vpop.f32.mrb[52].mxu1 }
 0x161   :  { %v1170_v8 = vadd.f32 %v1169_v59, %v674_v4  ;;  %v1240_v10 = vmul.f32 %v674_v4, %v674_v4  ;;  %v676_v12 = vpop.f32.mrb[53].mxu0  ;;  %v804_v13 = vpop.f32.mrb[53].mxu1 }
 0x162   :  { %v677_v14 = vpop.f32.mrb[54].mxu0  ;;  %v2344_v15 = vpop.f32.mrb[54].mxu1 }
 0x163   :  { %v1303_v18 = vadd.f32 %v1302_v3, %v1240_v10  ;;  %v1662_v19 = vpack.c.bf16 %v677_v14, %v674_v4  ;;  %v1171_v20 = vadd.f32 %v1170_v8, %v677_v14  ;;  %v1241_v23 = vmul.f32 %v677_v14, %v677_v14  ;;  %v679_v24 = vpop.f32.mrb[55].mxu0  ;;  %v807_v26 = vpop.f32.mrb[55].mxu1 }
 0x164   :  { %v1742_v27 = vpack.c.bf16 %v2344_v15, %v2342_v5 }
 0x165   :  { %1766 = vst [vmem:[%s2482_s2 + $0x68] sm:$0xff] %v1662_v19   ;;  %v1304_v30 = vadd.f32 %v1303_v18, %v1241_v23  ;;  %v1246_v23 = vmul.f32 %v2186_v11, %v2186_v11 }
 0x166   :  { %1782 = vst [vmem:[%s2482_s2 + $0xe8] sm:$0xff] %v1742_v27   ;;  %v1247_v27 = vmul.f32 %v2188_v16, %v2188_v16 }
 0x168   :  { %v682_v33 = vpop.f32.mrb[56].mxu0  ;;  %v2354_v34 = vpop.f32.mrb[56].mxu1 }
 0x169   :  { %v1172_v36 = vadd.f32 %v1171_v20, %v682_v33  ;;  %v1242_v37 = vmul.f32 %v682_v33, %v682_v33  ;;  %v684_v38 = vpop.f32.mrb[57].mxu0  ;;  %v812_v39 = vpop.f32.mrb[57].mxu1 }
 0x16a   :  { %v685_v40 = vpop.f32.mrb[58].mxu0  ;;  %v2356_v43 = vpop.f32.mrb[58].mxu1 }
 0x16b   :  { %v1305_v44 = vadd.f32 %v1304_v30, %v1242_v37  ;;  %v1667_v48 = vpack.c.bf16 %v685_v40, %v682_v33  ;;  %v1173_v49 = vadd.f32 %v1172_v36, %v685_v40  ;;  %v1243_v51 = vmul.f32 %v685_v40, %v685_v40  ;;  %v687_v52 = vpop.f32.mrb[59].mxu0  ;;  %v815_v54 = vpop.f32.mrb[59].mxu1 }
 0x16c   :  { %v1747_v56 = vpack.c.bf16 %v2356_v43, %v2354_v34  ;;  %v1248_v36 = vmul.f32 %v2198_v25, %v2198_v25 }
 0x16d   :  { %1767 = vst [vmem:[%s2482_s2 + $0x70] sm:$0xff] %v1667_v48   ;;  %v1306_v58 = vadd.f32 %v1305_v44, %v1243_v51  ;;  %v1250_v44 = vmul.f32 %v2210_v41, %v2210_v41 }
 0x16e   :  { %1783 = vst [vmem:[%s2482_s2 + $0xf0] sm:$0xff] %v1747_v56  }
 0x170   :  { %v690_v59 = vpop.f32.mrb[60].mxu0  ;;  %v2366_v60 = vpop.f32.mrb[60].mxu1 }
 0x171   :  { %v1174_v61 = vadd.f32 %v1173_v49, %v690_v59  ;;  %v1244_v0 = vmul.f32 %v690_v59, %v690_v59  ;;  %v692_v2 = vpop.f32.mrb[61].mxu0  ;;  %v820_v3 = vpop.f32.mrb[61].mxu1 }
 0x172   :  { %v693_v4 = vpop.f32.mrb[62].mxu0  ;;  %v2368_v8 = vpop.f32.mrb[62].mxu1 }
 0x173   :  { %v1307_v10 = vadd.f32 %v1306_v58, %v1244_v0  ;;  %v1672_v12 = vpack.c.bf16 %v693_v4, %v690_v59  ;;  %v1175_v13 = vadd.f32 %v1174_v61, %v693_v4  ;;  %v1245_v14 = vmul.f32 %v693_v4, %v693_v4  ;;  %v695_v18 = vpop.f32.mrb[63].mxu0  ;;  %v823_v19 = vpop.f32.mrb[63].mxu1 }
 0x174   :  { %v1752_v20 = vpack.c.bf16 %v2368_v8, %v2366_v60 }
 0x175   :  { %1768 = vst [vmem:[%s2482_s2 + $0x78] sm:$0xff] %v1672_v12   ;;  %v1176_v24 = vadd.f32 %v1175_v13, %v2186_v11  ;;  %v1308_v26 = vadd.f32 %v1307_v10, %v1245_v14  ;;  %v1249_v11 = vmul.f32 %v2200_v31, %v2200_v31 }
 0x176   :  { %1784 = vst [vmem:[%s2482_s2 + $0xf8] sm:$0xff] %v1752_v20  }
 0x177   :  { %v1177_v30 = vadd.f32 %v1176_v24, %v2188_v16  ;;  %v1309_v33 = vadd.f32 %v1308_v26, %v1246_v23  ;;  %v1251_v16 = vmul.f32 %v2212_v47, %v2212_v47 }
 0x179   :  { %v1178_v37 = vadd.f32 %v1177_v30, %v2198_v25  ;;  %v1310_v38 = vadd.f32 %v1309_v33, %v1247_v27  ;;  %v1252_v25 = vmul.f32 %v2222_v57, %v2222_v57  ;;  %v1262_v30 = vmul.f32 %v2282_v21, %v2282_v21 }
 0x17b   :  { %v1179_v39 = vadd.f32 %v1178_v37, %v2200_v31  ;;  %v1311_v40 = vadd.f32 %v1310_v38, %v1248_v36  ;;  %v1253_v31 = vmul.f32 %v2224_v63, %v2224_v63  ;;  %v1263_v37 = vmul.f32 %v2284_v29, %v2284_v29 }
 0x17d   :  { %v1180_v48 = vadd.f32 %v1179_v39, %v2210_v41  ;;  %v1312_v49 = vadd.f32 %v1311_v40, %v1249_v11  ;;  %v1254_v41 = vmul.f32 %v2234_v9, %v2234_v9  ;;  %v1264_v11 = vmul.f32 %v2294_v42, %v2294_v42 }
 0x17e   :  { %v1265_v40 = vmul.f32 %v2296_v50, %v2296_v50 }
 0x17f   :  { %v1181_v51 = vadd.f32 %v1180_v48, %v2212_v47  ;;  %v1313_v52 = vadd.f32 %v1312_v49, %v1250_v44  ;;  %v1255_v47 = vmul.f32 %v2236_v17, %v2236_v17  ;;  %v1266_v48 = vmul.f32 %v2306_v62, %v2306_v62 }
 0x181   :  { %v1182_v54 = vadd.f32 %v1181_v51, %v2222_v57  ;;  %v1314_v56 = vadd.f32 %v1313_v52, %v1251_v16  ;;  %v1256_v57 = vmul.f32 %v2246_v28, %v2246_v28  ;;  %v1267_v16 = vmul.f32 %v2308_v6, %v2308_v6 }
 0x182   :  { %v1268_v52 = vmul.f32 %v2318_v22, %v2318_v22 }
 0x183   :  { %v1183_v58 = vadd.f32 %v1182_v54, %v2224_v63  ;;  %v1315_v59 = vadd.f32 %v1314_v56, %v1252_v25  ;;  %v1257_v63 = vmul.f32 %v2248_v35, %v2248_v35  ;;  %v1269_v54 = vmul.f32 %v2320_v32, %v2320_v32 }
 0x185   :  { %v1316_v61 = vadd.f32 %v1315_v59, %v1253_v31  ;;  %v1184_v0 = vadd.f32 %v1183_v58, %v2234_v9  ;;  %v1258_v9 = vmul.f32 %v2258_v46, %v2258_v46  ;;  %v1270_v31 = vmul.f32 %v2330_v45, %v2330_v45 }
 0x186   :  { %v1271_v59 = vmul.f32 %v2332_v55, %v2332_v55 }
 0x187   :  { %v1185_v2 = vadd.f32 %v1184_v0, %v2236_v17  ;;  %v1317_v3 = vadd.f32 %v1316_v61, %v1254_v41  ;;  %v1259_v17 = vmul.f32 %v2260_v53, %v2260_v53  ;;  %v1272_v61 = vmul.f32 %v2342_v5, %v2342_v5 }
 0x189   :  { %v1186_v4 = vadd.f32 %v1185_v2, %v2246_v28  ;;  %v1318_v10 = vadd.f32 %v1317_v3, %v1255_v47  ;;  %v1260_v28 = vmul.f32 %v2270_v1, %v2270_v1  ;;  %v1273_v47 = vmul.f32 %v2344_v15, %v2344_v15 }
 0x18a   :  { %v1274_v3 = vmul.f32 %v2354_v34, %v2354_v34 }
 0x18b   :  { %v1187_v12 = vadd.f32 %v1186_v4, %v2248_v35  ;;  %v1319_v13 = vadd.f32 %v1318_v10, %v1256_v57  ;;  %v1261_v35 = vmul.f32 %v2272_v7, %v2272_v7  ;;  %v1275_v4 = vmul.f32 %v2356_v43, %v2356_v43 }
 0x18d   :  { %v1188_v14 = vadd.f32 %v1187_v12, %v2258_v46  ;;  %v1320_v18 = vadd.f32 %v1319_v13, %v1257_v63  ;;  %v1277_v13 = vmul.f32 %v2368_v8, %v2368_v8 }
 0x18f   :  { %v1189_v19 = vadd.f32 %v1188_v14, %v2260_v53  ;;  %v1321_v20 = vadd.f32 %v1320_v18, %v1258_v9 }
 0x191   :  { %v1190_v23 = vadd.f32 %v1189_v19, %v2270_v1  ;;  %v1322_v24 = vadd.f32 %v1321_v20, %v1259_v17 }
 0x193   :  { %v1191_v26 = vadd.f32 %v1190_v23, %v2272_v7  ;;  %v1323_v27 = vadd.f32 %v1322_v24, %v1260_v28 }
 0x195   :  { %v1192_v46 = vadd.f32 %v1191_v26, %v2282_v21  ;;  %v1324_v33 = vadd.f32 %v1323_v27, %v1261_v35 }
 0x197   :  { %v1325_v53 = vadd.f32 %v1324_v33, %v1262_v30  ;;  %v1193_v36 = vadd.f32 %v1192_v46, %v2284_v29 }
 0x199   :  { %v1326_v1 = vadd.f32 %v1325_v53, %v1263_v37  ;;  %v1194_v38 = vadd.f32 %v1193_v36, %v2294_v42 }
 0x19b   :  { %v1327_v7 = vadd.f32 %v1326_v1, %v1264_v11  ;;  %v1195_v39 = vadd.f32 %v1194_v38, %v2296_v50 }
 0x19d   :  { %v1328_v21 = vadd.f32 %v1327_v7, %v1265_v40  ;;  %v1196_v44 = vadd.f32 %v1195_v39, %v2306_v62 }
 0x19f   :  { %v1329_v49 = vadd.f32 %v1328_v21, %v1266_v48  ;;  %v1197_v29 = vadd.f32 %v1196_v44, %v2308_v6 }
 0x1a1   :  { %v1330_v51 = vadd.f32 %v1329_v49, %v1267_v16  ;;  %v1198_v42 = vadd.f32 %v1197_v29, %v2318_v22 }
 0x1a3   :  { %v1331_v25 = vadd.f32 %v1330_v51, %v1268_v52  ;;  %v1199_v50 = vadd.f32 %v1198_v42, %v2320_v32 }
 0x1a5   :  { %v1332_v56 = vadd.f32 %v1331_v25, %v1269_v54  ;;  %v1200_v62 = vadd.f32 %v1199_v50, %v2330_v45 }
 0x1a7   :  { %v1333_v58 = vadd.f32 %v1332_v56, %v1270_v31  ;;  %v1201_v6 = vadd.f32 %v1200_v62, %v2332_v55 }
 0x1a9   :  { %v1334_v41 = vadd.f32 %v1333_v58, %v1271_v59  ;;  %v1202_v22 = vadd.f32 %v1201_v6, %v2342_v5  ;;  %v1276_v5 = vmul.f32 %v2366_v60, %v2366_v60 }
 0x1ab   :  { %v1335_v0 = vadd.f32 %v1334_v41, %v1272_v61  ;;  %v1203_v32 = vadd.f32 %v1202_v22, %v2344_v15 }
 0x1ad   :  { %v1336_v2 = vadd.f32 %v1335_v0, %v1273_v47  ;;  %v1204_v45 = vadd.f32 %v1203_v32, %v2354_v34 }
 0x1af   :  { %v1337_v57 = vadd.f32 %v1336_v2, %v1274_v3  ;;  %v1205_v55 = vadd.f32 %v1204_v45, %v2356_v43 }
 0x1b1   :  { %v1338_v10 = vadd.f32 %v1337_v57, %v1275_v4  ;;  %v1206_v63 = vadd.f32 %v1205_v55, %v2366_v60 }
 0x1b3   :  { %v1339_v12 = vadd.f32 %v1338_v10, %v1276_v5  ;;  %v1207_v15 = vadd.f32 %v1206_v63, %v2368_v8 }
 0x1b5   :  { %v1208_v9 = vrot.slane %v1207_v15, 4  ;;  %v1340_v34 = vadd.f32 %v1339_v12, %v1277_v13 }
 0x1b7   :  { %v1209_v14 = vadd.f32 %v1208_v9, %v1207_v15  ;;  %v1341_v18 = vrot.slane %v1340_v34, 4 }
 0x1b9   :  { %v1210_v17 = vrot.slane %v1209_v14, 2  ;;  %v1342_v19 = vadd.f32 %v1341_v18, %v1340_v34 }
 0x1bb   :  { %v1211_v20 = vadd.f32 %v1210_v17, %v1209_v14  ;;  %v1343_v43 = vrot.slane %v1342_v19, 2 }
 0x1bd   :  { %v1212_v28 = vrot.slane %v1211_v20, 1  ;;  %v1344_v23 = vadd.f32 %v1343_v43, %v1342_v19 }
 0x1bf   :  { %v1213_v24 = vadd.f32 %v1212_v28, %v1211_v20  ;;  %v1345_v35 = vrot.slane %v1344_v23, 1 }
 0x1c1   :  { %v1346_v26 = vadd.f32 %v1345_v35, %v1344_v23  ;;  %1347 = vst [vmem:[%s2483_s3] sm:$0xff] %v1213_v24 }
 0x1c3   :  { %1348 = vst [vmem:[%s2484_s4] sm:$0xff] %v1346_v26 }

// kernel: generator_forward.16
= control target key start
LH: loop header
LB: loop body
LE: loop exit
PB: predicated region body
PF: predicated region fallthrough
CT: control target
= control target key end

     0   :  { %s1502_s0 = inlined_call_operand.vmem [shape: bf16[512,128], index: 0, kind: input, shape index: {}]   ;;  %s1503_s1 = inlined_call_operand.vmem [shape: f32[1,128], index: 1, kind: input, shape index: {}]   ;;  %s1504_s2 = inlined_call_operand.vmem [shape: f32[1,128], index: 2, kind: input, shape index: {}]   ;;  %s1505_s3 = inlined_call_operand.vmem [shape: bf16[512,128], index: 3, kind: output, shape index: {}]  }
   0x1   :  { %v803_v0 = vld [vmem:[%s1502_s0] sm:$0xff]   ;;  %v1090_v4 = vld [vmem:[%s1502_s0 + $0x8] sm:$0xff]   ;;  %v1091_v5 = vld [vmem:[%s1502_s0 + $0x10] sm:$0xff]  }
   0x2   :  { %v1178_v1 = vld [vmem:[%s1503_s1] ss:$0 sm:$0xff]  ;;  %v804_v2 = vunpack.c.l.bf16 %v803_v0  ;;  %v805_v3 = vunpack.c.h.bf16 %v803_v0  ;;  %v1092_v6 = vld [vmem:[%s1502_s0 + $0x18] sm:$0xff]   ;;  %v808_v8 = vunpack.c.l.bf16 %v1090_v4  ;;  %v809_v9 = vunpack.c.h.bf16 %v1090_v4  ;;  %v1094_v33 = vld [vmem:[%s1502_s0 + $0x28] sm:$0xff]  }
   0x3   :  { %v1192_v7 = vld [vmem:[%s1504_s2] ss:$0 sm:$0xff]  ;;  %v812_v10 = vunpack.c.l.bf16 %v1091_v5  ;;  %v813_v11 = vunpack.c.h.bf16 %v1091_v5  ;;  %v816_v14 = vunpack.c.l.bf16 %v1092_v6  ;;  %v817_v15 = vunpack.c.h.bf16 %v1092_v6  ;;  %v1095_v38 = vld [vmem:[%s1502_s0 + $0x30] sm:$0xff]   ;;  %v1096_v43 = vld [vmem:[%s1502_s0 + $0x38] sm:$0xff]  }
   0x4   :  { %v149_v12 = vmul.f32 %v804_v2, %v1178_v1  ;;  %v150_v13 = vmul.f32 %v805_v3, %v1178_v1  ;;  %v151_v16 = vmul.f32 %v808_v8, %v1178_v1  ;;  %v152_v17 = vmul.f32 %v809_v9, %v1178_v1  ;;  %v1093_v28 = vld [vmem:[%s1502_s0 + $0x20] sm:$0xff]  }
   0x5   :  { %v153_v18 = vmul.f32 %v812_v10, %v1178_v1  ;;  %v154_v19 = vmul.f32 %v813_v11, %v1178_v1  ;;  %v155_v22 = vmul.f32 %v816_v14, %v1178_v1  ;;  %v156_v23 = vmul.f32 %v817_v15, %v1178_v1  ;;  %v1097_v0 = vld [vmem:[%s1502_s0 + $0x40] sm:$0xff]   ;;  %v1098_v11 = vld [vmem:[%s1502_s0 + $0x48] sm:$0xff]  }
   0x6   :  { %v220_v20 = vadd.f32 %v1192_v7, %v149_v12  ;;  %v221_v21 = vadd.f32 %v1192_v7, %v150_v13  ;;  %v222_v24 = vadd.f32 %v1192_v7, %v151_v16  ;;  %v223_v25 = vadd.f32 %v1192_v7, %v152_v17  ;;  %v1099_v16 = vld [vmem:[%s1502_s0 + $0x50] sm:$0xff]  }
   0x7   :  { %v224_v26 = vadd.f32 %v1192_v7, %v153_v18  ;;  %v225_v27 = vadd.f32 %v1192_v7, %v154_v19  ;;  %v226_v31 = vadd.f32 %v1192_v7, %v155_v22  ;;  %v227_v32 = vadd.f32 %v1192_v7, %v156_v23 }
   0x8   :  { %v284_v29 = vmax.f32 %v220_v20, 0.0  ;;  %v285_v30 = vmax.f32 %v221_v21, 0.0  ;;  %v286_v34 = vmax.f32 %v222_v24, 0.0  ;;  %v287_v35 = vmax.f32 %v223_v25, 0.0  ;;  %v1100_v25 = vld [vmem:[%s1502_s0 + $0x58] sm:$0xff]  }
   0x9   :  { %v288_v36 = vmax.f32 %v224_v26, 0.0  ;;  %v289_v37 = vmax.f32 %v225_v27, 0.0  ;;  %v290_v40 = vmax.f32 %v226_v31, 0.0  ;;  %v291_v41 = vmax.f32 %v227_v32, 0.0 }
   0xa   :  { %v933_v39 = vpack.c.bf16 %v285_v30, %v284_v29  ;;  %v820_v42 = vunpack.c.l.bf16 %v1093_v28  ;;  %v938_v44 = vpack.c.bf16 %v287_v35, %v286_v34  ;;  %v821_v46 = vunpack.c.h.bf16 %v1093_v28 }
   0xb   :  { %v943_v45 = vpack.c.bf16 %v289_v37, %v288_v36  ;;  %v824_v47 = vunpack.c.l.bf16 %v1094_v33  ;;  %v948_v48 = vpack.c.bf16 %v291_v41, %v290_v40  ;;  %v825_v50 = vunpack.c.h.bf16 %v1094_v33 }
   0xc   :  { %934 = vst [vmem:[%s1505_s3] sm:$0xff] %v933_v39   ;;  %v157_v49 = vmul.f32 %v820_v42, %v1178_v1  ;;  %v828_v51 = vunpack.c.l.bf16 %v1095_v38  ;;  %1121 = vst [vmem:[%s1505_s3 + $0x8] sm:$0xff] %v938_v44   ;;  %v158_v52 = vmul.f32 %v821_v46, %v1178_v1  ;;  %v829_v54 = vunpack.c.h.bf16 %v1095_v38  ;;  %v1101_v38 = vld [vmem:[%s1502_s0 + $0x60] sm:$0xff]  }
   0xd   :  { %1122 = vst [vmem:[%s1505_s3 + $0x10] sm:$0xff] %v943_v45   ;;  %v159_v53 = vmul.f32 %v824_v47, %v1178_v1  ;;  %v832_v55 = vunpack.c.l.bf16 %v1096_v43  ;;  %1123 = vst [vmem:[%s1505_s3 + $0x18] sm:$0xff] %v948_v48   ;;  %v160_v57 = vmul.f32 %v825_v50, %v1178_v1  ;;  %v833_v59 = vunpack.c.h.bf16 %v1096_v43 }
   0xe   :  { %v228_v56 = vadd.f32 %v1192_v7, %v157_v49  ;;  %v161_v58 = vmul.f32 %v828_v51, %v1178_v1  ;;  %v229_v60 = vadd.f32 %v1192_v7, %v158_v52  ;;  %v162_v62 = vmul.f32 %v829_v54, %v1178_v1  ;;  %v1102_v51 = vld [vmem:[%s1502_s0 + $0x68] sm:$0xff]  }
   0xf   :  { %v230_v61 = vadd.f32 %v1192_v7, %v159_v53  ;;  %v163_v63 = vmul.f32 %v832_v55, %v1178_v1  ;;  %v231_v3 = vadd.f32 %v1192_v7, %v160_v57  ;;  %v164_v5 = vmul.f32 %v833_v59, %v1178_v1 }
  0x10   :  { %v292_v2 = vmax.f32 %v228_v56, 0.0  ;;  %v232_v4 = vadd.f32 %v1192_v7, %v161_v58  ;;  %v293_v6 = vmax.f32 %v229_v60, 0.0  ;;  %v233_v9 = vadd.f32 %v1192_v7, %v162_v62  ;;  %v1103_v60 = vld [vmem:[%s1502_s0 + $0x70] sm:$0xff]  }
  0x11   :  { %v294_v8 = vmax.f32 %v230_v61, 0.0  ;;  %v234_v10 = vadd.f32 %v1192_v7, %v163_v63  ;;  %v295_v12 = vmax.f32 %v231_v3, 0.0  ;;  %v235_v14 = vadd.f32 %v1192_v7, %v164_v5 }
  0x12   :  { %v296_v13 = vmax.f32 %v232_v4, 0.0  ;;  %v836_v15 = vunpack.c.l.bf16 %v1097_v0  ;;  %v953_v17 = vpack.c.bf16 %v293_v6, %v292_v2  ;;  %v297_v18 = vmax.f32 %v233_v9, 0.0  ;;  %v1104_v2 = vld [vmem:[%s1502_s0 + $0x78] sm:$0xff]  }
  0x13   :  { %v298_v19 = vmax.f32 %v234_v10, 0.0  ;;  %v837_v20 = vunpack.c.h.bf16 %v1097_v0  ;;  %v958_v21 = vpack.c.bf16 %v295_v12, %v294_v8  ;;  %v299_v22 = vmax.f32 %v235_v14, 0.0  ;;  %v1105_v12 = vld [vmem:[%s1502_s0 + $0x80] sm:$0xff]  }
  0x14   :  { %v165_v23 = vmul.f32 %v836_v15, %v1178_v1  ;;  %v840_v24 = vunpack.c.l.bf16 %v1098_v11  ;;  %1124 = vst [vmem:[%s1505_s3 + $0x20] sm:$0xff] %v953_v17   ;;  %v963_v26 = vpack.c.bf16 %v297_v18, %v296_v13  ;;  %v841_v28 = vunpack.c.h.bf16 %v1098_v11 }
  0x15   :  { %v166_v27 = vmul.f32 %v837_v20, %v1178_v1  ;;  %v844_v29 = vunpack.c.l.bf16 %v1099_v16  ;;  %1125 = vst [vmem:[%s1505_s3 + $0x28] sm:$0xff] %v958_v21   ;;  %v968_v30 = vpack.c.bf16 %v299_v22, %v298_v19  ;;  %v845_v33 = vunpack.c.h.bf16 %v1099_v16 }
  0x16   :  { %v236_v31 = vadd.f32 %v1192_v7, %v165_v23  ;;  %v167_v32 = vmul.f32 %v840_v24, %v1178_v1  ;;  %1126 = vst [vmem:[%s1505_s3 + $0x30] sm:$0xff] %v963_v26   ;;  %v168_v35 = vmul.f32 %v841_v28, %v1178_v1  ;;  %v848_v37 = vunpack.c.l.bf16 %v1100_v25 }
  0x17   :  { %v237_v34 = vadd.f32 %v1192_v7, %v166_v27  ;;  %v169_v36 = vmul.f32 %v844_v29, %v1178_v1  ;;  %1127 = vst [vmem:[%s1505_s3 + $0x38] sm:$0xff] %v968_v30   ;;  %v170_v41 = vmul.f32 %v845_v33, %v1178_v1  ;;  %v849_v42 = vunpack.c.h.bf16 %v1100_v25  ;;  %v1106_v29 = vld [vmem:[%s1502_s0 + $0x88] sm:$0xff]  }
  0x18   :  { %v300_v39 = vmax.f32 %v236_v31, 0.0  ;;  %v238_v40 = vadd.f32 %v1192_v7, %v167_v32  ;;  %v239_v44 = vadd.f32 %v1192_v7, %v168_v35  ;;  %v171_v46 = vmul.f32 %v848_v37, %v1178_v1 }
  0x19   :  { %v301_v43 = vmax.f32 %v237_v34, 0.0  ;;  %v240_v45 = vadd.f32 %v1192_v7, %v169_v36  ;;  %v241_v48 = vadd.f32 %v1192_v7, %v170_v41  ;;  %v172_v49 = vmul.f32 %v849_v42, %v1178_v1  ;;  %v1107_v34 = vld [vmem:[%s1502_s0 + $0x90] sm:$0xff]  }
  0x1a   :  { %v302_v47 = vmax.f32 %v238_v40, 0.0  ;;  %v852_v50 = vunpack.c.l.bf16 %v1101_v38  ;;  %v303_v53 = vmax.f32 %v239_v44, 0.0  ;;  %v242_v55 = vadd.f32 %v1192_v7, %v171_v46 }
  0x1b   :  { %v973_v52 = vpack.c.bf16 %v301_v43, %v300_v39  ;;  %v304_v54 = vmax.f32 %v240_v45, 0.0  ;;  %v305_v56 = vmax.f32 %v241_v48, 0.0  ;;  %v243_v57 = vadd.f32 %v1192_v7, %v172_v49  ;;  %v1108_v43 = vld [vmem:[%s1502_s0 + $0x98] sm:$0xff]  }
  0x1c   :  { %v853_v58 = vunpack.c.h.bf16 %v1101_v38  ;;  %v173_v59 = vmul.f32 %v852_v50, %v1178_v1  ;;  %v978_v61 = vpack.c.bf16 %v303_v53, %v302_v47  ;;  %v306_v62 = vmax.f32 %v242_v55, 0.0 }
  0x1d   :  { %1128 = vst [vmem:[%s1505_s3 + $0x40] sm:$0xff] %v973_v52   ;;  %v856_v63 = vunpack.c.l.bf16 %v1102_v51  ;;  %v857_v0 = vunpack.c.h.bf16 %v1102_v51  ;;  %v983_v3 = vpack.c.bf16 %v305_v56, %v304_v54  ;;  %v307_v4 = vmax.f32 %v243_v57, 0.0  ;;  %v1109_v56 = vld [vmem:[%s1502_s0 + $0xa0] sm:$0xff]  }
  0x1e   :  { %v174_v5 = vmul.f32 %v853_v58, %v1178_v1  ;;  %v244_v6 = vadd.f32 %v1192_v7, %v173_v59  ;;  %1129 = vst [vmem:[%s1505_s3 + $0x48] sm:$0xff] %v978_v61   ;;  %v860_v10 = vunpack.c.l.bf16 %v1103_v60  ;;  %v861_v11 = vunpack.c.h.bf16 %v1103_v60 }
  0x1f   :  { %v175_v8 = vmul.f32 %v856_v63, %v1178_v1  ;;  %v176_v9 = vmul.f32 %v857_v0, %v1178_v1  ;;  %1130 = vst [vmem:[%s1505_s3 + $0x50] sm:$0xff] %v983_v3   ;;  %v988_v13 = vpack.c.bf16 %v307_v4, %v306_v62  ;;  %v864_v16 = vunpack.c.l.bf16 %v1104_v2 }
  0x20   :  { %v245_v14 = vadd.f32 %v1192_v7, %v174_v5  ;;  %v308_v15 = vmax.f32 %v244_v6, 0.0  ;;  %v177_v19 = vmul.f32 %v860_v10, %v1178_v1  ;;  %v178_v20 = vmul.f32 %v861_v11, %v1178_v1 }
  0x21   :  { %v246_v17 = vadd.f32 %v1192_v7, %v175_v8  ;;  %v247_v18 = vadd.f32 %v1192_v7, %v176_v9  ;;  %1131 = vst [vmem:[%s1505_s3 + $0x58] sm:$0xff] %v988_v13   ;;  %v865_v22 = vunpack.c.h.bf16 %v1104_v2  ;;  %v179_v23 = vmul.f32 %v864_v16, %v1178_v1  ;;  %v1110_v2 = vld [vmem:[%s1502_s0 + $0xa8] sm:$0xff]   ;;  %v1111_v16 = vld [vmem:[%s1502_s0 + $0xb0] sm:$0xff]  }
  0x22   :  { %v309_v21 = vmax.f32 %v245_v14, 0.0  ;;  %v868_v24 = vunpack.c.l.bf16 %v1105_v12  ;;  %v248_v27 = vadd.f32 %v1192_v7, %v177_v19  ;;  %v249_v28 = vadd.f32 %v1192_v7, %v178_v20 }
  0x23   :  { %v310_v25 = vmax.f32 %v246_v17, 0.0  ;;  %v311_v26 = vmax.f32 %v247_v18, 0.0  ;;  %v180_v31 = vmul.f32 %v865_v22, %v1178_v1  ;;  %v250_v32 = vadd.f32 %v1192_v7, %v179_v23 }
  0x24   :  { %v993_v30 = vpack.c.bf16 %v309_v21, %v308_v15  ;;  %v869_v33 = vunpack.c.h.bf16 %v1105_v12  ;;  %v312_v36 = vmax.f32 %v248_v27, 0.0  ;;  %v313_v37 = vmax.f32 %v249_v28, 0.0  ;;  %v1112_v21 = vld [vmem:[%s1502_s0 + $0xb8] sm:$0xff]  }
  0x25   :  { %v998_v35 = vpack.c.bf16 %v311_v26, %v310_v25  ;;  %v181_v38 = vmul.f32 %v868_v24, %v1178_v1  ;;  %v251_v39 = vadd.f32 %v1192_v7, %v180_v31  ;;  %v314_v40 = vmax.f32 %v250_v32, 0.0 }
  0x26   :  { %1132 = vst [vmem:[%s1505_s3 + $0x60] sm:$0xff] %v993_v30   ;;  %v182_v41 = vmul.f32 %v869_v33, %v1178_v1  ;;  %v872_v42 = vunpack.c.l.bf16 %v1106_v29  ;;  %v1003_v44 = vpack.c.bf16 %v313_v37, %v312_v36  ;;  %v873_v46 = vunpack.c.h.bf16 %v1106_v29 }
  0x27   :  { %1133 = vst [vmem:[%s1505_s3 + $0x68] sm:$0xff] %v998_v35   ;;  %v252_v45 = vadd.f32 %v1192_v7, %v181_v38  ;;  %v876_v47 = vunpack.c.l.bf16 %v1107_v34  ;;  %v315_v48 = vmax.f32 %v251_v39, 0.0  ;;  %v877_v51 = vunpack.c.h.bf16 %v1107_v34  ;;  %v1113_v34 = vld [vmem:[%s1502_s0 + $0xc0] sm:$0xff]  }
  0x28   :  { %v253_v49 = vadd.f32 %v1192_v7, %v182_v41  ;;  %v183_v50 = vmul.f32 %v872_v42, %v1178_v1  ;;  %1134 = vst [vmem:[%s1505_s3 + $0x70] sm:$0xff] %v1003_v44   ;;  %v184_v53 = vmul.f32 %v873_v46, %v1178_v1  ;;  %v880_v55 = vunpack.c.l.bf16 %v1108_v43 }
  0x29   :  { %v316_v52 = vmax.f32 %v252_v45, 0.0  ;;  %v185_v54 = vmul.f32 %v876_v47, %v1178_v1  ;;  %v1008_v57 = vpack.c.bf16 %v315_v48, %v314_v40  ;;  %v186_v60 = vmul.f32 %v877_v51, %v1178_v1  ;;  %v1114_v47 = vld [vmem:[%s1502_s0 + $0xc8] sm:$0xff]  }
  0x2a   :  { %v317_v58 = vmax.f32 %v253_v49, 0.0  ;;  %v254_v59 = vadd.f32 %v1192_v7, %v183_v50  ;;  %v255_v61 = vadd.f32 %v1192_v7, %v184_v53  ;;  %v881_v63 = vunpack.c.h.bf16 %v1108_v43 }
  0x2b   :  { %v256_v62 = vadd.f32 %v1192_v7, %v185_v54  ;;  %v187_v0 = vmul.f32 %v880_v55, %v1178_v1  ;;  %1135 = vst [vmem:[%s1505_s3 + $0x78] sm:$0xff] %v1008_v57   ;;  %v257_v5 = vadd.f32 %v1192_v7, %v186_v60  ;;  %v884_v6 = vunpack.c.l.bf16 %v1109_v56 }
  0x2c   :  { %v1013_v3 = vpack.c.bf16 %v317_v58, %v316_v52  ;;  %v318_v4 = vmax.f32 %v254_v59, 0.0  ;;  %v319_v8 = vmax.f32 %v255_v61, 0.0  ;;  %v188_v10 = vmul.f32 %v881_v63, %v1178_v1  ;;  %v1115_v52 = vld [vmem:[%s1502_s0 + $0xd0] sm:$0xff]   ;;  %v1116_v61 = vld [vmem:[%s1502_s0 + $0xd8] sm:$0xff]  }
  0x2d   :  { %v320_v9 = vmax.f32 %v256_v62, 0.0  ;;  %v258_v11 = vadd.f32 %v1192_v7, %v187_v0  ;;  %v321_v12 = vmax.f32 %v257_v5, 0.0  ;;  %v885_v13 = vunpack.c.h.bf16 %v1109_v56 }
  0x2e   :  { %1136 = vst [vmem:[%s1505_s3 + $0x80] sm:$0xff] %v1013_v3   ;;  %v189_v14 = vmul.f32 %v884_v6, %v1178_v1  ;;  %v888_v15 = vunpack.c.l.bf16 %v1110_v2  ;;  %v1018_v17 = vpack.c.bf16 %v319_v8, %v318_v4  ;;  %v259_v18 = vadd.f32 %v1192_v7, %v188_v10 }
  0x2f   :  { %v322_v19 = vmax.f32 %v258_v11, 0.0  ;;  %v889_v20 = vunpack.c.h.bf16 %v1110_v2  ;;  %v1023_v22 = vpack.c.bf16 %v321_v12, %v320_v9  ;;  %v190_v23 = vmul.f32 %v885_v13, %v1178_v1  ;;  %v1117_v12 = vld [vmem:[%s1502_s0 + $0xe0] sm:$0xff]  }
  0x30   :  { %v260_v24 = vadd.f32 %v1192_v7, %v189_v14  ;;  %v191_v25 = vmul.f32 %v888_v15, %v1178_v1  ;;  %1137 = vst [vmem:[%s1505_s3 + $0x88] sm:$0xff] %v1018_v17   ;;  %v323_v26 = vmax.f32 %v259_v18, 0.0  ;;  %v892_v28 = vunpack.c.l.bf16 %v1111_v16 }
  0x31   :  { %v192_v27 = vmul.f32 %v889_v20, %v1178_v1  ;;  %v893_v29 = vunpack.c.h.bf16 %v1111_v16  ;;  %1138 = vst [vmem:[%s1505_s3 + $0x90] sm:$0xff] %v1023_v22   ;;  %v261_v30 = vadd.f32 %v1192_v7, %v190_v23  ;;  %v896_v33 = vunpack.c.l.bf16 %v1112_v21 }
  0x32   :  { %v324_v31 = vmax.f32 %v260_v24, 0.0  ;;  %v262_v32 = vadd.f32 %v1192_v7, %v191_v25  ;;  %v1028_v35 = vpack.c.bf16 %v323_v26, %v322_v19  ;;  %v193_v37 = vmul.f32 %v892_v28, %v1178_v1 }
  0x33   :  { %v263_v36 = vadd.f32 %v1192_v7, %v192_v27  ;;  %v194_v38 = vmul.f32 %v893_v29, %v1178_v1  ;;  %v325_v39 = vmax.f32 %v261_v30, 0.0  ;;  %v897_v41 = vunpack.c.h.bf16 %v1112_v21  ;;  %v1118_v21 = vld [vmem:[%s1502_s0 + $0xe8] sm:$0xff]  }
  0x34   :  { %v326_v40 = vmax.f32 %v262_v32, 0.0  ;;  %v195_v42 = vmul.f32 %v896_v33, %v1178_v1  ;;  %1139 = vst [vmem:[%s1505_s3 + $0x98] sm:$0xff] %v1028_v35   ;;  %v264_v44 = vadd.f32 %v1192_v7, %v193_v37  ;;  %v900_v46 = vunpack.c.l.bf16 %v1113_v34 }
  0x35   :  { %v327_v43 = vmax.f32 %v263_v36, 0.0  ;;  %v265_v45 = vadd.f32 %v1192_v7, %v194_v38  ;;  %v1033_v48 = vpack.c.bf16 %v325_v39, %v324_v31  ;;  %v196_v49 = vmul.f32 %v897_v41, %v1178_v1  ;;  %v1120_v39 = vld [vmem:[%s1502_s0 + $0xf8] sm:$0xff]  }
  0x36   :  { %v266_v50 = vadd.f32 %v1192_v7, %v195_v42  ;;  %v901_v51 = vunpack.c.h.bf16 %v1113_v34  ;;  %v328_v54 = vmax.f32 %v264_v44, 0.0  ;;  %v197_v56 = vmul.f32 %v900_v46, %v1178_v1  ;;  %v1119_v34 = vld [vmem:[%s1502_s0 + $0xf0] sm:$0xff]  }
  0x37   :  { %v1038_v53 = vpack.c.bf16 %v327_v43, %v326_v40  ;;  %v329_v55 = vmax.f32 %v265_v45, 0.0  ;;  %1140 = vst [vmem:[%s1505_s3 + $0xa0] sm:$0xff] %v1033_v48   ;;  %v267_v57 = vadd.f32 %v1192_v7, %v196_v49  ;;  %v904_v60 = vunpack.c.l.bf16 %v1114_v47 }
  0x38   :  { %v330_v58 = vmax.f32 %v266_v50, 0.0  ;;  %v198_v59 = vmul.f32 %v901_v51, %v1178_v1  ;;  %v268_v63 = vadd.f32 %v1192_v7, %v197_v56  ;;  %v905_v0 = vunpack.c.h.bf16 %v1114_v47 }
  0x39   :  { %1141 = vst [vmem:[%s1505_s3 + $0xa8] sm:$0xff] %v1038_v53   ;;  %v1043_v62 = vpack.c.bf16 %v329_v55, %v328_v54  ;;  %v908_v2 = vunpack.c.l.bf16 %v1115_v52  ;;  %v331_v3 = vmax.f32 %v267_v57, 0.0  ;;  %v199_v5 = vmul.f32 %v904_v60, %v1178_v1 }
  0x3a   :  { %v269_v4 = vadd.f32 %v1192_v7, %v198_v59  ;;  %v909_v6 = vunpack.c.h.bf16 %v1115_v52  ;;  %v332_v8 = vmax.f32 %v268_v63, 0.0  ;;  %v200_v9 = vmul.f32 %v905_v0, %v1178_v1 }
  0x3b   :  { %1142 = vst [vmem:[%s1505_s3 + $0xb0] sm:$0xff] %v1043_v62   ;;  %v201_v10 = vmul.f32 %v908_v2, %v1178_v1  ;;  %v912_v11 = vunpack.c.l.bf16 %v1116_v61  ;;  %v1048_v13 = vpack.c.bf16 %v331_v3, %v330_v58  ;;  %v270_v15 = vadd.f32 %v1192_v7, %v199_v5 }
  0x3c   :  { %v333_v14 = vmax.f32 %v269_v4, 0.0  ;;  %v202_v16 = vmul.f32 %v909_v6, %v1178_v1  ;;  %v271_v17 = vadd.f32 %v1192_v7, %v200_v9  ;;  %v913_v19 = vunpack.c.h.bf16 %v1116_v61 }
  0x3d   :  { %v272_v18 = vadd.f32 %v1192_v7, %v201_v10  ;;  %v203_v20 = vmul.f32 %v912_v11, %v1178_v1  ;;  %1143 = vst [vmem:[%s1505_s3 + $0xb8] sm:$0xff] %v1048_v13   ;;  %v334_v23 = vmax.f32 %v270_v15, 0.0  ;;  %v916_v25 = vunpack.c.l.bf16 %v1117_v12 }
  0x3e   :  { %v1053_v22 = vpack.c.bf16 %v333_v14, %v332_v8  ;;  %v273_v24 = vadd.f32 %v1192_v7, %v202_v16  ;;  %v335_v26 = vmax.f32 %v271_v17, 0.0  ;;  %v204_v28 = vmul.f32 %v913_v19, %v1178_v1 }
  0x3f   :  { %v336_v27 = vmax.f32 %v272_v18, 0.0  ;;  %v274_v29 = vadd.f32 %v1192_v7, %v203_v20  ;;  %v917_v31 = vunpack.c.h.bf16 %v1117_v12  ;;  %v205_v32 = vmul.f32 %v916_v25, %v1178_v1 }
  0x40   :  { %1144 = vst [vmem:[%s1505_s3 + $0xc0] sm:$0xff] %v1053_v22   ;;  %v337_v30 = vmax.f32 %v273_v24, 0.0  ;;  %v920_v33 = vunpack.c.l.bf16 %v1118_v21  ;;  %v1058_v35 = vpack.c.bf16 %v335_v26, %v334_v23  ;;  %v275_v36 = vadd.f32 %v1192_v7, %v204_v28 }
  0x41   :  { %v338_v37 = vmax.f32 %v274_v29, 0.0  ;;  %v921_v38 = vunpack.c.h.bf16 %v1118_v21  ;;  %v206_v41 = vmul.f32 %v917_v31, %v1178_v1  ;;  %v276_v42 = vadd.f32 %v1192_v7, %v205_v32 }
  0x42   :  { %v1063_v40 = vpack.c.bf16 %v337_v30, %v336_v27  ;;  %v207_v43 = vmul.f32 %v920_v33, %v1178_v1  ;;  %1145 = vst [vmem:[%s1505_s3 + $0xc8] sm:$0xff] %v1058_v35   ;;  %v339_v44 = vmax.f32 %v275_v36, 0.0  ;;  %v924_v46 = vunpack.c.l.bf16 %v1119_v34 }
  0x43   :  { %v208_v45 = vmul.f32 %v921_v38, %v1178_v1  ;;  %v925_v47 = vunpack.c.h.bf16 %v1119_v34  ;;  %v277_v48 = vadd.f32 %v1192_v7, %v206_v41  ;;  %v340_v49 = vmax.f32 %v276_v42, 0.0 }
  0x44   :  { %1146 = vst [vmem:[%s1505_s3 + $0xd0] sm:$0xff] %v1063_v40   ;;  %v278_v50 = vadd.f32 %v1192_v7, %v207_v43  ;;  %v928_v51 = vunpack.c.l.bf16 %v1120_v39  ;;  %v1068_v52 = vpack.c.bf16 %v339_v44, %v338_v37  ;;  %v209_v54 = vmul.f32 %v924_v46, %v1178_v1 }
  0x45   :  { %v279_v53 = vadd.f32 %v1192_v7, %v208_v45  ;;  %v210_v55 = vmul.f32 %v925_v47, %v1178_v1  ;;  %v341_v56 = vmax.f32 %v277_v48, 0.0  ;;  %v929_v58 = vunpack.c.h.bf16 %v1120_v39 }
  0x46   :  { %v342_v57 = vmax.f32 %v278_v50, 0.0  ;;  %v211_v59 = vmul.f32 %v928_v51, %v1178_v1  ;;  %1147 = vst [vmem:[%s1505_s3 + $0xd8] sm:$0xff] %v1068_v52   ;;  %v280_v61 = vadd.f32 %v1192_v7, %v209_v54 }
  0x47   :  { %v343_v60 = vmax.f32 %v279_v53, 0.0  ;;  %v281_v62 = vadd.f32 %v1192_v7, %v210_v55  ;;  %v1073_v63 = vpack.c.bf16 %v341_v56, %v340_v49  ;;  %v212_v0 = vmul.f32 %v929_v58, %v1178_v1 }
  0x48   :  { %v282_v2 = vadd.f32 %v1192_v7, %v211_v59  ;;  %v344_v4 = vmax.f32 %v280_v61, 0.0 }
  0x49   :  { %v1078_v3 = vpack.c.bf16 %v343_v60, %v342_v57  ;;  %v345_v5 = vmax.f32 %v281_v62, 0.0  ;;  %1148 = vst [vmem:[%s1505_s3 + $0xe0] sm:$0xff] %v1073_v63   ;;  %v283_v6 = vadd.f32 %v1192_v7, %v212_v0 }
  0x4a   :  { %v346_v8 = vmax.f32 %v282_v2, 0.0 }
  0x4b   :  { %1149 = vst [vmem:[%s1505_s3 + $0xe8] sm:$0xff] %v1078_v3   ;;  %v1083_v9 = vpack.c.bf16 %v345_v5, %v344_v4  ;;  %v347_v10 = vmax.f32 %v283_v6, 0.0 }
  0x4d   :  { %1150 = vst [vmem:[%s1505_s3 + $0xf0] sm:$0xff] %v1083_v9   ;;  %v1088_v1 = vpack.c.bf16 %v347_v10, %v346_v8 }
  0x4f   :  { %1151 = vst [vmem:[%s1505_s3 + $0xf8] sm:$0xff] %v1088_v1  }

// kernel: generator_forward.17
= control target key start
LH: loop header
LB: loop body
LE: loop exit
PB: predicated region body
PF: predicated region fallthrough
CT: control target
= control target key end

     0   :  { %s3556_s9 = smov 0   ;;  %s3791_s0 = inlined_call_operand.vmem [shape: bf16[2048,72], index: 0, kind: input, shape index: {}]   ;;  %s3792_s1 = inlined_call_operand.vmem [shape: bf16[72,128], index: 1, kind: input, shape index: {}]   ;;  %s3793_s2 = inlined_call_operand.vmem [shape: bf16[2048,128], index: 2, kind: output, shape index: {}]  }
   0x1 LB: > { %s2198_s10 = sadd.s32 4294967295, %s3539_s9   ;;  %p2202_p0 = scmp.ge.s32.totalorder %s3539_s9, 1  ;;  %s3539_s9 = sphi %s3556_s9, %s12_s9  }
   0x2   : > { %p113_p1 = scmp.lt.s32.totalorder %s3539_s9, 3 }
   0x4   : > { %p114_p2 = pnand %p2202_p0, %p113_p1 }
   0x5   : > { %v3208_v0 = vld [vmem:[%s3792_s1] sm:$0xff] (!%p114_p2)   ;;  %v3209_v1 = vld [vmem:[%s3792_s1 + $0x8] sm:$0xff] (!%p114_p2)   ;;  %s2203_s15 = sshll.u32 (!%p114_p2), %s2198_s10, 7  ;;  %v3210_v2 = vld [vmem:[%s3792_s1 + $0x10] sm:$0xff] (!%p114_p2)   ;;  %vm632_vm0 = vcmask (!%p114_p2), 588800   ;;  %vm825_vm1 = vcmask (!%p114_p2), 1043456  }
   0x6   : > { %117 = sbr.rel (%p114_p2) target bundleno = 382 (0x17e), region = 28  ;;  %3050 = vmatprep.subr.bf16.mxu0 (!%p114_p2), %v3208_v0  ;;  %3188 = vmatprep.subr.bf16.mxu1 (!%p114_p2), %v3208_v0  ;;  %p136_p3 = scmp.lt.s32.totalorder (!%p114_p2), %s2203_s15, 255  ;;  %v3211_v3 = vld [vmem:[%s3792_s1 + $0x18] sm:$0xff] (!%p114_p2)   ;;  %v3212_v6 = vld [vmem:[%s3792_s1 + $0x20] ss:$0 sps:$4 sm:$0xff] (!%p114_p2)  }
   0x7   : > { %3051 = vmatpush3.bf16.msra.mxu0 (!%p114_p2), %v3208_v0  ;;  %3193 = vmatpush3.bf16.msra.mxu1 (!%p114_p2), %v3208_v0  ;;  %v827_v7 = vsel (!%p114_p2), %vm825_vm1, %v3212_v6, 0 }
   0x8   : > { %3052 = vmatprep.subr.bf16.mxu0 (!%p114_p2), %v3209_v1  ;;  %3189 = vmatprep.subr.bf16.mxu1 (!%p114_p2), %v3209_v1 }
   0xb   : > { %3053 = vmatpush3.bf16.msra.mxu0 (!%p114_p2), %v3209_v1  ;;  %3194 = vmatpush3.bf16.msra.mxu1 (!%p114_p2), %v3209_v1 }
   0xc   : > { %3054 = vmatprep.subr.bf16.mxu0 (!%p114_p2), %v3210_v2  ;;  %3190 = vmatprep.subr.bf16.mxu1 (!%p114_p2), %v3210_v2 }
   0xd   : > { %s3795_s15 = smov (!%p136_p3, %s2203_s15), 255 }
   0xe   : > { %s2204_s18 = sshll.u32 %s3795_s15, 2 }
   0xf   : > { %s3584_s23 = scalar_lea.vmem %s3791_s0, %s2204_s18  ;;  %3055 = vmatpush3.bf16.msra.mxu0 %v3210_v2  ;;  %3195 = vmatpush3.bf16.msra.mxu1 %v3210_v2  ;;  %s3722_s28 = scalar_lea.vmem %s3793_s2, %s2204_s18 }
  0x10   : > { %v3213_v4 = vld [vmem:[%s3584_s23] sm:$0xff]   ;;  %3056 = vmatprep.subr.bf16.mxu0 %v3211_v3  ;;  %3191 = vmatprep.subr.bf16.mxu1 %v3211_v3  ;;  %v3215_v8 = vld [vmem:[%s3584_s23 + $0x8] sm:$0xff]   ;;  %v3217_v10 = vld [vmem:[%s3584_s23 + $0x10] sm:$0xff]  }
  0x11   : > { %v3214_v5 = vld [vmem:[%s3584_s23 + $0x100] sm:$0xff]   ;;  %3060 = vmatprep.mubr.msk.bf16.mxu0 %vm632_vm0, %v3213_v4  ;;  %v3216_v9 = vld [vmem:[%s3584_s23 + $0x108] sm:$0xff]   ;;  %v3218_v11 = vld [vmem:[%s3584_s23 + $0x110] sm:$0xff]  }
  0x12   : > { %3124 = vmatprep.mubr.msk.bf16.mxu1 %vm632_vm0, %v3214_v5  ;;  %v3219_v12 = vld [vmem:[%s3584_s23 + $0x18] sm:$0xff]   ;;  %v3221_v14 = vld [vmem:[%s3584_s23 + $0x20] sm:$0xff]   ;;  %v3223_v16 = vld [vmem:[%s3584_s23 + $0x28] sm:$0xff]  }
  0x13   : > { %3057 = vmatpush3.bf16.msra.mxu0 %v3211_v3  ;;  %3196 = vmatpush3.bf16.msra.mxu1 %v3211_v3  ;;  %v3220_v13 = vld [vmem:[%s3584_s23 + $0x118] sm:$0xff]   ;;  %v3222_v15 = vld [vmem:[%s3584_s23 + $0x120] sm:$0xff]   ;;  %v3224_v17 = vld [vmem:[%s3584_s23 + $0x128] sm:$0xff]  }
  0x14   : > { %3198 = vmatprep.subr.msk.bf16.mxu0 %vm825_vm1, %v3212_v6  ;;  %3199 = vmatprep.subr.msk.bf16.mxu1 %vm825_vm1, %v3212_v6  ;;  %v3225_v18 = vld [vmem:[%s3584_s23 + $0x30] sm:$0xff]   ;;  %v3227_v20 = vld [vmem:[%s3584_s23 + $0x38] sm:$0xff]   ;;  %v3229_v22 = vld [vmem:[%s3584_s23 + $0x40] sm:$0xff]  }
  0x15   : > { %v3226_v19 = vld [vmem:[%s3584_s23 + $0x130] sm:$0xff]   ;;  %v3228_v21 = vld [vmem:[%s3584_s23 + $0x138] sm:$0xff]   ;;  %v3230_v23 = vld [vmem:[%s3584_s23 + $0x140] sm:$0xff]  }
  0x16   : > { %v3231_v24 = vld [vmem:[%s3584_s23 + $0x48] sm:$0xff]   ;;  %v3233_v26 = vld [vmem:[%s3584_s23 + $0x50] sm:$0xff]   ;;  %v3235_v28 = vld [vmem:[%s3584_s23 + $0x58] sm:$0xff]  }
  0x17   : > { %3059 = vmatpush3.bf16.msra.mxu0 %v827_v7  ;;  %3197 = vmatpush3.bf16.msra.mxu1 %v827_v7  ;;  %v3232_v25 = vld [vmem:[%s3584_s23 + $0x148] sm:$0xff]   ;;  %v3234_v27 = vld [vmem:[%s3584_s23 + $0x150] sm:$0xff]   ;;  %v3236_v29 = vld [vmem:[%s3584_s23 + $0x158] sm:$0xff]  }
  0x18   : > { %v3237_v30 = vld [vmem:[%s3584_s23 + $0x60] sm:$0xff]   ;;  %v3239_v32 = vld [vmem:[%s3584_s23 + $0x68] sm:$0xff]   ;;  %v3241_v34 = vld [vmem:[%s3584_s23 + $0x70] sm:$0xff]  }
  0x19   : > { %v3238_v31 = vld [vmem:[%s3584_s23 + $0x160] sm:$0xff]   ;;  %v3240_v33 = vld [vmem:[%s3584_s23 + $0x168] sm:$0xff]   ;;  %v3242_v35 = vld [vmem:[%s3584_s23 + $0x170] sm:$0xff]  }
  0x1a   : > { %3061 = vmatmul.mubr.msk.bf16.vlgmr.msra.gmra.mrb[0].mxu0 %vm632_vm0, %v3215_v8  ;;  %3125 = vmatmul.mubr.msk.bf16.vlgmr.msra.gmra.mrb[0].mxu1 %vm632_vm0, %v3216_v9  ;;  %v3243_v36 = vld [vmem:[%s3584_s23 + $0x78] sm:$0xff]   ;;  %v3245_v38 = vld [vmem:[%s3584_s23 + $0x80] sm:$0xff]   ;;  %v3247_v40 = vld [vmem:[%s3584_s23 + $0x88] sm:$0xff]  }
  0x1b   : > { %3064 = vmatprep.mubr.msk.bf16.mxu0 %vm632_vm0, %v3217_v10  ;;  %3128 = vmatprep.mubr.msk.bf16.mxu1 %vm632_vm0, %v3218_v11  ;;  %v3244_v37 = vld [vmem:[%s3584_s23 + $0x178] sm:$0xff]   ;;  %v3246_v39 = vld [vmem:[%s3584_s23 + $0x180] sm:$0xff]   ;;  %v3248_v41 = vld [vmem:[%s3584_s23 + $0x188] sm:$0xff]  }
  0x1c   : > { %v3249_v42 = vld [vmem:[%s3584_s23 + $0x90] sm:$0xff]   ;;  %v3251_v44 = vld [vmem:[%s3584_s23 + $0x98] sm:$0xff]   ;;  %v3253_v46 = vld [vmem:[%s3584_s23 + $0xa0] sm:$0xff]  }
  0x1d   : > { %v3250_v43 = vld [vmem:[%s3584_s23 + $0x190] sm:$0xff]   ;;  %v3252_v45 = vld [vmem:[%s3584_s23 + $0x198] sm:$0xff]   ;;  %v3254_v47 = vld [vmem:[%s3584_s23 + $0x1a0] sm:$0xff]  }
  0x1e   : > { %v3255_v48 = vld [vmem:[%s3584_s23 + $0xa8] sm:$0xff]   ;;  %v3257_v50 = vld [vmem:[%s3584_s23 + $0xb0] sm:$0xff]   ;;  %v3259_v52 = vld [vmem:[%s3584_s23 + $0xb8] sm:$0xff]  }
  0x1f   : > { %v3256_v49 = vld [vmem:[%s3584_s23 + $0x1a8] sm:$0xff]   ;;  %v3258_v51 = vld [vmem:[%s3584_s23 + $0x1b0] sm:$0xff]   ;;  %v3260_v53 = vld [vmem:[%s3584_s23 + $0x1b8] sm:$0xff]  }
  0x20   : > { %v3261_v54 = vld [vmem:[%s3584_s23 + $0xc0] sm:$0xff]   ;;  %v3263_v56 = vld [vmem:[%s3584_s23 + $0xc8] sm:$0xff]   ;;  %v3265_v58 = vld [vmem:[%s3584_s23 + $0xd0] sm:$0xff]  }
  0x21   : > { %v3262_v55 = vld [vmem:[%s3584_s23 + $0x1c0] sm:$0xff]   ;;  %v3264_v57 = vld [vmem:[%s3584_s23 + $0x1c8] sm:$0xff]   ;;  %v3266_v59 = vld [vmem:[%s3584_s23 + $0x1d0] sm:$0xff]  }
  0x22   : > { %3065 = vmatmul.mubr.msk.bf16.gmra.mrb[4].mxu0 %vm632_vm0, %v3219_v12  ;;  %3129 = vmatmul.mubr.msk.bf16.gmra.mrb[4].mxu1 %vm632_vm0, %v3220_v13  ;;  %v3267_v60 = vld [vmem:[%s3584_s23 + $0xd8] sm:$0xff]   ;;  %v3269_v62 = vld [vmem:[%s3584_s23 + $0xe0] sm:$0xff]   ;;  %v3271_v0 = vld [vmem:[%s3584_s23 + $0xe8] sm:$0xff]  }
  0x23   : > { %3068 = vmatprep.mubr.msk.bf16.mxu0 %vm632_vm0, %v3221_v14  ;;  %3132 = vmatprep.mubr.msk.bf16.mxu1 %vm632_vm0, %v3222_v15  ;;  %v3268_v61 = vld [vmem:[%s3584_s23 + $0x1d8] sm:$0xff]   ;;  %v3270_v63 = vld [vmem:[%s3584_s23 + $0x1e0] sm:$0xff]   ;;  %v3272_v1 = vld [vmem:[%s3584_s23 + $0x1e8] sm:$0xff]  }
  0x24   : > { %v3273_v2 = vld [vmem:[%s3584_s23 + $0xf0] sm:$0xff]   ;;  %v3275_v4 = vld [vmem:[%s3584_s23 + $0xf8] sm:$0xff]  }
  0x25   : > { %v3274_v3 = vld [vmem:[%s3584_s23 + $0x1f0] sm:$0xff]   ;;  %v3276_v5 = vld [vmem:[%s3584_s23 + $0x1f8] sm:$0xff]  }
  0x2a   : > { %3069 = vmatmul.mubr.msk.bf16.gmra.mrb[8].mxu0 %vm632_vm0, %v3223_v16  ;;  %3133 = vmatmul.mubr.msk.bf16.gmra.mrb[8].mxu1 %vm632_vm0, %v3224_v17 }
  0x2b   : > { %3072 = vmatprep.mubr.msk.bf16.mxu0 %vm632_vm0, %v3225_v18  ;;  %3136 = vmatprep.mubr.msk.bf16.mxu1 %vm632_vm0, %v3226_v19 }
  0x32   : > { %3073 = vmatmul.mubr.msk.bf16.gmra.mrb[12].mxu0 %vm632_vm0, %v3227_v20  ;;  %3137 = vmatmul.mubr.msk.bf16.gmra.mrb[12].mxu1 %vm632_vm0, %v3228_v21 }
  0x33   : > { %3076 = vmatprep.mubr.msk.bf16.mxu0 %vm632_vm0, %v3229_v22  ;;  %3140 = vmatprep.mubr.msk.bf16.mxu1 %vm632_vm0, %v3230_v23 }
  0x3a   : > { %3077 = vmatmul.mubr.msk.bf16.gmra.mrb[16].mxu0 %vm632_vm0, %v3231_v24  ;;  %3141 = vmatmul.mubr.msk.bf16.gmra.mrb[16].mxu1 %vm632_vm0, %v3232_v25 }
  0x3b   : > { %3080 = vmatprep.mubr.msk.bf16.mxu0 %vm632_vm0, %v3233_v26  ;;  %3144 = vmatprep.mubr.msk.bf16.mxu1 %vm632_vm0, %v3234_v27 }
  0x42   : > { %3081 = vmatmul.mubr.msk.bf16.gmra.mrb[20].mxu0 %vm632_vm0, %v3235_v28  ;;  %3145 = vmatmul.mubr.msk.bf16.gmra.mrb[20].mxu1 %vm632_vm0, %v3236_v29 }
  0x43   : > { %3084 = vmatprep.mubr.msk.bf16.mxu0 %vm632_vm0, %v3237_v30  ;;  %3148 = vmatprep.mubr.msk.bf16.mxu1 %vm632_vm0, %v3238_v31 }
  0x4a   : > { %3085 = vmatmul.mubr.msk.bf16.gmra.mrb[24].mxu0 %vm632_vm0, %v3239_v32  ;;  %3149 = vmatmul.mubr.msk.bf16.gmra.mrb[24].mxu1 %vm632_vm0, %v3240_v33 }
  0x4b   : > { %3088 = vmatprep.mubr.msk.bf16.mxu0 %vm632_vm0, %v3241_v34  ;;  %3152 = vmatprep.mubr.msk.bf16.mxu1 %vm632_vm0, %v3242_v35 }
  0x52   : > { %3089 = vmatmul.mubr.msk.bf16.gmra.mrb[28].mxu0 %vm632_vm0, %v3243_v36  ;;  %3153 = vmatmul.mubr.msk.bf16.gmra.mrb[28].mxu1 %vm632_vm0, %v3244_v37 }
  0x53   : > { %3092 = vmatprep.mubr.msk.bf16.mxu0 %vm632_vm0, %v3245_v38  ;;  %3156 = vmatprep.mubr.msk.bf16.mxu1 %vm632_vm0, %v3246_v39 }
  0x5a   : > { %3093 = vmatmul.mubr.msk.bf16.gmra.mrb[32].mxu0 %vm632_vm0, %v3247_v40  ;;  %3157 = vmatmul.mubr.msk.bf16.gmra.mrb[32].mxu1 %vm632_vm0, %v3248_v41 }
  0x5b   : > { %3096 = vmatprep.mubr.msk.bf16.mxu0 %vm632_vm0, %v3249_v42  ;;  %3160 = vmatprep.mubr.msk.bf16.mxu1 %vm632_vm0, %v3250_v43 }
  0x62   : > { %3097 = vmatmul.mubr.msk.bf16.gmra.mrb[36].mxu0 %vm632_vm0, %v3251_v44  ;;  %3161 = vmatmul.mubr.msk.bf16.gmra.mrb[36].mxu1 %vm632_vm0, %v3252_v45 }
  0x63   : > { %3100 = vmatprep.mubr.msk.bf16.mxu0 %vm632_vm0, %v3253_v46  ;;  %3164 = vmatprep.mubr.msk.bf16.mxu1 %vm632_vm0, %v3254_v47 }
  0x6a   : > { %3101 = vmatmul.mubr.msk.bf16.gmra.mrb[40].mxu0 %vm632_vm0, %v3255_v48  ;;  %3165 = vmatmul.mubr.msk.bf16.gmra.mrb[40].mxu1 %vm632_vm0, %v3256_v49 }
  0x6b   : > { %3104 = vmatprep.mubr.msk.bf16.mxu0 %vm632_vm0, %v3257_v50  ;;  %3168 = vmatprep.mubr.msk.bf16.mxu1 %vm632_vm0, %v3258_v51 }
  0x72   : > { %3105 = vmatmul.mubr.msk.bf16.gmra.mrb[44].mxu0 %vm632_vm0, %v3259_v52  ;;  %3169 = vmatmul.mubr.msk.bf16.gmra.mrb[44].mxu1 %vm632_vm0, %v3260_v53 }
  0x73   : > { %3108 = vmatprep.mubr.msk.bf16.mxu0 %vm632_vm0, %v3261_v54  ;;  %3172 = vmatprep.mubr.msk.bf16.mxu1 %vm632_vm0, %v3262_v55 }
  0x7a   : > { %3109 = vmatmul.mubr.msk.bf16.gmra.mrb[48].mxu0 %vm632_vm0, %v3263_v56  ;;  %3173 = vmatmul.mubr.msk.bf16.gmra.mrb[48].mxu1 %vm632_vm0, %v3264_v57 }
  0x7b   : > { %3112 = vmatprep.mubr.msk.bf16.mxu0 %vm632_vm0, %v3265_v58  ;;  %3176 = vmatprep.mubr.msk.bf16.mxu1 %vm632_vm0, %v3266_v59 }
  0x82   : > { %3113 = vmatmul.mubr.msk.bf16.gmra.mrb[52].mxu0 %vm632_vm0, %v3267_v60  ;;  %3177 = vmatmul.mubr.msk.bf16.gmra.mrb[52].mxu1 %vm632_vm0, %v3268_v61 }
  0x83   : > { %3116 = vmatprep.mubr.msk.bf16.mxu0 %vm632_vm0, %v3269_v62  ;;  %3180 = vmatprep.mubr.msk.bf16.mxu1 %vm632_vm0, %v3270_v63 }
  0x8a   : > { %3117 = vmatmul.mubr.msk.bf16.gmra.mrb[56].mxu0 %vm632_vm0, %v3271_v0  ;;  %3181 = vmatmul.mubr.msk.bf16.gmra.mrb[56].mxu1 %vm632_vm0, %v3272_v1 }
  0x8b   : > { %3120 = vmatprep.mubr.msk.bf16.mxu0 %vm632_vm0, %v3273_v2  ;;  %3184 = vmatprep.mubr.msk.bf16.mxu1 %vm632_vm0, %v3274_v3 }
  0x92   : > { %3121 = vmatmul.mubr.msk.bf16.gmra.mrb[60].mxu0 %vm632_vm0, %v3275_v4  ;;  %3185 = vmatmul.mubr.msk.bf16.gmra.mrb[60].mxu1 %vm632_vm0, %v3276_v5 }
  0xed   : > { %v3062_v6 = vpop.f32.mrb[0].mxu0  ;;  %v3126_v7 = vpop.f32.mrb[0].mxu1 }
  0xee   : > { %3277 = vtanh.f32 %v3062_v6  ;;  %v863_v8 = vpop.f32.mrb[1].mxu0  ;;  %v1119_v9 = vpop.f32.mrb[1].mxu1 }
  0xef   : > { %3279 = vtanh.f32 %v3126_v7  ;;  %v3063_v10 = vpop.f32.mrb[2].mxu0  ;;  %v3127_v11 = vpop.f32.mrb[2].mxu1 }
  0xf0   : > { %3281 = vtanh.f32 %v863_v8  ;;  %v866_v12 = vpop.f32.mrb[3].mxu0  ;;  %v1122_v13 = vpop.f32.mrb[3].mxu1 }
  0xf1   : > { %3283 = vtanh.f32 %v1119_v9 }
  0xf2   : > { %3285 = vtanh.f32 %v3063_v10 }
  0xf3   : > { %3287 = vtanh.f32 %v3127_v11 }
  0xf4   : > { %3289 = vtanh.f32 %v866_v12 }
  0xf5   : > { %3291 = vtanh.f32 %v1122_v13  ;;  %v3066_v14 = vpop.f32.mrb[4].mxu0  ;;  %v3130_v15 = vpop.f32.mrb[4].mxu1 }
  0xf6   : > { %3293 = vtanh.f32 %v3066_v14  ;;  %v879_v16 = vpop.f32.mrb[5].mxu0  ;;  %v1135_v17 = vpop.f32.mrb[5].mxu1 }
  0xf7   : > { %3295 = vtanh.f32 %v3130_v15  ;;  %v3067_v18 = vpop.f32.mrb[6].mxu0  ;;  %v3131_v19 = vpop.f32.mrb[6].mxu1 }
  0xf8   : > { %v3278_v20 = vpop.eup %3277  ;;  %3297 = vtanh.f32 %v879_v16  ;;  %v882_v21 = vpop.f32.mrb[7].mxu0 }
  0xf9   : > { %v1138_v22 = vpop.f32.mrb[7].mxu1  ;;  %v3280_v23 = vpop.eup %3279  ;;  %3299 = vtanh.f32 %v1135_v17 }
  0xfa   : > { %v3282_v24 = vpop.eup %3281  ;;  %3301 = vtanh.f32 %v3067_v18 }
  0xfb   : > { %v3284_v25 = vpop.eup %3283  ;;  %3303 = vtanh.f32 %v3131_v19 }
  0xfc   : > { %v3286_v26 = vpop.eup %3285  ;;  %3305 = vtanh.f32 %v882_v21 }
  0xfd   : > { %v3288_v27 = vpop.eup %3287  ;;  %v2606_v28 = vpack.c.bf16 %v3286_v26, %v3278_v20  ;;  %3307 = vtanh.f32 %v1138_v22  ;;  %v3070_v29 = vpop.f32.mrb[8].mxu0 }
  0xfe   : > { %v3134_v30 = vpop.f32.mrb[8].mxu1  ;;  %v3290_v31 = vpop.eup %3289  ;;  %v2766_v32 = vpack.c.bf16 %v3288_v27, %v3280_v23  ;;  %3309 = vtanh.f32 %v3070_v29 }
  0xff   : > { %v895_v33 = vpop.f32.mrb[9].mxu0  ;;  %v1151_v34 = vpop.f32.mrb[9].mxu1  ;;  %2918 = vst [vmem:[%s3722_s28 + $0x8] sm:$0xff] %v2606_v28   ;;  %v2601_v36 = vpack.c.bf16 %v3290_v31, %v3282_v24  ;;  %3311 = vtanh.f32 %v3134_v30 }
 0x100   : > { %v3292_v35 = vpop.eup %3291  ;;  %v3071_v37 = vpop.f32.mrb[10].mxu0  ;;  %2950 = vst [vmem:[%s3722_s28 + $0x108] sm:$0xff] %v2766_v32   ;;  %3313 = vtanh.f32 %v895_v33 }
 0x101   : > { %v3135_v38 = vpop.f32.mrb[10].mxu1  ;;  %v3294_v39 = vpop.eup %3293  ;;  %v2761_v40 = vpack.c.bf16 %v3292_v35, %v3284_v25  ;;  %2602 = vst [vmem:[%s3722_s28] sm:$0xff] %v2601_v36   ;;  %3315 = vtanh.f32 %v1151_v34 }
 0x102   : > { %v898_v41 = vpop.f32.mrb[11].mxu0  ;;  %v1154_v42 = vpop.f32.mrb[11].mxu1  ;;  %3317 = vtanh.f32 %v3071_v37 }
 0x103   : > { %v3296_v43 = vpop.eup %3295  ;;  %2949 = vst [vmem:[%s3722_s28 + $0x100] sm:$0xff] %v2761_v40   ;;  %3319 = vtanh.f32 %v3135_v38 }
 0x104   : > { %v3298_v44 = vpop.eup %3297  ;;  %3321 = vtanh.f32 %v898_v41 }
 0x105   : > { %v3300_v45 = vpop.eup %3299  ;;  %3323 = vtanh.f32 %v1154_v42  ;;  %v3074_v49 = vpop.f32.mrb[12].mxu0 }
 0x106   : > { %v3302_v46 = vpop.eup %3301  ;;  %v3138_v50 = vpop.f32.mrb[12].mxu1  ;;  %3325 = vtanh.f32 %v3074_v49 }
 0x107   : > { %v3304_v47 = vpop.eup %3303  ;;  %v2616_v48 = vpack.c.bf16 %v3302_v46, %v3294_v39  ;;  %v911_v53 = vpop.f32.mrb[13].mxu0  ;;  %3327 = vtanh.f32 %v3138_v50 }
 0x108   : > { %v3306_v51 = vpop.eup %3305  ;;  %v2776_v52 = vpack.c.bf16 %v3304_v47, %v3296_v43  ;;  %v1167_v54 = vpop.f32.mrb[13].mxu1  ;;  %3329 = vtanh.f32 %v911_v53 }
 0x109   : > { %v3308_v55 = vpop.eup %3307  ;;  %2920 = vst [vmem:[%s3722_s28 + $0x18] sm:$0xff] %v2616_v48   ;;  %v2611_v56 = vpack.c.bf16 %v3306_v51, %v3298_v44  ;;  %v3075_v57 = vpop.f32.mrb[14].mxu0  ;;  %3331 = vtanh.f32 %v1167_v54 }
 0x10a   : > { %v3139_v58 = vpop.f32.mrb[14].mxu1  ;;  %v3310_v59 = vpop.eup %3309  ;;  %2952 = vst [vmem:[%s3722_s28 + $0x118] sm:$0xff] %v2776_v52   ;;  %v2771_v60 = vpack.c.bf16 %v3308_v55, %v3300_v45  ;;  %3333 = vtanh.f32 %v3075_v57 }
 0x10b   : > { %v914_v61 = vpop.f32.mrb[15].mxu0  ;;  %v1170_v62 = vpop.f32.mrb[15].mxu1  ;;  %2919 = vst [vmem:[%s3722_s28 + $0x10] sm:$0xff] %v2611_v56   ;;  %3335 = vtanh.f32 %v3139_v58 }
 0x10c   : > { %v3312_v63 = vpop.eup %3311  ;;  %2951 = vst [vmem:[%s3722_s28 + $0x110] sm:$0xff] %v2771_v60   ;;  %3337 = vtanh.f32 %v914_v61 }
 0x10d   : > { %v3314_v0 = vpop.eup %3313  ;;  %3339 = vtanh.f32 %v1170_v62  ;;  %v3078_v5 = vpop.f32.mrb[16].mxu0 }
 0x10e   : > { %v3316_v1 = vpop.eup %3315  ;;  %v3142_v6 = vpop.f32.mrb[16].mxu1  ;;  %3341 = vtanh.f32 %v3078_v5 }
 0x10f   : > { %v3318_v2 = vpop.eup %3317  ;;  %v927_v9 = vpop.f32.mrb[17].mxu0  ;;  %3343 = vtanh.f32 %v3142_v6 }
 0x110   : > { %v3320_v3 = vpop.eup %3319  ;;  %v2626_v4 = vpack.c.bf16 %v3318_v2, %v3310_v59  ;;  %v1183_v10 = vpop.f32.mrb[17].mxu1  ;;  %3345 = vtanh.f32 %v927_v9 }
 0x111   : > { %v3322_v7 = vpop.eup %3321  ;;  %v2786_v8 = vpack.c.bf16 %v3320_v3, %v3312_v63  ;;  %v3079_v13 = vpop.f32.mrb[18].mxu0  ;;  %3347 = vtanh.f32 %v1183_v10 }
 0x112   : > { %v3324_v11 = vpop.eup %3323  ;;  %2922 = vst [vmem:[%s3722_s28 + $0x28] sm:$0xff] %v2626_v4   ;;  %v2621_v12 = vpack.c.bf16 %v3322_v7, %v3314_v0  ;;  %v3143_v14 = vpop.f32.mrb[18].mxu1  ;;  %3349 = vtanh.f32 %v3079_v13 }
 0x113   : > { %v3326_v15 = vpop.eup %3325  ;;  %2954 = vst [vmem:[%s3722_s28 + $0x128] sm:$0xff] %v2786_v8   ;;  %v2781_v16 = vpack.c.bf16 %v3324_v11, %v3316_v1  ;;  %v930_v17 = vpop.f32.mrb[19].mxu0  ;;  %3351 = vtanh.f32 %v3143_v14 }
 0x114   : > { %v1186_v18 = vpop.f32.mrb[19].mxu1  ;;  %v3328_v19 = vpop.eup %3327  ;;  %2921 = vst [vmem:[%s3722_s28 + $0x20] sm:$0xff] %v2621_v12   ;;  %3353 = vtanh.f32 %v930_v17 }
 0x115   : > { %v3330_v20 = vpop.eup %3329  ;;  %2953 = vst [vmem:[%s3722_s28 + $0x120] sm:$0xff] %v2781_v16   ;;  %3355 = vtanh.f32 %v1186_v18  ;;  %v3082_v25 = vpop.f32.mrb[20].mxu0 }
 0x116   : > { %v3332_v21 = vpop.eup %3331  ;;  %v3146_v26 = vpop.f32.mrb[20].mxu1  ;;  %3357 = vtanh.f32 %v3082_v25 }
 0x117   : > { %v3334_v22 = vpop.eup %3333  ;;  %v943_v29 = vpop.f32.mrb[21].mxu0  ;;  %3359 = vtanh.f32 %v3146_v26 }
 0x118   : > { %v3336_v23 = vpop.eup %3335  ;;  %v2636_v24 = vpack.c.bf16 %v3334_v22, %v3326_v15  ;;  %v1199_v30 = vpop.f32.mrb[21].mxu1  ;;  %3361 = vtanh.f32 %v943_v29 }
 0x119   : > { %v3338_v27 = vpop.eup %3337  ;;  %v2796_v28 = vpack.c.bf16 %v3336_v23, %v3328_v19  ;;  %v3083_v33 = vpop.f32.mrb[22].mxu0  ;;  %3363 = vtanh.f32 %v1199_v30 }
 0x11a   : > { %v3340_v31 = vpop.eup %3339  ;;  %2924 = vst [vmem:[%s3722_s28 + $0x38] sm:$0xff] %v2636_v24   ;;  %v2631_v32 = vpack.c.bf16 %v3338_v27, %v3330_v20  ;;  %v3147_v34 = vpop.f32.mrb[22].mxu1  ;;  %3365 = vtanh.f32 %v3083_v33 }
 0x11b   : > { %v3342_v35 = vpop.eup %3341  ;;  %2956 = vst [vmem:[%s3722_s28 + $0x138] sm:$0xff] %v2796_v28   ;;  %v2791_v36 = vpack.c.bf16 %v3340_v31, %v3332_v21  ;;  %v946_v37 = vpop.f32.mrb[23].mxu0  ;;  %3367 = vtanh.f32 %v3147_v34 }
 0x11c   : > { %v1202_v38 = vpop.f32.mrb[23].mxu1  ;;  %v3344_v39 = vpop.eup %3343  ;;  %2923 = vst [vmem:[%s3722_s28 + $0x30] sm:$0xff] %v2631_v32   ;;  %3369 = vtanh.f32 %v946_v37 }
 0x11d   : > { %v3346_v40 = vpop.eup %3345  ;;  %2955 = vst [vmem:[%s3722_s28 + $0x130] sm:$0xff] %v2791_v36   ;;  %3371 = vtanh.f32 %v1202_v38  ;;  %v3086_v45 = vpop.f32.mrb[24].mxu0 }
 0x11e   : > { %v3348_v41 = vpop.eup %3347  ;;  %v3150_v46 = vpop.f32.mrb[24].mxu1  ;;  %3373 = vtanh.f32 %v3086_v45 }
 0x11f   : > { %v3350_v42 = vpop.eup %3349  ;;  %v959_v49 = vpop.f32.mrb[25].mxu0  ;;  %3375 = vtanh.f32 %v3150_v46 }
 0x120   : > { %v3352_v43 = vpop.eup %3351  ;;  %v2646_v44 = vpack.c.bf16 %v3350_v42, %v3342_v35  ;;  %v1215_v50 = vpop.f32.mrb[25].mxu1  ;;  %3377 = vtanh.f32 %v959_v49 }
 0x121   : > { %v3354_v47 = vpop.eup %3353  ;;  %v2806_v48 = vpack.c.bf16 %v3352_v43, %v3344_v39  ;;  %v3087_v53 = vpop.f32.mrb[26].mxu0  ;;  %3379 = vtanh.f32 %v1215_v50 }
 0x122   : > { %v3356_v51 = vpop.eup %3355  ;;  %2926 = vst [vmem:[%s3722_s28 + $0x48] sm:$0xff] %v2646_v44   ;;  %v2641_v52 = vpack.c.bf16 %v3354_v47, %v3346_v40  ;;  %v3151_v54 = vpop.f32.mrb[26].mxu1  ;;  %3381 = vtanh.f32 %v3087_v53 }
 0x123   : > { %v3358_v55 = vpop.eup %3357  ;;  %2958 = vst [vmem:[%s3722_s28 + $0x148] sm:$0xff] %v2806_v48   ;;  %v2801_v56 = vpack.c.bf16 %v3356_v51, %v3348_v41  ;;  %v962_v57 = vpop.f32.mrb[27].mxu0  ;;  %3383 = vtanh.f32 %v3151_v54 }
 0x124   : > { %v1218_v58 = vpop.f32.mrb[27].mxu1  ;;  %v3360_v59 = vpop.eup %3359  ;;  %2925 = vst [vmem:[%s3722_s28 + $0x40] sm:$0xff] %v2641_v52   ;;  %3385 = vtanh.f32 %v962_v57 }
 0x125   : > { %v3362_v60 = vpop.eup %3361  ;;  %2957 = vst [vmem:[%s3722_s28 + $0x140] sm:$0xff] %v2801_v56   ;;  %3387 = vtanh.f32 %v1218_v58  ;;  %v3090_v1 = vpop.f32.mrb[28].mxu0 }
 0x126   : > { %v3364_v61 = vpop.eup %3363  ;;  %v3154_v2 = vpop.f32.mrb[28].mxu1  ;;  %3389 = vtanh.f32 %v3090_v1 }
 0x127   : > { %v3366_v62 = vpop.eup %3365  ;;  %v975_v5 = vpop.f32.mrb[29].mxu0  ;;  %3391 = vtanh.f32 %v3154_v2 }
 0x128   : > { %v3368_v63 = vpop.eup %3367  ;;  %v2656_v0 = vpack.c.bf16 %v3366_v62, %v3358_v55  ;;  %v1231_v6 = vpop.f32.mrb[29].mxu1  ;;  %3393 = vtanh.f32 %v975_v5 }
 0x129   : > { %v3370_v3 = vpop.eup %3369  ;;  %v2816_v4 = vpack.c.bf16 %v3368_v63, %v3360_v59  ;;  %v3091_v9 = vpop.f32.mrb[30].mxu0  ;;  %3395 = vtanh.f32 %v1231_v6 }
 0x12a   : > { %v3372_v7 = vpop.eup %3371  ;;  %2928 = vst [vmem:[%s3722_s28 + $0x58] sm:$0xff] %v2656_v0   ;;  %v2651_v8 = vpack.c.bf16 %v3370_v3, %v3362_v60  ;;  %v3155_v10 = vpop.f32.mrb[30].mxu1  ;;  %3397 = vtanh.f32 %v3091_v9 }
 0x12b   : > { %v3374_v11 = vpop.eup %3373  ;;  %2960 = vst [vmem:[%s3722_s28 + $0x158] sm:$0xff] %v2816_v4   ;;  %v2811_v12 = vpack.c.bf16 %v3372_v7, %v3364_v61  ;;  %v978_v13 = vpop.f32.mrb[31].mxu0  ;;  %3399 = vtanh.f32 %v3155_v10 }
 0x12c   : > { %v1234_v14 = vpop.f32.mrb[31].mxu1  ;;  %v3376_v15 = vpop.eup %3375  ;;  %2927 = vst [vmem:[%s3722_s28 + $0x50] sm:$0xff] %v2651_v8   ;;  %3401 = vtanh.f32 %v978_v13 }
 0x12d   : > { %v3378_v16 = vpop.eup %3377  ;;  %2959 = vst [vmem:[%s3722_s28 + $0x150] sm:$0xff] %v2811_v12   ;;  %3403 = vtanh.f32 %v1234_v14  ;;  %v3094_v21 = vpop.f32.mrb[32].mxu0 }
 0x12e   : > { %v3380_v17 = vpop.eup %3379  ;;  %v3158_v22 = vpop.f32.mrb[32].mxu1  ;;  %3405 = vtanh.f32 %v3094_v21 }
 0x12f   : > { %v3382_v18 = vpop.eup %3381  ;;  %v991_v25 = vpop.f32.mrb[33].mxu0  ;;  %3407 = vtanh.f32 %v3158_v22 }
 0x130   : > { %v3384_v19 = vpop.eup %3383  ;;  %v2666_v20 = vpack.c.bf16 %v3382_v18, %v3374_v11  ;;  %v1247_v26 = vpop.f32.mrb[33].mxu1  ;;  %3409 = vtanh.f32 %v991_v25 }
 0x131   : > { %v3386_v23 = vpop.eup %3385  ;;  %v2826_v24 = vpack.c.bf16 %v3384_v19, %v3376_v15  ;;  %v3095_v29 = vpop.f32.mrb[34].mxu0  ;;  %3411 = vtanh.f32 %v1247_v26 }
 0x132   : > { %v3388_v27 = vpop.eup %3387  ;;  %2930 = vst [vmem:[%s3722_s28 + $0x68] sm:$0xff] %v2666_v20   ;;  %v2661_v28 = vpack.c.bf16 %v3386_v23, %v3378_v16  ;;  %v3159_v30 = vpop.f32.mrb[34].mxu1  ;;  %3413 = vtanh.f32 %v3095_v29 }
 0x133   : > { %v3390_v31 = vpop.eup %3389  ;;  %2962 = vst [vmem:[%s3722_s28 + $0x168] sm:$0xff] %v2826_v24   ;;  %v2821_v32 = vpack.c.bf16 %v3388_v27, %v3380_v17  ;;  %v994_v33 = vpop.f32.mrb[35].mxu0  ;;  %3415 = vtanh.f32 %v3159_v30 }
 0x134   : > { %v1250_v34 = vpop.f32.mrb[35].mxu1  ;;  %v3392_v35 = vpop.eup %3391  ;;  %2929 = vst [vmem:[%s3722_s28 + $0x60] sm:$0xff] %v2661_v28   ;;  %3417 = vtanh.f32 %v994_v33 }
 0x135   : > { %v3394_v36 = vpop.eup %3393  ;;  %2961 = vst [vmem:[%s3722_s28 + $0x160] sm:$0xff] %v2821_v32   ;;  %3419 = vtanh.f32 %v1250_v34  ;;  %v3098_v41 = vpop.f32.mrb[36].mxu0 }
 0x136   : > { %v3396_v37 = vpop.eup %3395  ;;  %v3162_v42 = vpop.f32.mrb[36].mxu1  ;;  %3421 = vtanh.f32 %v3098_v41 }
 0x137   : > { %v3398_v38 = vpop.eup %3397  ;;  %v1007_v45 = vpop.f32.mrb[37].mxu0  ;;  %3423 = vtanh.f32 %v3162_v42 }
 0x138   : > { %v3400_v39 = vpop.eup %3399  ;;  %v2676_v40 = vpack.c.bf16 %v3398_v38, %v3390_v31  ;;  %v1263_v46 = vpop.f32.mrb[37].mxu1  ;;  %3425 = vtanh.f32 %v1007_v45 }
 0x139   : > { %v3402_v43 = vpop.eup %3401  ;;  %v2836_v44 = vpack.c.bf16 %v3400_v39, %v3392_v35  ;;  %v3099_v49 = vpop.f32.mrb[38].mxu0  ;;  %3427 = vtanh.f32 %v1263_v46 }
 0x13a   : > { %v3404_v47 = vpop.eup %3403  ;;  %2932 = vst [vmem:[%s3722_s28 + $0x78] sm:$0xff] %v2676_v40   ;;  %v2671_v48 = vpack.c.bf16 %v3402_v43, %v3394_v36  ;;  %v3163_v50 = vpop.f32.mrb[38].mxu1  ;;  %3429 = vtanh.f32 %v3099_v49 }
 0x13b   : > { %v3406_v51 = vpop.eup %3405  ;;  %2964 = vst [vmem:[%s3722_s28 + $0x178] sm:$0xff] %v2836_v44   ;;  %v2831_v52 = vpack.c.bf16 %v3404_v47, %v3396_v37  ;;  %v1010_v53 = vpop.f32.mrb[39].mxu0  ;;  %3431 = vtanh.f32 %v3163_v50 }
 0x13c   : > { %v1266_v54 = vpop.f32.mrb[39].mxu1  ;;  %v3408_v55 = vpop.eup %3407  ;;  %2931 = vst [vmem:[%s3722_s28 + $0x70] sm:$0xff] %v2671_v48   ;;  %3433 = vtanh.f32 %v1010_v53 }
 0x13d   : > { %v3410_v56 = vpop.eup %3409  ;;  %2963 = vst [vmem:[%s3722_s28 + $0x170] sm:$0xff] %v2831_v52   ;;  %3435 = vtanh.f32 %v1266_v54  ;;  %v3102_v61 = vpop.f32.mrb[40].mxu0 }
 0x13e   : > { %v3412_v57 = vpop.eup %3411  ;;  %v3166_v62 = vpop.f32.mrb[40].mxu1  ;;  %3437 = vtanh.f32 %v3102_v61 }
 0x13f   : > { %v3414_v58 = vpop.eup %3413  ;;  %v1023_v1 = vpop.f32.mrb[41].mxu0  ;;  %3439 = vtanh.f32 %v3166_v62 }
 0x140   : > { %v3416_v59 = vpop.eup %3415  ;;  %v2686_v60 = vpack.c.bf16 %v3414_v58, %v3406_v51  ;;  %v1279_v2 = vpop.f32.mrb[41].mxu1  ;;  %3441 = vtanh.f32 %v1023_v1 }
 0x141   : > { %v3418_v63 = vpop.eup %3417  ;;  %v2846_v0 = vpack.c.bf16 %v3416_v59, %v3408_v55  ;;  %v3103_v5 = vpop.f32.mrb[42].mxu0  ;;  %3443 = vtanh.f32 %v1279_v2 }
 0x142   : > { %v3420_v3 = vpop.eup %3419  ;;  %2934 = vst [vmem:[%s3722_s28 + $0x88] sm:$0xff] %v2686_v60   ;;  %v2681_v4 = vpack.c.bf16 %v3418_v63, %v3410_v56  ;;  %v3167_v6 = vpop.f32.mrb[42].mxu1  ;;  %3445 = vtanh.f32 %v3103_v5 }
 0x143   : > { %v3422_v7 = vpop.eup %3421  ;;  %2966 = vst [vmem:[%s3722_s28 + $0x188] sm:$0xff] %v2846_v0   ;;  %v2841_v8 = vpack.c.bf16 %v3420_v3, %v3412_v57  ;;  %v1026_v9 = vpop.f32.mrb[43].mxu0  ;;  %3447 = vtanh.f32 %v3167_v6 }
 0x144   : > { %v1282_v10 = vpop.f32.mrb[43].mxu1  ;;  %v3424_v11 = vpop.eup %3423  ;;  %2933 = vst [vmem:[%s3722_s28 + $0x80] sm:$0xff] %v2681_v4   ;;  %3449 = vtanh.f32 %v1026_v9 }
 0x145   : > { %v3426_v12 = vpop.eup %3425  ;;  %2965 = vst [vmem:[%s3722_s28 + $0x180] sm:$0xff] %v2841_v8   ;;  %3451 = vtanh.f32 %v1282_v10  ;;  %v3106_v17 = vpop.f32.mrb[44].mxu0 }
 0x146   : > { %v3428_v13 = vpop.eup %3427  ;;  %v3170_v18 = vpop.f32.mrb[44].mxu1  ;;  %3453 = vtanh.f32 %v3106_v17 }
 0x147   : > { %v3430_v14 = vpop.eup %3429  ;;  %v1039_v21 = vpop.f32.mrb[45].mxu0  ;;  %3455 = vtanh.f32 %v3170_v18 }
 0x148   : > { %v3432_v15 = vpop.eup %3431  ;;  %v2696_v16 = vpack.c.bf16 %v3430_v14, %v3422_v7  ;;  %v1295_v22 = vpop.f32.mrb[45].mxu1  ;;  %3457 = vtanh.f32 %v1039_v21 }
 0x149   : > { %v3434_v19 = vpop.eup %3433  ;;  %v2856_v20 = vpack.c.bf16 %v3432_v15, %v3424_v11  ;;  %v3107_v25 = vpop.f32.mrb[46].mxu0  ;;  %3459 = vtanh.f32 %v1295_v22 }
 0x14a   : > { %v3436_v23 = vpop.eup %3435  ;;  %2936 = vst [vmem:[%s3722_s28 + $0x98] sm:$0xff] %v2696_v16   ;;  %v2691_v24 = vpack.c.bf16 %v3434_v19, %v3426_v12  ;;  %v3171_v26 = vpop.f32.mrb[46].mxu1  ;;  %3461 = vtanh.f32 %v3107_v25 }
 0x14b   : > { %v3438_v27 = vpop.eup %3437  ;;  %2968 = vst [vmem:[%s3722_s28 + $0x198] sm:$0xff] %v2856_v20   ;;  %v2851_v28 = vpack.c.bf16 %v3436_v23, %v3428_v13  ;;  %v1042_v29 = vpop.f32.mrb[47].mxu0  ;;  %3463 = vtanh.f32 %v3171_v26 }
 0x14c   : > { %v1298_v30 = vpop.f32.mrb[47].mxu1  ;;  %v3440_v31 = vpop.eup %3439  ;;  %2935 = vst [vmem:[%s3722_s28 + $0x90] sm:$0xff] %v2691_v24   ;;  %3465 = vtanh.f32 %v1042_v29 }
 0x14d   : > { %v3442_v32 = vpop.eup %3441  ;;  %2967 = vst [vmem:[%s3722_s28 + $0x190] sm:$0xff] %v2851_v28   ;;  %3467 = vtanh.f32 %v1298_v30  ;;  %v3110_v37 = vpop.f32.mrb[48].mxu0 }
 0x14e   : > { %v3444_v33 = vpop.eup %3443  ;;  %v3174_v38 = vpop.f32.mrb[48].mxu1  ;;  %3469 = vtanh.f32 %v3110_v37 }
 0x14f   : > { %v3446_v34 = vpop.eup %3445  ;;  %v1055_v41 = vpop.f32.mrb[49].mxu0  ;;  %3471 = vtanh.f32 %v3174_v38 }
 0x150   : > { %v3448_v35 = vpop.eup %3447  ;;  %v2706_v36 = vpack.c.bf16 %v3446_v34, %v3438_v27  ;;  %v1311_v42 = vpop.f32.mrb[49].mxu1  ;;  %3473 = vtanh.f32 %v1055_v41 }
 0x151   : > { %v3450_v39 = vpop.eup %3449  ;;  %v2866_v40 = vpack.c.bf16 %v3448_v35, %v3440_v31  ;;  %v3111_v45 = vpop.f32.mrb[50].mxu0  ;;  %3475 = vtanh.f32 %v1311_v42 }
 0x152   : > { %v3452_v43 = vpop.eup %3451  ;;  %2938 = vst [vmem:[%s3722_s28 + $0xa8] sm:$0xff] %v2706_v36   ;;  %v2701_v44 = vpack.c.bf16 %v3450_v39, %v3442_v32  ;;  %v3175_v46 = vpop.f32.mrb[50].mxu1  ;;  %3477 = vtanh.f32 %v3111_v45 }
 0x153   : > { %v3454_v47 = vpop.eup %3453  ;;  %2970 = vst [vmem:[%s3722_s28 + $0x1a8] sm:$0xff] %v2866_v40   ;;  %v2861_v48 = vpack.c.bf16 %v3452_v43, %v3444_v33  ;;  %v1058_v49 = vpop.f32.mrb[51].mxu0  ;;  %3479 = vtanh.f32 %v3175_v46 }
 0x154   : > { %v1314_v50 = vpop.f32.mrb[51].mxu1  ;;  %v3456_v51 = vpop.eup %3455  ;;  %2937 = vst [vmem:[%s3722_s28 + $0xa0] sm:$0xff] %v2701_v44   ;;  %3481 = vtanh.f32 %v1058_v49 }
 0x155   : > { %v3458_v52 = vpop.eup %3457  ;;  %2969 = vst [vmem:[%s3722_s28 + $0x1a0] sm:$0xff] %v2861_v48   ;;  %3483 = vtanh.f32 %v1314_v50  ;;  %v3114_v57 = vpop.f32.mrb[52].mxu0 }
 0x156   : > { %v3460_v53 = vpop.eup %3459  ;;  %v3178_v58 = vpop.f32.mrb[52].mxu1  ;;  %3485 = vtanh.f32 %v3114_v57 }
 0x157   : > { %v3462_v54 = vpop.eup %3461  ;;  %v1071_v61 = vpop.f32.mrb[53].mxu0  ;;  %3487 = vtanh.f32 %v3178_v58 }
 0x158   : > { %v3464_v55 = vpop.eup %3463  ;;  %v2716_v56 = vpack.c.bf16 %v3462_v54, %v3454_v47  ;;  %v1327_v62 = vpop.f32.mrb[53].mxu1  ;;  %3489 = vtanh.f32 %v1071_v61 }
 0x159   : > { %v3466_v59 = vpop.eup %3465  ;;  %v2876_v60 = vpack.c.bf16 %v3464_v55, %v3456_v51  ;;  %v3115_v1 = vpop.f32.mrb[54].mxu0  ;;  %3491 = vtanh.f32 %v1327_v62 }
 0x15a   : > { %v3468_v63 = vpop.eup %3467  ;;  %2940 = vst [vmem:[%s3722_s28 + $0xb8] sm:$0xff] %v2716_v56   ;;  %v2711_v0 = vpack.c.bf16 %v3466_v59, %v3458_v52  ;;  %v3179_v2 = vpop.f32.mrb[54].mxu1  ;;  %3493 = vtanh.f32 %v3115_v1 }
 0x15b   : > { %v3470_v3 = vpop.eup %3469  ;;  %2972 = vst [vmem:[%s3722_s28 + $0x1b8] sm:$0xff] %v2876_v60   ;;  %v2871_v4 = vpack.c.bf16 %v3468_v63, %v3460_v53  ;;  %v1074_v5 = vpop.f32.mrb[55].mxu0  ;;  %3495 = vtanh.f32 %v3179_v2 }
 0x15c   : > { %v1330_v6 = vpop.f32.mrb[55].mxu1  ;;  %v3472_v7 = vpop.eup %3471  ;;  %2939 = vst [vmem:[%s3722_s28 + $0xb0] sm:$0xff] %v2711_v0   ;;  %3497 = vtanh.f32 %v1074_v5 }
 0x15d   : > { %v3474_v8 = vpop.eup %3473  ;;  %2971 = vst [vmem:[%s3722_s28 + $0x1b0] sm:$0xff] %v2871_v4   ;;  %3499 = vtanh.f32 %v1330_v6  ;;  %v3118_v13 = vpop.f32.mrb[56].mxu0 }
 0x15e   : > { %v3476_v9 = vpop.eup %3475  ;;  %v3182_v14 = vpop.f32.mrb[56].mxu1  ;;  %3501 = vtanh.f32 %v3118_v13 }
 0x15f   : > { %v3478_v10 = vpop.eup %3477  ;;  %v1087_v17 = vpop.f32.mrb[57].mxu0  ;;  %3503 = vtanh.f32 %v3182_v14 }
 0x160   : > { %v3480_v11 = vpop.eup %3479  ;;  %v2726_v12 = vpack.c.bf16 %v3478_v10, %v3470_v3  ;;  %v1343_v18 = vpop.f32.mrb[57].mxu1  ;;  %3505 = vtanh.f32 %v1087_v17 }
 0x161   : > { %v3482_v15 = vpop.eup %3481  ;;  %v2886_v16 = vpack.c.bf16 %v3480_v11, %v3472_v7  ;;  %v3119_v21 = vpop.f32.mrb[58].mxu0  ;;  %3507 = vtanh.f32 %v1343_v18 }
 0x162   : > { %v3484_v19 = vpop.eup %3483  ;;  %2942 = vst [vmem:[%s3722_s28 + $0xc8] sm:$0xff] %v2726_v12   ;;  %v2721_v20 = vpack.c.bf16 %v3482_v15, %v3474_v8  ;;  %v3183_v22 = vpop.f32.mrb[58].mxu1  ;;  %3509 = vtanh.f32 %v3119_v21 }
 0x163   : > { %v3486_v23 = vpop.eup %3485  ;;  %2974 = vst [vmem:[%s3722_s28 + $0x1c8] sm:$0xff] %v2886_v16   ;;  %v2881_v24 = vpack.c.bf16 %v3484_v19, %v3476_v9  ;;  %v1090_v25 = vpop.f32.mrb[59].mxu0  ;;  %3511 = vtanh.f32 %v3183_v22 }
 0x164   : > { %v1346_v26 = vpop.f32.mrb[59].mxu1  ;;  %v3488_v27 = vpop.eup %3487  ;;  %2941 = vst [vmem:[%s3722_s28 + $0xc0] sm:$0xff] %v2721_v20   ;;  %3513 = vtanh.f32 %v1090_v25 }
 0x165   : > { %v3490_v28 = vpop.eup %3489  ;;  %2973 = vst [vmem:[%s3722_s28 + $0x1c0] sm:$0xff] %v2881_v24   ;;  %3515 = vtanh.f32 %v1346_v26  ;;  %v3122_v33 = vpop.f32.mrb[60].mxu0 }
 0x166   : > { %v3492_v29 = vpop.eup %3491  ;;  %v3186_v34 = vpop.f32.mrb[60].mxu1  ;;  %3517 = vtanh.f32 %v3122_v33 }
 0x167   : > { %v3494_v30 = vpop.eup %3493  ;;  %v1103_v37 = vpop.f32.mrb[61].mxu0  ;;  %3519 = vtanh.f32 %v3186_v34 }
 0x168   : > { %v3496_v31 = vpop.eup %3495  ;;  %v2736_v32 = vpack.c.bf16 %v3494_v30, %v3486_v23  ;;  %v1359_v38 = vpop.f32.mrb[61].mxu1  ;;  %3521 = vtanh.f32 %v1103_v37 }
 0x169   : > { %v3498_v35 = vpop.eup %3497  ;;  %v2896_v36 = vpack.c.bf16 %v3496_v31, %v3488_v27  ;;  %v3123_v41 = vpop.f32.mrb[62].mxu0  ;;  %3523 = vtanh.f32 %v1359_v38 }
 0x16a   : > { %v3500_v39 = vpop.eup %3499  ;;  %2944 = vst [vmem:[%s3722_s28 + $0xd8] sm:$0xff] %v2736_v32   ;;  %v2731_v40 = vpack.c.bf16 %v3498_v35, %v3490_v28  ;;  %v3187_v42 = vpop.f32.mrb[62].mxu1  ;;  %3525 = vtanh.f32 %v3123_v41 }
 0x16b   : > { %v3502_v43 = vpop.eup %3501  ;;  %2976 = vst [vmem:[%s3722_s28 + $0x1d8] sm:$0xff] %v2896_v36   ;;  %v2891_v44 = vpack.c.bf16 %v3500_v39, %v3492_v29  ;;  %v1106_v45 = vpop.f32.mrb[63].mxu0  ;;  %3527 = vtanh.f32 %v3187_v42 }
 0x16c   : > { %v1362_v46 = vpop.f32.mrb[63].mxu1  ;;  %v3504_v47 = vpop.eup %3503  ;;  %2943 = vst [vmem:[%s3722_s28 + $0xd0] sm:$0xff] %v2731_v40   ;;  %3529 = vtanh.f32 %v1106_v45 }
 0x16d   : > { %v3506_v48 = vpop.eup %3505  ;;  %2975 = vst [vmem:[%s3722_s28 + $0x1d0] sm:$0xff] %v2891_v44   ;;  %3531 = vtanh.f32 %v1362_v46 }
 0x16e   : > { %v3508_v49 = vpop.eup %3507 }
 0x16f   : > { %v3510_v50 = vpop.eup %3509 }
 0x170   : > { %v3512_v51 = vpop.eup %3511  ;;  %v2746_v52 = vpack.c.bf16 %v3510_v50, %v3502_v43 }
 0x171   : > { %v3514_v53 = vpop.eup %3513  ;;  %v2906_v54 = vpack.c.bf16 %v3512_v51, %v3504_v47 }
 0x172   : > { %v3516_v55 = vpop.eup %3515  ;;  %2946 = vst [vmem:[%s3722_s28 + $0xe8] sm:$0xff] %v2746_v52   ;;  %v2741_v56 = vpack.c.bf16 %v3514_v53, %v3506_v48 }
 0x173   : > { %v3518_v57 = vpop.eup %3517  ;;  %2978 = vst [vmem:[%s3722_s28 + $0x1e8] sm:$0xff] %v2906_v54   ;;  %v2901_v58 = vpack.c.bf16 %v3516_v55, %v3508_v49 }
 0x174   : > { %v3520_v59 = vpop.eup %3519  ;;  %2945 = vst [vmem:[%s3722_s28 + $0xe0] sm:$0xff] %v2741_v56  }
 0x175   : > { %v3522_v60 = vpop.eup %3521  ;;  %2977 = vst [vmem:[%s3722_s28 + $0x1e0] sm:$0xff] %v2901_v58  }
 0x176   : > { %v3524_v61 = vpop.eup %3523 }
 0x177   : > { %v3526_v62 = vpop.eup %3525 }
 0x178   : > { %v3528_v63 = vpop.eup %3527  ;;  %v2756_v0 = vpack.c.bf16 %v3526_v62, %v3518_v57 }
 0x179   : > { %v3530_v1 = vpop.eup %3529  ;;  %v2916_v2 = vpack.c.bf16 %v3528_v63, %v3520_v59 }
 0x17a   : > { %v3532_v3 = vpop.eup %3531  ;;  %2948 = vst [vmem:[%s3722_s28 + $0xf8] sm:$0xff] %v2756_v0   ;;  %v2751_v4 = vpack.c.bf16 %v3530_v1, %v3522_v60 }
 0x17b   : > { %2980 = vst [vmem:[%s3722_s28 + $0x1f8] sm:$0xff] %v2916_v2   ;;  %v2911_v5 = vpack.c.bf16 %v3532_v3, %v3524_v61 }
 0x17c   : > { %2947 = vst [vmem:[%s3722_s28 + $0xf0] sm:$0xff] %v2751_v4  }
 0x17d   : > { %2979 = vst [vmem:[%s3722_s28 + $0x1f0] sm:$0xff] %v2911_v5  }
 0x17e PF: > { %s12_s9 = sadd.s32 1, %s3539_s9  }
 0x17f   : > { %p9_p4 = scmp.ge.s32.totalorder %s12_s9, 4  }
 0x181   :  { %11 = sbr.rel (!%p9_p4) target bundleno = 1 (0x1), region = 58 }

</bundles_post_ra>
